<compile_context>
chip_gen: v7x
topology: tpu7x:2x2x1
jax: 0.10.0
libtpu: 0.0.40
codegen_flags: <defaults>
</compile_context>

<pallas_src>
import functools

import jax
import jax.numpy as jnp
from jax.experimental import pallas as pl
from jax.experimental.pallas import tpu as pltpu


def _matmul_bn_relu_kernel(a_ref, w_ref, scale_ref, bias_ref, gamma_ref,
                           beta_ref, o_ref, *, eps):
    # Full-K single-step GEMM: no accumulator revisit, no init/finalize gating.
    # For bf16 weights the astype is a no-op; for int8 weights it is the
    # dequant-to-bf16 (exact: |q| <= 127 is exactly representable in bf16).
    w = w_ref[...].astype(jnp.bfloat16)
    y = jnp.dot(a_ref[...], w, preferred_element_type=jnp.float32)
    # Per-output-channel dequant scale (exact, f32) + conv bias.
    y = y * scale_ref[...] + bias_ref[...]
    # BatchNorm2d (training-mode forward): biased batch statistics over the
    # N*H*W rows, per channel.  Correct only because this block holds the
    # full M extent (M is never tiled).
    mean = jnp.mean(y, axis=0, keepdims=True)
    var = jnp.mean((y - mean) ** 2, axis=0, keepdims=True)
    y = (y - mean) * jax.lax.rsqrt(var + eps)
    y = y * gamma_ref[...] + beta_ref[...]
    o_ref[...] = jnp.maximum(y, 0.0)                     # ReLU


def matmul_bn_relu(a_bf16, w, scale, bias, gamma, beta, *, tn, eps=1e-5):
    """Fused ((a @ w) * scale + bias) -> train-mode BatchNorm -> ReLU.

    `a_bf16` must already be bf16 (cast at the boundary).  `w` is bf16 or
    int8 (per-output-channel `scale`, ones for unquantized weights).
    """
    M, K = a_bf16.shape
    K2, N = w.shape
    assert K == K2 and N % tn == 0
    assert a_bf16.dtype == jnp.bfloat16
    grid = (N // tn,)                          # 1-D, purely parallel
    kernel = functools.partial(_matmul_bn_relu_kernel, eps=eps)
    return pl.pallas_call(
        kernel,
        out_shape=jax.ShapeDtypeStruct((M, N), jnp.float32),
        grid_spec=pltpu.PrefetchScalarGridSpec(
            num_scalar_prefetch=0,
            grid=grid,
            in_specs=[
                # Resident im2col LHS (constant block index -> fetched once).
                pl.BlockSpec((M, K), lambda j: (0, 0)),
                # Weights -- the dominant HBM stream (bf16 or int8).
                pl.BlockSpec((K, tn), lambda j: (0, j)),
                pl.BlockSpec((1, tn), lambda j: (0, j)),   # dequant scale
                pl.BlockSpec((1, tn), lambda j: (0, j)),   # conv bias
                pl.BlockSpec((1, tn), lambda j: (0, j)),   # BN gamma
                pl.BlockSpec((1, tn), lambda j: (0, j)),   # BN beta
            ],
            out_specs=pl.BlockSpec((M, tn), lambda j: (0, j)),
        ),
        compiler_params=pltpu.CompilerParams(
            dimension_semantics=("parallel",),
            # ~33 MiB worst case (conv2) -> fits v7x's 64 MiB physical VMEM;
            # ample headroom on v5e/v6e (128 MiB).
            vmem_limit_bytes=48 * 1024 * 1024,
        ),
    )(a_bf16, w, scale, bias, gamma, beta)


def _im2col_3x3_s2_p1(x_nhwc):
    """im2col for kernel=3, stride=2, padding=1; patch order (kh, kw, c)."""
    n, h, w, c = x_nhwc.shape
    oh = (h + 2 - 3) // 2 + 1
    ow = (w + 2 - 3) // 2 + 1
    xp = jnp.pad(x_nhwc, ((0, 0), (1, 1), (1, 1), (0, 0)))
    cols = []
    for kh in range(3):
        for kw in range(3):
            cols.append(xp[:, kh:kh + 2 * oh:2, kw:kw + 2 * ow:2, :])
    patches = jnp.concatenate(cols, axis=-1)          # (N, oh, ow, 9*C)
    return patches.reshape(n * oh * ow, 9 * c), (n, oh, ow)


def _quantize_int8_per_channel(w2d):
    """Weight-only int8 quantization with a per-output-channel scale."""
    amax = jnp.max(jnp.abs(w2d), axis=0, keepdims=True)
    scale = jnp.maximum(amax, 1e-12) / 127.0
    w_q = jnp.clip(jnp.round(w2d / scale), -127.0, 127.0).astype(jnp.int8)
    return w_q, scale.astype(jnp.float32)


def prepare_params(params):
    """One-time host-side weight prep: bf16 w1, int8+scale w2."""
    w1 = params["w1"].reshape(-1, params["w1"].shape[-1]).astype(jnp.bfloat16)
    w2q, s2 = _quantize_int8_per_channel(
        params["w2"].reshape(-1, params["w2"].shape[-1]))
    return {
        "w1": w1, "s1": jnp.ones((1, w1.shape[-1]), jnp.float32),
        "b1": params["b1"], "g1": params["g1"], "beta1": params["beta1"],
        "w2": w2q, "s2": s2,
        "b2": params["b2"], "g2": params["g2"], "beta2": params["beta2"],
    }


def encoder_forward(x_nchw, pp):
    """Forward pass of `Encoder`; input NCHW, output NCHW."""
    x = jnp.transpose(x_nchw, (0, 2, 3, 1))            # NCHW -> NHWC
    # --- conv1 (3x3, s2, p1) + BN + ReLU --------------------------------
    a1, (n, oh, ow) = _im2col_3x3_s2_p1(x)
    a1 = a1.astype(jnp.bfloat16)                        # boundary cast (item 1)
    # grid (2,): 4.5 MiB bf16 weight blocks; j=2 keeps both v7x TCs busy.
    y1 = matmul_bn_relu(a1, pp["w1"], pp["s1"], pp["b1"], pp["g1"],
                        pp["beta1"], tn=512)
    y1 = y1.reshape(n, oh, ow, -1)                      # (N, 4, 4, 1024)
    # --- conv2 (4x4 valid) + BN + ReLU ----------------------------------
    # With 4x4 spatial input and a 4x4 valid kernel the output is 1x1, so
    # im2col is just a flatten in (h, w, c) order (matches HWIO weight).
    assert oh == 4 and ow == 4
    a2 = y1.reshape(n, oh * ow * y1.shape[-1]).astype(jnp.bfloat16)  # (N,16384)
    # grid (8,): 8 MiB int8 weight blocks (full K); double-buffered + 16 MiB
    # bf16 dequant temp fits the 48 MiB limit on every generation.
    y2 = matmul_bn_relu(a2, pp["w2"], pp["s2"], pp["b2"], pp["g2"],
                        pp["beta2"], tn=512)
    return jnp.transpose(y2.reshape(n, 1, 1, -1), (0, 3, 1, 2))  # (N,4096,1,1)


# ------------------------- pure-JAX reference ---------------------------
def _ref_matmul_bn_relu(a_bf16, w, scale, bias, gamma, beta, eps=1e-5):
    # Mirror the kernel's math exactly (bf16 LHS, int8/bf16 weights, f32 acc,
    # per-channel dequant scale in the epilogue).
    a = a_bf16.astype(jnp.float32)
    wf = w.astype(jnp.float32)
    y = jnp.dot(a, wf, precision=jax.lax.Precision.HIGHEST) * scale + bias
    mean = y.mean(0, keepdims=True)
    var = ((y - mean) ** 2).mean(0, keepdims=True)
    return jnp.maximum((y - mean) / jnp.sqrt(var + eps) * gamma + beta, 0.0)


def make_params():
    keys = jax.random.split(jax.random.PRNGKey(42), 10)
    f32 = jnp.float32
    return {
        # conv1: PyTorch OIHW (1024, 512, 3, 3) stored here as HWIO (3,3,512,1024)
        "w1": 0.02 * jax.random.normal(keys[0], (3, 3, 512, 1024), f32),
        "b1": 0.01 * jax.random.normal(keys[1], (1, 1024), f32),
        "g1": 1.0 + 0.1 * jax.random.normal(keys[2], (1, 1024), f32),
        "beta1": 0.1 * jax.random.normal(keys[3], (1, 1024), f32),
        # conv2: PyTorch OIHW (4096, 1024, 4, 4) stored here as HWIO (4,4,1024,4096)
        "w2": 0.01 * jax.random.normal(keys[4], (4, 4, 1024, 4096), f32),
        "b2": 0.01 * jax.random.normal(keys[5], (1, 4096), f32),
        "g2": 1.0 + 0.1 * jax.random.normal(keys[6], (1, 4096), f32),
        "beta2": 0.1 * jax.random.normal(keys[7], (1, 4096), f32),
    }


if __name__ == "__main__":
    params = make_params()
    pp = prepare_params(params)
    # Input implied by the module: (N, 512, H, W); 8x8 spatial -> 4x4 -> 1x1.
    x = jax.random.normal(jax.random.PRNGKey(0), (2, 512, 8, 8), jnp.float32)

    out = jax.block_until_ready(encoder_forward(x, pp))
    assert out.shape == (2, 4096, 1, 1), out.shape

    # Correctness: verify each fused kernel against a pure-JAX reference fed
    # the SAME (quantized) inputs.  A fully independent f32 end-to-end
    # reference is ill-conditioned here: bf16/int8 mid-pipeline quantization
    # plus batch-2 BatchNorm makes layer 2 extremely sensitive to sub-ulp
    # differences in the layer-1 result, so the check is staged per layer.
    # NOTE: BN is training-mode (biased batch stats), matching a PyTorch
    # module in its default train() state; eval-mode running stats would need
    # prefetched mean/var instead of the in-kernel reduction.
    x_nhwc = jnp.transpose(x, (0, 2, 3, 1))
    a1, (n, oh, ow) = _im2col_3x3_s2_p1(x_nhwc)
    a1 = a1.astype(jnp.bfloat16)
    y1_k = matmul_bn_relu(a1, pp["w1"], pp["s1"], pp["b1"], pp["g1"],
                          pp["beta1"], tn=512)
    y1_r = _ref_matmul_bn_relu(a1, pp["w1"], pp["s1"], pp["b1"], pp["g1"],
                               pp["beta1"])
    assert jnp.allclose(y1_k, y1_r, rtol=5e-3, atol=5e-3), (
        float(jnp.max(jnp.abs(y1_k - y1_r))))

    a2 = y1_k.reshape(n, oh * ow * 1024).astype(jnp.bfloat16)
    y2_k = matmul_bn_relu(a2, pp["w2"], pp["s2"], pp["b2"], pp["g2"],
                          pp["beta2"], tn=512)
    y2_r = _ref_matmul_bn_relu(a2, pp["w2"], pp["s2"], pp["b2"], pp["g2"],
                               pp["beta2"])
    # Batch-2 BatchNorm (var + 1e-5) amplifies f32 accumulation-order noise
    # by up to ~1/sqrt(eps) on near-degenerate channels -> looser tolerance.
    assert jnp.allclose(y2_k, y2_r, rtol=2e-2, atol=2e-2), (
        float(jnp.max(jnp.abs(y2_k - y2_r))))

    # The fused pipeline output must match the staged layer-2 kernel output.
    assert jnp.allclose(out.reshape(n, -1), y2_k, rtol=0.0, atol=1e-5)

    print("KERNEL_OK")
</pallas_src>

<mosaic_0001>
module attributes {stable_mosaic.version = 11 : i64} {
  func.func @_matmul_bn_relu_kernel(%arg0: i32, %arg1: memref<32x4608xbf16, #tpu.memory_space<vmem>>, %arg2: memref<4608x512xbf16, #tpu.memory_space<vmem>>, %arg3: memref<1x512xf32, #tpu.memory_space<vmem>>, %arg4: memref<1x512xf32, #tpu.memory_space<vmem>>, %arg5: memref<1x512xf32, #tpu.memory_space<vmem>>, %arg6: memref<1x512xf32, #tpu.memory_space<vmem>>, %arg7: memref<32x512xf32, #tpu.memory_space<vmem>>) attributes {dimension_semantics = [#tpu.dimension_semantics<parallel>], iteration_bounds = array<i64: 2>, scalar_prefetch = 0 : i64, scratch_operands = 0 : i64, tpu.core_type = #tpu.core_type<tc>, window_params = [{pipeline_mode = #tpu.pipeline_mode<synchronous>, transform_indices = @transform_0, window_bounds = array<i64: 32, 4608>}, {transform_indices = @transform_1, window_bounds = array<i64: 4608, 512>}, {transform_indices = @transform_2, window_bounds = array<i64: 1, 512>}, {transform_indices = @transform_3, window_bounds = array<i64: 1, 512>}, {transform_indices = @transform_4, window_bounds = array<i64: 1, 512>}, {transform_indices = @transform_5, window_bounds = array<i64: 1, 512>}, {transform_indices = @transform_6, window_bounds = array<i64: 32, 512>}]} {
    %c0 = arith.constant 0 : index
    %c0_0 = arith.constant 0 : index
    %0 = vector.load %arg2[%c0, %c0_0] : memref<4608x512xbf16, #tpu.memory_space<vmem>>, vector<4608x512xbf16>
    %c0_1 = arith.constant 0 : index
    %c0_2 = arith.constant 0 : index
    %1 = vector.load %arg1[%c0_1, %c0_2] : memref<32x4608xbf16, #tpu.memory_space<vmem>>, vector<32x4608xbf16>
    %cst = arith.constant dense<0.000000e+00> : vector<32x512xf32>
    %2 = tpu.matmul %1, %0, %cst {dimension_numbers = #tpu.dot_dimension_numbers<[1], [0], [0], [1], [0, 0, 1, 1], [], []>} : vector<32x4608xbf16>, vector<4608x512xbf16>, vector<32x512xf32> -> vector<32x512xf32>
    %c0_3 = arith.constant 0 : index
    %c0_4 = arith.constant 0 : index
    %3 = vector.load %arg3[%c0_3, %c0_4] : memref<1x512xf32, #tpu.memory_space<vmem>>, vector<1x512xf32>
    %4 = vector.broadcast %3 : vector<1x512xf32> to vector<32x512xf32>
    %5 = arith.mulf %2, %4 : vector<32x512xf32>
    %c0_5 = arith.constant 0 : index
    %c0_6 = arith.constant 0 : index
    %6 = vector.load %arg4[%c0_5, %c0_6] : memref<1x512xf32, #tpu.memory_space<vmem>>, vector<1x512xf32>
    %7 = vector.broadcast %6 : vector<1x512xf32> to vector<32x512xf32>
    %8 = arith.addf %5, %7 : vector<32x512xf32>
    %cst_7 = arith.constant dense<0.000000e+00> : vector<512xf32>
    %9 = vector.multi_reduction <add>, %8, %cst_7 [0] : vector<32x512xf32> to vector<512xf32>
    %10 = vector.shape_cast %9 : vector<512xf32> to vector<1x512xf32>
    %cst_8 = arith.constant 3.200000e+01 : f32
    %11 = vector.broadcast %cst_8 : f32 to vector<1x512xf32>
    %12 = arith.divf %10, %11 : vector<1x512xf32>
    %13 = vector.broadcast %12 : vector<1x512xf32> to vector<32x512xf32>
    %14 = arith.subf %8, %13 : vector<32x512xf32>
    %15 = arith.mulf %14, %14 : vector<32x512xf32>
    %cst_9 = arith.constant dense<0.000000e+00> : vector<512xf32>
    %16 = vector.multi_reduction <add>, %15, %cst_9 [0] : vector<32x512xf32> to vector<512xf32>
    %17 = vector.shape_cast %16 : vector<512xf32> to vector<1x512xf32>
    %cst_10 = arith.constant 3.200000e+01 : f32
    %18 = vector.broadcast %cst_10 : f32 to vector<1x512xf32>
    %19 = arith.divf %17, %18 : vector<1x512xf32>
    %20 = vector.broadcast %12 : vector<1x512xf32> to vector<32x512xf32>
    %21 = arith.subf %8, %20 : vector<32x512xf32>
    %cst_11 = arith.constant 9.99999974E-6 : f32
    %22 = vector.broadcast %cst_11 : f32 to vector<1x512xf32>
    %23 = arith.addf %19, %22 : vector<1x512xf32>
    %24 = math.rsqrt %23 : vector<1x512xf32>
    %25 = vector.broadcast %24 : vector<1x512xf32> to vector<32x512xf32>
    %26 = arith.mulf %21, %25 : vector<32x512xf32>
    %c0_12 = arith.constant 0 : index
    %c0_13 = arith.constant 0 : index
    %27 = vector.load %arg5[%c0_12, %c0_13] : memref<1x512xf32, #tpu.memory_space<vmem>>, vector<1x512xf32>
    %28 = vector.broadcast %27 : vector<1x512xf32> to vector<32x512xf32>
    %29 = arith.mulf %26, %28 : vector<32x512xf32>
    %c0_14 = arith.constant 0 : index
    %c0_15 = arith.constant 0 : index
    %30 = vector.load %arg6[%c0_14, %c0_15] : memref<1x512xf32, #tpu.memory_space<vmem>>, vector<1x512xf32>
    %31 = vector.broadcast %30 : vector<1x512xf32> to vector<32x512xf32>
    %32 = arith.addf %29, %31 : vector<32x512xf32>
    %cst_16 = arith.constant 0.000000e+00 : f32
    %33 = vector.broadcast %cst_16 : f32 to vector<32x512xf32>
    %34 = arith.maximumf %32, %33 : vector<32x512xf32>
    %c0_17 = arith.constant 0 : index
    %c0_18 = arith.constant 0 : index
    %35 = vector.load %arg7[%c0_17, %c0_18] : memref<32x512xf32, #tpu.memory_space<vmem>>, vector<32x512xf32>
    tpu.vector_store %arg7[%c0_17, %c0_18], %34 {strides = array<i32>} : memref<32x512xf32, #tpu.memory_space<vmem>>, vector<32x512xf32>,
    return
  }
  func.func @transform_0(%arg0: i32) -> (i32, i32) {
    %c0_i32 = arith.constant 0 : i32
    %c0_i32_0 = arith.constant 0 : i32
    %c0_i32_1 = arith.constant 0 : i32
    return %c0_i32, %c0_i32_0 : i32, i32
  }
  func.func @transform_1(%arg0: i32) -> (i32, i32) {
    %c0_i32 = arith.constant 0 : i32
    %c0_i32_0 = arith.constant 0 : i32
    return %c0_i32, %arg0 : i32, i32
  }
  func.func @transform_2(%arg0: i32) -> (i32, i32) {
    %c0_i32 = arith.constant 0 : i32
    %c0_i32_0 = arith.constant 0 : i32
    return %c0_i32, %arg0 : i32, i32
  }
  func.func @transform_3(%arg0: i32) -> (i32, i32) {
    %c0_i32 = arith.constant 0 : i32
    %c0_i32_0 = arith.constant 0 : i32
    return %c0_i32, %arg0 : i32, i32
  }
  func.func @transform_4(%arg0: i32) -> (i32, i32) {
    %c0_i32 = arith.constant 0 : i32
    %c0_i32_0 = arith.constant 0 : i32
    return %c0_i32, %arg0 : i32, i32
  }
  func.func @transform_5(%arg0: i32) -> (i32, i32) {
    %c0_i32 = arith.constant 0 : i32
    %c0_i32_0 = arith.constant 0 : i32
    return %c0_i32, %arg0 : i32, i32
  }
  func.func @transform_6(%arg0: i32) -> (i32, i32) {
    %c0_i32 = arith.constant 0 : i32
    %c0_i32_0 = arith.constant 0 : i32
    return %c0_i32, %arg0 : i32, i32
  }
}

</mosaic_0001>

<bundles_post_ra>
// kernel: tpu_custom_call.1
= control target key start
LH: loop header
LB: loop body
LE: loop exit
PB: predicated region body
PF: predicated region fallthrough
CT: control target
= control target key end

     0   :  { %s15649_s0 = inlined_call_operand.hbm [shape: bf16[32,4608], index: 0, kind: input, shape index: {}]   ;;  %s15650_s1 = inlined_call_operand.hbm [shape: bf16[4608,1024], index: 1, kind: input, shape index: {}]   ;;  %s15651_s2 = inlined_call_operand.hbm [shape: f32[1,1024], index: 2, kind: input, shape index: {}]   ;;  %s15652_s3 = inlined_call_operand.hbm [shape: f32[1,1024], index: 3, kind: input, shape index: {}]   ;;  %s15653_s4 = inlined_call_operand.hbm [shape: f32[1,1024], index: 4, kind: input, shape index: {}]   ;;  %s15654_s5 = inlined_call_operand.hbm [shape: f32[1,1024], index: 5, kind: input, shape index: {}]   ;;  %s15655_s6 = inlined_call_operand.hbm [shape: f32[32,1024], index: 6, kind: output, shape index: {}]  }
   0x1   :  { %15671 = sst [smem:[#allocation24_spill]] %s15650_s1 }
   0x2   :  { %15672 = sst [smem:[#allocation25_spill]] %s15652_s3 }
   0x3   :  { %11 = vsyncpa [#allocation3], 0 }
   0x4   :  { %12 = vsyncpa [#allocation6], 0 }
   0x5   :  { %14 = vsyncpa [#allocation6 + $0x1], 0 }
   0x6   :  { %15 = vsyncpa [#allocation9], 0 }
   0x7   :  { %17 = vsyncpa [#allocation9 + $0x1], 0 }
   0x8   :  { %18 = vsyncpa [#allocation12], 0 }
   0x9   :  { %20 = vsyncpa [#allocation12 + $0x1], 0 }
   0xa   :  { %21 = vsyncpa [#allocation4], 0 }
   0xb   :  { %23 = vsyncpa [#allocation4 + $0x1], 0  ;;  %s13966_s21 = smov 0   ;;  %s13968_s22 = smov 0  }
   0xc   :  { %s13970_s23 = smov 0   ;;  %s13972_s24 = smov 0  }
   0xd LB: > { %15673 = sst [smem:[#allocation19_spill]] %s13910_s23  ;;  %s13987_s25 = sadd.s32 1, %s13914_s24   ;;  %s13914_s24 = sphi %s13972_s24, %s15703_s24   ;;  %s13910_s23 = sphi %s13970_s23, %s15705_s23   ;;  %s13906_s22 = sphi %s13968_s22, %s15707_s22   ;;  %s13902_s21 = sphi %s13966_s21, %s15706_s21  }
   0xe   : > { %15674 = sst [smem:[#allocation20_spill]] %s13914_s24  ;;  %s57_s26 = sadd.s32 1, %s13910_s23 }
   0xf   : > { %15675 = sst [smem:[#allocation21_spill]] %s13987_s25  ;;  %s54_s27 = ssub.s32 %s13914_s24, %s13987_s25 }
  0x10   : > { %p15656_p0 = scmp.ne.s32.totalorder %s13910_s23, %s13906_s22  ;;  %p55_p1 = scmp.eq.s32.totalorder %s54_s27, 0 }
  0x11   : > { %p65_p2 = scmp.eq.s32.totalorder %s13914_s24, 0  ;;  %p11770_p4 = scmp.lt.s32.totalorder %s13914_s24, 2 }
  0x12   : > { %s13998_s28 = scalar_select %p55_p1, %s13910_s23, %s57_s26  }
  0x13   : > { %p66_p5 = por %p65_p2, %p15656_p0  ;;  %s237_s29 = sand.u32 1, %s13914_s24  }
  0x14   : > { %15676 = sst [smem:[#allocation22_spill]] %s13998_s28  ;;  %s14005_s30 = sand.u32 1, %s13910_s23  }
  0x15   : > { %s11727_s7 = smul.u32 9216, %s14005_s30  ;;  %s11449_s8 = sshll.u32 %s13914_s24, 8 }
  0x16   : > { %s15677_s1 = sld [smem:[#allocation24_spill]]  ;;  %p14014_p6 = pnand %p11770_p4, %p66_p5 }
  0x17   : > { %s241_s13 = scalar_lea.vmem [#allocation5], %s11727_s7  ;;  %s14021_s15 = sshll.u32 %s14005_s30, 2 }
  0x18   : > { %s15678_s12 = scalar_select %p14014_p6, 1, 0 }
  0x19   : > { %s248_s14 = sshll.u32 %s241_s13, 4  ;;  %s14025_s16 = scalar_lea.sflag [#allocation6], %s237_s29  ;;  %s14018_s14 = int_to_ptr.vmem [resolvable:$true] %s248_s14 }
  0x1a   : > { %p14031_p8 = pneg %p14014_p6 }
  0x1c   : > { %s14012_s11 = scalar_lea.hbm %s15677_s1, %s11449_s8  ;;  %s13663_s26 = scalar_lea.hbm %s15677_s1, 294912 }
  0x1d   : > { %s13658_s17 = scalar_lea.hbm %s14012_s11, 147456  ;;  %p13664_p11 = scmp.lt.u32.totalorder %s14012_s11, %s15677_s1 }
  0x1e   : > { %p13659_p7 = scmp.ne.s32.totalorder %s14012_s11, %s13658_s17  ;;  %p13665_p12 = scmp.lt.u32.totalorder %s13663_s26, %s13658_s17 }
  0x1f   : > { %s15679_s18 = scalar_select %p14031_p8, 1, 0 }
  0x20   : > { %p13661_p9 = pnand %p14031_p8, %p13659_p7  ;;  %p13666_p13 = por %p13665_p12, %p13664_p11 }
  0x21   : > { %p13667_p1 = scmp.lt.u32.totalorder %s13658_s17, %s14012_s11 }
  0x22   : > { %p13662_p10 = pneg %p13661_p9 }
  0x23   : > { %p13668_p2 = por %p13667_p1, %p13666_p13 }
  0x25   : > { %p13669_p4 = pnand %p13668_p2, %p13662_p10 }
  0x27   : > { %13672 = shalt.err (!%p13669_p4)
}
  0x28   : > { %s13673_s8 = scalar_lea.vmem %s14018_s14, 147456  ;;  %s13916_s9 = smov [#allocation5]  }
  0x29   : > { %p13674_p5 = scmp.ne.s32.totalorder %s14018_s14, %s13673_s8  ;;  %s13678_s10 = sshll.u32 %s13916_s9, 4  ;;  %s13679_s10 = int_to_ptr.vmem [resolvable:$false] %s13678_s10 }
  0x2a   : > { %s13680_s13 = scalar_lea.vmem %s13679_s10, 294912  ;;  %p13681_p3 = scmp.lt.s32.totalorder %s14018_s14, %s13679_s10 }
  0x2b   : > { %p13676_p7 = pnand %p13674_p5, %p14031_p8  ;;  %p13682_p0 = scmp.lt.s32.totalorder %s13680_s13, %s13673_s8 }
  0x2d   : > { %p13677_p9 = pneg %p13676_p7  ;;  %p13683_p11 = por %p13682_p0, %p13681_p3 }
  0x2f   : > { %p13684_p12 = pnand %p13683_p11, %p13677_p9 }
  0x31   : > { %13687 = shalt.err (!%p13684_p12)
}
  0x32   : > { %s13917_s17 = smov 512   ;;  %s13918_s19 = smov 256  }
  0x33   : > { %s13919_s20 = smov 16   ;;  %s14056_s26 = sshll.u32 %s13914_s24, 6 }
  0x34   : > { %11752 = dma.hbm_to_vmem [thread:$0]  (!%p14014_p6), %s14012_s11, 147456, %s14018_s14, %s14025_s16, %s13917_s17, %s13918_s19, %s13919_s20  }
  0x35   : > { %s15680_s3 = sld [smem:[#allocation25_spill]]  ;;  %s281_s9 = scalar_lea.vmem [#allocation8], %s14021_s15 }
  0x36   : > { %s289_s10 = sshll.u32 %s281_s9, 4  ;;  %s14067_s13 = scalar_lea.sflag [#allocation9], %s237_s29  ;;  %s290_s10 = int_to_ptr.vmem [resolvable:$true] %s289_s10 }
  0x3b   : > { %s14062_s8 = scalar_lea.hbm %s15680_s3, %s14056_s26  ;;  %s13693_s17 = scalar_lea.hbm %s15680_s3, 128 }
  0x3c   : > { %s13688_s1 = scalar_lea.hbm %s14062_s8, 64  ;;  %p13694_p13 = scmp.lt.u32.totalorder %s14062_s8, %s15680_s3 }
  0x3d   : > { %p13689_p0 = scmp.ne.s32.totalorder %s14062_s8, %s13688_s1  ;;  %p13695_p1 = scmp.lt.u32.totalorder %s13693_s17, %s13688_s1 }
  0x3e   : > { %p13697_p4 = scmp.lt.u32.totalorder %s13688_s1, %s14062_s8 }
  0x3f   : > { %p13691_p3 = pnand %p13689_p0, %p14031_p8  ;;  %p13696_p2 = por %p13695_p1, %p13694_p13 }
  0x41   : > { %p13692_p10 = pneg %p13691_p3  ;;  %p13698_p5 = por %p13697_p4, %p13696_p2 }
  0x43   : > { %p13699_p7 = pnand %p13698_p5, %p13692_p10 }
  0x45   : > { %13702 = shalt.err (!%p13699_p7)
}
  0x46   : > { %s13703_s29 = scalar_lea.vmem %s290_s10, 64  ;;  %s13920_s27 = smov [#allocation8]  }
  0x47   : > { %p13704_p9 = scmp.ne.s32.totalorder %s290_s10, %s13703_s29  ;;  %s13708_s7 = sshll.u32 %s13920_s27, 4  ;;  %s13709_s7 = int_to_ptr.vmem [resolvable:$false] %s13708_s7 }
  0x48   : > { %s13710_s9 = scalar_lea.vmem %s13709_s7, 128  ;;  %p13711_p0 = scmp.lt.s32.totalorder %s290_s10, %s13709_s7 }
  0x49   : > { %p13706_p11 = pnand %p13704_p9, %p14031_p8  ;;  %p13712_p3 = scmp.lt.s32.totalorder %s13710_s9, %s13703_s29 }
  0x4b   : > { %p13707_p12 = pneg %p13706_p11  ;;  %p13713_p6 = por %p13712_p3, %p13711_p0 }
  0x4d   : > { %p13714_p1 = pnand %p13713_p6, %p13707_p12 }
  0x4f   : > { %13717 = shalt.err (!%p13714_p1)
}
  0x50   : > { %p15681_p13 = scmp.ne.s32.totalorder %s15678_s12, 0  ;;  %s14088_s1 = sadd.s32 4294967295, %s13914_s24  }
  0x51   : > { %s10195_s11 = sadd.s32 4294967294, %s13914_s24   ;;  %p70_p6 = scmp.ne.s32.totalorder %s13906_s22, %s13902_s21 }
  0x52   : > { %11758 = dma.hbm_to_vmem [thread:$0]  (!%p15681_p13), %s14062_s8, 64, %s290_s10, %s14067_s13  }
  0x53   : > { %p15662_p10 = scmp.eq.s32.totalorder %s14088_s1, 0  ;;  %p198_p2 = scmp.eq.s32.totalorder %s14088_s1, 1 }
  0x54   : > { %p204_p4 = scmp.eq.s32.totalorder %s10195_s11, 1  ;;  %p10196_p7 = scmp.ge.s32.totalorder %s13914_s24, 1 }
  0x55   : > { %p14097_p5 = por %p15662_p10, %p70_p6  ;;  %p15683_p9 = scmp.ne.s32.totalorder %s13910_s23, %s13906_s22 }
  0x56   : > { %p14109_p12 = por %p204_p4, %p70_p6  ;;  %p211_p0 = scmp.lt.s32.totalorder %s13914_s24, 3 }
  0x57   : > { %s15682_s14 = scalar_select %p14097_p5, 1, 0 }
  0x58   : > { %p14105_p11 = por %p198_p2, %p15683_p9  ;;  %p14114_p3 = pnand %p10196_p7, %p211_p0 }
  0x59   : > { %s15685_s10 = scalar_select %p14109_p12, 1, 0 }
  0x5a   : > { %s15684_s8 = scalar_select %p14105_p11, 1, 0 }
  0x5b   : > { %15686 = sst [smem:[#allocation23_spill]] %s15685_s10  ;;  %s13921_s19 = smov [#allocation2]  }
  0x5c   : > { %s15687_s17 = scalar_select %p14114_p3, 1, 0 }
  0x5d   : > { %s223_s20 = sshll.u32 %s13921_s19, 4  ;;  %p11745_p1 = pneg %p14114_p3  ;;  %s14118_s20 = int_to_ptr.vmem [resolvable:$true] %s223_s20 }
  0x5e   : > { %s14126_s7 = scalar_lea.hbm %s15651_s2, %s14056_s26  ;;  %s262_s9 = scalar_lea.vmem [#allocation7], %s14021_s15 }
  0x5f   : > { %s270_s11 = sshll.u32 %s262_s9, 4  ;;  %p14131_p6 = pnand %p11745_p1, %p15662_p10  ;;  %s271_s11 = int_to_ptr.vmem [resolvable:$true] %s270_s11 }
  0x60   : > { %s13718_s19 = scalar_lea.hbm %s14126_s7, 64  ;;  %s13723_s28 = scalar_lea.hbm %s15651_s2, 128 }
  0x61   : > { %s15688_s3 = scalar_select %p14131_p6, 1, 0 }
  0x62   : > { %p13719_p2 = scmp.ne.s32.totalorder %s14126_s7, %s13718_s19  ;;  %p13724_p9 = scmp.lt.u32.totalorder %s14126_s7, %s15651_s2 }
  0x63   : > { %p13725_p0 = scmp.lt.u32.totalorder %s13723_s28, %s13718_s19  ;;  %p13727_p1 = scmp.lt.u32.totalorder %s13718_s19, %s14126_s7 }
  0x64   : > { %p13721_p4 = pnand %p13719_p2, %p14031_p8 }
  0x65   : > { %p13726_p12 = por %p13725_p0, %p13724_p9 }
  0x66   : > { %p13722_p7 = pneg %p13721_p4 }
  0x67   : > { %p13728_p10 = por %p13727_p1, %p13726_p12 }
  0x69   : > { %p13729_p11 = pnand %p13728_p10, %p13722_p7 }
  0x6b   : > { %13732 = shalt.err (!%p13729_p11)
}
  0x6c   : > { %s13733_s9 = scalar_lea.vmem %s271_s11, 64  ;;  %s13922_s24 = smov [#allocation7]  }
  0x6d   : > { %p13734_p5 = scmp.ne.s32.totalorder %s271_s11, %s13733_s9  ;;  %s13738_s10 = sshll.u32 %s13922_s24, 4  ;;  %s13739_s10 = int_to_ptr.vmem [resolvable:$false] %s13738_s10 }
  0x6e   : > { %s13740_s29 = scalar_lea.vmem %s13739_s10, 128  ;;  %p13741_p3 = scmp.lt.s32.totalorder %s271_s11, %s13739_s10 }
  0x6f   : > { %p13736_p2 = pnand %p13734_p5, %p14031_p8  ;;  %p13742_p6 = scmp.lt.s32.totalorder %s13740_s29, %s13733_s9 }
  0x71   : > { %p13737_p4 = pneg %p13736_p2  ;;  %p13743_p13 = por %p13742_p6, %p13741_p3 }
  0x73   : > { %p13744_p0 = pnand %p13743_p13, %p13737_p4 }
  0x75   : > { %13747 = shalt.err (!%p13744_p0)
}
  0x76   : > { %p15689_p9 = scmp.ne.s32.totalorder %s15678_s12, 0  ;;  %s13748_s28 = scalar_lea.hbm %s15649_s0, 9216 }
  0x77   : > { %p13749_p10 = scmp.ne.s32.totalorder %s15649_s0, %s13748_s28  ;;  %p15690_p5 = scmp.ne.s32.totalorder %s15688_s3, 0 }
  0x78   : > { %11755 = dma.hbm_to_vmem [thread:$0]  (!%p15689_p9), %s14126_s7, 64, %s271_s11, %s14025_s16  }
  0x79   : > { %p13750_p11 = pneg %p15690_p5  ;;  %p13755_p13 = scmp.lt.u32.totalorder %s13748_s28, %s15649_s0 }
  0x7b   : > { %p13751_p12 = pnand %p13750_p11, %p13749_p10 }
  0x7d   : > { %p13752_p3 = pneg %p13751_p12 }
  0x7f   : > { %p13757_p6 = pnand %p13755_p13, %p13752_p3 }
  0x81   : > { %13760 = shalt.err (!%p13757_p6)
}
  0x82   : > { %s13761_s16 = scalar_lea.vmem %s14118_s20, 9216  ;;  %p13769_p4 = scmp.lt.s32.totalorder %s14118_s20, %s14118_s20 }
  0x83   : > { %p13762_p7 = scmp.ne.s32.totalorder %s14118_s20, %s13761_s16  ;;  %p13770_p0 = scmp.lt.s32.totalorder %s13761_s16, %s13761_s16 }
  0x85   : > { %p13764_p1 = pnand %p13762_p7, %p13750_p11  ;;  %p13771_p9 = por %p13770_p0, %p13769_p4 }
  0x87   : > { %p13765_p2 = pneg %p13764_p1 }
  0x89   : > { %p13772_p8 = pnand %p13771_p9, %p13765_p2 }
  0x8b   : > { %13775 = shalt.err (!%p13772_p8)
}
  0x8c   : > { %s13923_s7 = smov 2304   ;;  %s13924_s11 = smov 144  }
  0x8d   : > { %11748 = dma.hbm_to_vmem [thread:$0]  (!%p15690_p5), %s15649_s0, 9216, %s14118_s20, [#allocation3], %s13923_s7, %s13923_s7, %s13924_s11  }
  0x8e   : > { %s14178_s28 = scalar_lea.hbm %s15653_s4, %s14056_s26  ;;  %s300_s19 = scalar_lea.vmem [#allocation10], %s14021_s15 }
  0x8f   : > { %s308_s27 = sshll.u32 %s300_s19, 4  ;;  %s13776_s24 = scalar_lea.hbm %s14178_s28, 64  ;;  %s309_s27 = int_to_ptr.vmem [resolvable:$true] %s308_s27 }
  0x90   : > { %p13777_p8 = scmp.ne.s32.totalorder %s14178_s28, %s13776_s24  ;;  %p15691_p9 = scmp.ne.s32.totalorder %s15679_s18, 0 }
  0x91   : > { %s13781_s20 = scalar_lea.hbm %s15653_s4, 128  ;;  %p13782_p5 = scmp.lt.u32.totalorder %s14178_s28, %s15653_s4 }
  0x92   : > { %p13779_p10 = pnand %p13777_p8, %p15691_p9  ;;  %p13783_p12 = scmp.lt.u32.totalorder %s13781_s20, %s13776_s24 }
  0x93   : > { %p13785_p13 = scmp.lt.u32.totalorder %s13776_s24, %s14178_s28 }
  0x94   : > { %p13780_p11 = pneg %p13779_p10  ;;  %p13784_p3 = por %p13783_p12, %p13782_p5 }
  0x96   : > { %p13786_p6 = por %p13785_p13, %p13784_p3 }
  0x98   : > { %p13787_p7 = pnand %p13786_p6, %p13780_p11 }
  0x9a   : > { %13790 = shalt.err (!%p13787_p7)
}
  0x9b   : > { %s13791_s11 = scalar_lea.vmem %s309_s27, 64  ;;  %s13925_s9 = smov [#allocation10]  }
  0x9c   : > { %p13792_p1 = scmp.ne.s32.totalorder %s309_s27, %s13791_s11  ;;  %s13796_s29 = sshll.u32 %s13925_s9, 4  ;;  %s13797_s29 = int_to_ptr.vmem [resolvable:$false] %s13796_s29 }
  0x9d   : > { %s13798_s23 = scalar_lea.vmem %s13797_s29, 128  ;;  %p13799_p0 = scmp.lt.s32.totalorder %s309_s27, %s13797_s29 }
  0x9e   : > { %p13794_p2 = pnand %p13792_p1, %p15691_p9  ;;  %p13800_p8 = scmp.lt.s32.totalorder %s13798_s23, %s13791_s11 }
  0xa0   : > { %p13795_p4 = pneg %p13794_p2  ;;  %p13801_p10 = por %p13800_p8, %p13799_p0 }
  0xa2   : > { %p13802_p5 = pnand %p13801_p10, %p13795_p4 }
  0xa4   : > { %13805 = shalt.err (!%p13802_p5)
}
  0xa5   : > { %p15692_p12 = scmp.ne.s32.totalorder %s15678_s12, 0  ;;  %s14203_s24 = scalar_lea.hbm %s15654_s5, %s14056_s26 }
  0xa6   : > { %s319_s3 = scalar_lea.vmem [#allocation11], %s14021_s15  ;;  %s316_s20 = scalar_lea.sflag [#allocation12], %s14005_s30 }
  0xa7   : > { %11761 = dma.hbm_to_vmem [thread:$0]  (!%p15692_p12), %s14178_s28, 64, %s309_s27, %s14067_s13  }
  0xa8   : > { %s327_s10 = sshll.u32 %s319_s3, 4  ;;  %s13806_s16 = scalar_lea.hbm %s14203_s24, 64  ;;  %s328_s10 = int_to_ptr.vmem [resolvable:$true] %s327_s10 }
  0xa9   : > { %p13807_p11 = scmp.ne.s32.totalorder %s14203_s24, %s13806_s16  ;;  %s13811_s28 = scalar_lea.hbm %s15654_s5, 128 }
  0xaa   : > { %p13812_p6 = scmp.lt.u32.totalorder %s14203_s24, %s15654_s5  ;;  %p13813_p7 = scmp.lt.u32.totalorder %s13811_s28, %s13806_s16 }
  0xab   : > { %p13809_p3 = pnand %p13807_p11, %p15691_p9  ;;  %p13815_p2 = scmp.lt.u32.totalorder %s13806_s16, %s14203_s24 }
  0xac   : > { %p13814_p1 = por %p13813_p7, %p13812_p6 }
  0xad   : > { %p13810_p13 = pneg %p13809_p3 }
  0xae   : > { %p13816_p4 = por %p13815_p2, %p13814_p1 }
  0xb0   : > { %p13817_p0 = pnand %p13816_p4, %p13810_p13 }
  0xb2   : > { %13820 = shalt.err (!%p13817_p0)
}
  0xb3   : > { %s13821_s30 = scalar_lea.vmem %s328_s10, 64  ;;  %s13926_s15 = smov [#allocation11]  }
  0xb4   : > { %p13822_p8 = scmp.ne.s32.totalorder %s328_s10, %s13821_s30  ;;  %s13826_s11 = sshll.u32 %s13926_s15, 4  ;;  %s13827_s11 = int_to_ptr.vmem [resolvable:$false] %s13826_s11 }
  0xb5   : > { %s13828_s9 = scalar_lea.vmem %s13827_s11, 128  ;;  %p13829_p11 = scmp.lt.s32.totalorder %s328_s10, %s13827_s11 }
  0xb6   : > { %p13824_p10 = pnand %p13822_p8, %p15691_p9  ;;  %p13830_p3 = scmp.lt.s32.totalorder %s13828_s9, %s13821_s30 }
  0xb8   : > { %p13825_p5 = pneg %p13824_p10  ;;  %p13831_p12 = por %p13830_p3, %p13829_p11 }
  0xba   : > { %p13832_p6 = pnand %p13831_p12, %p13825_p5 }
  0xbc   : > { %13835 = shalt.err (!%p13832_p6)
}
  0xbd   : > { %p15693_p7 = scmp.ne.s32.totalorder %s15678_s12, 0  ;;  %p15694_p13 = scmp.ne.s32.totalorder %s15687_s17, 0 }
  0xbe   : > { %p15695_p1 = scmp.eq.s32.totalorder (!%p15694_p13), %s14088_s1, 0 }
  0xbf   : > { %11764 = dma.hbm_to_vmem [thread:$0]  (!%p15693_p7), %s14203_s24, 64, %s328_s10, %s316_s20  }
  0xc0   : > { %336 = sbr.rel (%p15694_p13) target bundleno = 1679 (0x68f), region = 44 }
  0xc7   : > { %13881 = dma.done.wait (%p15695_p1), [#allocation3], 9216   ;;  %p15696_p9 = pmov %p15695_p1 }
  0xc8   : > { %s342_s18 = sand.u32 1, %s14088_s1   ;;  %s14232_s29 = sand.u32 1, %s13906_s22  }
  0xc9   : > { %13883 = vsyncadd (%p15696_p9), [#allocation3], 4294958080  ;;  %s11728_s23 = smul.u32 9216, %s14232_s29  ;;  %s343_s12 = scalar_lea.sflag [#allocation6], %s342_s18 }
  0xca   : > { %p15697_p12 = scmp.ne.s32.totalorder %s15682_s14, 0 }
  0xcb   : > { %s14235_s25 = scalar_lea.vmem [#allocation5], %s11728_s23 }
  0xcc   : > { %13885 = dma.done.wait (%p15697_p12), %s343_s12, 147520  }
  0xcd   : > { %13887 = vsyncadd (%p15697_p12), %s343_s12, 4294819776  ;;  %s14242_s17 = sshll.u32 %s14232_s29, 2  ;;  %s361_s24 = scalar_lea.sflag [#allocation9], %s342_s18 }
  0xce   : > { %s355_s19 = scalar_lea.vmem [#allocation7], %s14242_s17  ;;  %s364_s3 = scalar_lea.vmem [#allocation8], %s14242_s17 }
  0xcf   : > { %13889 = dma.done.wait (%p15697_p12), %s361_s24, 128  }
  0xd0   : > { %13891 = vsyncadd (%p15697_p12), %s361_s24, 4294967168  ;;  %s373_s10 = scalar_lea.vmem [#allocation10], %s14242_s17  ;;  %s379_s20 = scalar_lea.sflag [#allocation12], %s14232_s29 }
  0xd1   : > { %s382_s16 = scalar_lea.vmem [#allocation11], %s14242_s17 }
  0xd2   : > { %13893 = dma.done.wait (%p15697_p12), %s379_s20, 64  }
  0xd3   : > { %13895 = vsyncadd (%p15697_p12), %s379_s20, 4294967232  ;;  %v11814_v0 = vld [vmem:[%s14235_s25 + $0x4] ss:$16 sps:$4 sm:$0xff]   ;;  %v11816_v1 = vld [vmem:[%s14235_s25 + $0xc] ss:$16 sps:$4 sm:$0xff]   ;;  %s10219_s14 = sshll.u32 %s14232_s29, 7 }
  0xd4   : > { %7781 = vmatprep.subr.bf16.mxu0 %v11814_v0  ;;  %v11818_v2 = vld [vmem:[%s14235_s25] ss:$16 sps:$4 sm:$0xff]   ;;  %v11819_v3 = vld [vmem:[%s14235_s25 + $0x8] ss:$16 sps:$4 sm:$0xff]   ;;  %8735 = vmatprep.subr.bf16.mxu1 %v11816_v1  ;;  %v11820_v4 = vld [vmem:[%s14235_s25 + $0x24] ss:$16 sps:$4 sm:$0xff]  }
  0xd5   : > { %7782 = vmatpush1.bf16.msra.mxu0 %v11818_v2  ;;  %8736 = vmatpush1.bf16.msra.mxu1 %v11819_v3  ;;  %v11822_v5 = vld [vmem:[%s14235_s25 + $0x2c] ss:$16 sps:$4 sm:$0xff]   ;;  %v11824_v6 = vld [vmem:[%s14235_s25 + $0x20] ss:$16 sps:$4 sm:$0xff]   ;;  %v11825_v7 = vld [vmem:[%s14235_s25 + $0x28] ss:$16 sps:$4 sm:$0xff]  }
  0xd6   : > { %7783 = vmatprep.subr.bf16.mxu0 %v11820_v4  ;;  %8737 = vmatprep.subr.bf16.mxu1 %v11822_v5  ;;  %v11826_v8 = vld [vmem:[%s14235_s25 + $0x44] ss:$16 sps:$4 sm:$0xff]   ;;  %v11828_v9 = vld [vmem:[%s14235_s25 + $0x4c] ss:$16 sps:$4 sm:$0xff]   ;;  %v11830_v10 = vld [vmem:[%s14235_s25 + $0x40] ss:$16 sps:$4 sm:$0xff]  }
  0xd7   : > { %v11831_v11 = vld [vmem:[%s14235_s25 + $0x48] ss:$16 sps:$4 sm:$0xff]   ;;  %v11832_v12 = vld [vmem:[%s14235_s25 + $0x64] ss:$16 sps:$4 sm:$0xff]   ;;  %v11834_v13 = vld [vmem:[%s14235_s25 + $0x6c] ss:$16 sps:$4 sm:$0xff]  }
  0xd8   : > { %v11836_v14 = vld [vmem:[%s14235_s25 + $0x60] ss:$16 sps:$4 sm:$0xff]   ;;  %v11837_v15 = vld [vmem:[%s14235_s25 + $0x68] ss:$16 sps:$4 sm:$0xff]   ;;  %v11838_v16 = vld [vmem:[%s14235_s25 + $0x84] ss:$16 sps:$4 sm:$0xff]  }
  0xd9   : > { %7784 = vmatpush1.bf16.msra.mxu0 %v11824_v6  ;;  %8738 = vmatpush1.bf16.msra.mxu1 %v11825_v7  ;;  %v11840_v17 = vld [vmem:[%s14235_s25 + $0x8c] ss:$16 sps:$4 sm:$0xff]   ;;  %v11842_v18 = vld [vmem:[%s14235_s25 + $0x80] ss:$16 sps:$4 sm:$0xff]   ;;  %v11843_v19 = vld [vmem:[%s14235_s25 + $0x88] ss:$16 sps:$4 sm:$0xff]  }
  0xda   : > { %7785 = vmatprep.subr.bf16.mxu0 %v11826_v8  ;;  %8739 = vmatprep.subr.bf16.mxu1 %v11828_v9  ;;  %v11844_v20 = vld [vmem:[%s14235_s25 + $0xa4] ss:$16 sps:$4 sm:$0xff]   ;;  %v11846_v21 = vld [vmem:[%s14235_s25 + $0xac] ss:$16 sps:$4 sm:$0xff]   ;;  %v11848_v22 = vld [vmem:[%s14235_s25 + $0xa0] ss:$16 sps:$4 sm:$0xff]  }
  0xdb   : > { %v11849_v23 = vld [vmem:[%s14235_s25 + $0xa8] ss:$16 sps:$4 sm:$0xff]   ;;  %v11850_v24 = vld [vmem:[%s14235_s25 + $0xc4] ss:$16 sps:$4 sm:$0xff]   ;;  %v11852_v25 = vld [vmem:[%s14235_s25 + $0xcc] ss:$16 sps:$4 sm:$0xff]  }
  0xdc   : > { %v11854_v26 = vld [vmem:[%s14235_s25 + $0xc0] ss:$16 sps:$4 sm:$0xff]   ;;  %v11855_v27 = vld [vmem:[%s14235_s25 + $0xc8] ss:$16 sps:$4 sm:$0xff]   ;;  %v11856_v28 = vld [vmem:[%s14235_s25 + $0xe4] ss:$16 sps:$4 sm:$0xff]  }
  0xdd   : > { %7786 = vmatpush1.bf16.msra.mxu0 %v11830_v10  ;;  %8740 = vmatpush1.bf16.msra.mxu1 %v11831_v11  ;;  %v11858_v29 = vld [vmem:[%s14235_s25 + $0xec] ss:$16 sps:$4 sm:$0xff]   ;;  %v11860_v30 = vld [vmem:[%s14235_s25 + $0xe0] ss:$16 sps:$4 sm:$0xff]   ;;  %v11861_v31 = vld [vmem:[%s14235_s25 + $0xe8] ss:$16 sps:$4 sm:$0xff]  }
  0xde   : > { %7787 = vmatprep.subr.bf16.mxu0 %v11832_v12  ;;  %8741 = vmatprep.subr.bf16.mxu1 %v11834_v13  ;;  %v11862_v32 = vld [vmem:[%s14235_s25 + $0x104] ss:$16 sps:$4 sm:$0xff]   ;;  %v11864_v33 = vld [vmem:[%s14235_s25 + $0x10c] ss:$16 sps:$4 sm:$0xff]   ;;  %v11866_v34 = vld [vmem:[%s14235_s25 + $0x100] ss:$16 sps:$4 sm:$0xff]  }
  0xdf   : > { %v11867_v35 = vld [vmem:[%s14235_s25 + $0x108] ss:$16 sps:$4 sm:$0xff]   ;;  %v11868_v36 = vld [vmem:[%s14235_s25 + $0x124] ss:$16 sps:$4 sm:$0xff]   ;;  %v11870_v37 = vld [vmem:[%s14235_s25 + $0x12c] ss:$16 sps:$4 sm:$0xff]  }
  0xe0   : > { %v11872_v38 = vld [vmem:[%s14235_s25 + $0x120] ss:$16 sps:$4 sm:$0xff]   ;;  %v11873_v39 = vld [vmem:[%s14235_s25 + $0x128] ss:$16 sps:$4 sm:$0xff]   ;;  %v11874_v40 = vld [vmem:[%s14235_s25 + $0x144] ss:$16 sps:$4 sm:$0xff]  }
  0xe1   : > { %7788 = vmatpush1.bf16.msra.mxu0 %v11836_v14  ;;  %8742 = vmatpush1.bf16.msra.mxu1 %v11837_v15  ;;  %v11876_v41 = vld [vmem:[%s14235_s25 + $0x14c] ss:$16 sps:$4 sm:$0xff]   ;;  %v11878_v42 = vld [vmem:[%s14235_s25 + $0x140] ss:$16 sps:$4 sm:$0xff]   ;;  %v11879_v43 = vld [vmem:[%s14235_s25 + $0x148] ss:$16 sps:$4 sm:$0xff]  }
  0xe2   : > { %7789 = vmatprep.subr.bf16.mxu0 %v11838_v16  ;;  %8743 = vmatprep.subr.bf16.mxu1 %v11840_v17  ;;  %v11880_v44 = vld [vmem:[%s14235_s25 + $0x164] ss:$16 sps:$4 sm:$0xff]   ;;  %v11882_v45 = vld [vmem:[%s14235_s25 + $0x16c] ss:$16 sps:$4 sm:$0xff]   ;;  %v11884_v46 = vld [vmem:[%s14235_s25 + $0x160] ss:$16 sps:$4 sm:$0xff]  }
  0xe3   : > { %v11885_v47 = vld [vmem:[%s14235_s25 + $0x168] ss:$16 sps:$4 sm:$0xff]   ;;  %v11912_v48 = vld [vmem:[#allocation2 + $0x4] ss:$144 sps:$4 sm:$0xff]   ;;  %v11888_v50 = vld [vmem:[%s14235_s25 + $0x18c] ss:$16 sps:$4 sm:$0xff]  }
  0xe4   : > { %v11886_v49 = vld [vmem:[%s14235_s25 + $0x184] ss:$16 sps:$4 sm:$0xff]   ;;  %7813 = vmatprep.mubr.bf16.mxu0 %v11912_v48  ;;  %8767 = vmatprep.mubr.bf16.mxu1 %v11912_v48  ;;  %v11890_v51 = vld [vmem:[%s14235_s25 + $0x180] ss:$16 sps:$4 sm:$0xff]   ;;  %v11891_v52 = vld [vmem:[%s14235_s25 + $0x188] ss:$16 sps:$4 sm:$0xff]  }
  0xe5   : > { %7790 = vmatpush1.bf16.msra.mxu0 %v11842_v18  ;;  %8744 = vmatpush1.bf16.msra.mxu1 %v11843_v19  ;;  %v11892_v53 = vld [vmem:[%s14235_s25 + $0x1a4] ss:$16 sps:$4 sm:$0xff]   ;;  %v11894_v54 = vld [vmem:[%s14235_s25 + $0x1ac] ss:$16 sps:$4 sm:$0xff]   ;;  %v11896_v55 = vld [vmem:[%s14235_s25 + $0x1a0] ss:$16 sps:$4 sm:$0xff]  }
  0xe6   : > { %7791 = vmatprep.subr.bf16.mxu0 %v11844_v20  ;;  %8745 = vmatprep.subr.bf16.mxu1 %v11846_v21  ;;  %v11897_v56 = vld [vmem:[%s14235_s25 + $0x1a8] ss:$16 sps:$4 sm:$0xff]   ;;  %v11898_v57 = vld [vmem:[%s14235_s25 + $0x1c4] ss:$16 sps:$4 sm:$0xff]   ;;  %v11900_v58 = vld [vmem:[%s14235_s25 + $0x1cc] ss:$16 sps:$4 sm:$0xff]  }
  0xe7   : > { %v11902_v59 = vld [vmem:[%s14235_s25 + $0x1c0] ss:$16 sps:$4 sm:$0xff]   ;;  %v11903_v60 = vld [vmem:[%s14235_s25 + $0x1c8] ss:$16 sps:$4 sm:$0xff]   ;;  %v11904_v61 = vld [vmem:[%s14235_s25 + $0x1e4] ss:$16 sps:$4 sm:$0xff]  }
  0xe8   : > { %v11906_v62 = vld [vmem:[%s14235_s25 + $0x1ec] ss:$16 sps:$4 sm:$0xff]   ;;  %v11908_v63 = vld [vmem:[%s14235_s25 + $0x1e0] ss:$16 sps:$4 sm:$0xff]   ;;  %v11909_v0 = vld [vmem:[%s14235_s25 + $0x1e8] ss:$16 sps:$4 sm:$0xff]  }
  0xe9   : > { %7792 = vmatpush1.bf16.msra.mxu0 %v11848_v22  ;;  %8746 = vmatpush1.bf16.msra.mxu1 %v11849_v23  ;;  %v11915_v1 = vld [vmem:[%s14235_s25 + $0x204] ss:$16 sps:$4 sm:$0xff]   ;;  %v11918_v2 = vld [vmem:[%s14235_s25 + $0x20c] ss:$16 sps:$4 sm:$0xff]   ;;  %v11910_v3 = vld [vmem:[#allocation2] ss:$144 sps:$4 sm:$0xff]  }
  0xea   : > { %7793 = vmatprep.subr.bf16.mxu0 %v11850_v24  ;;  %8747 = vmatprep.subr.bf16.mxu1 %v11852_v25  ;;  %v11913_v4 = vld [vmem:[%s14235_s25 + $0x200] ss:$16 sps:$4 sm:$0xff]   ;;  %v11916_v5 = vld [vmem:[%s14235_s25 + $0x208] ss:$16 sps:$4 sm:$0xff]   ;;  %v11921_v6 = vld [vmem:[%s14235_s25 + $0x224] ss:$16 sps:$4 sm:$0xff]  }
  0xeb   : > { %v11924_v7 = vld [vmem:[%s14235_s25 + $0x22c] ss:$16 sps:$4 sm:$0xff]   ;;  %v11919_v8 = vld [vmem:[%s14235_s25 + $0x220] ss:$16 sps:$4 sm:$0xff]   ;;  %v11922_v9 = vld [vmem:[%s14235_s25 + $0x228] ss:$16 sps:$4 sm:$0xff]  }
  0xec   : > { %v11927_v10 = vld [vmem:[%s14235_s25 + $0x244] ss:$16 sps:$4 sm:$0xff]   ;;  %v11930_v11 = vld [vmem:[%s14235_s25 + $0x24c] ss:$16 sps:$4 sm:$0xff]   ;;  %v11925_v12 = vld [vmem:[%s14235_s25 + $0x240] ss:$16 sps:$4 sm:$0xff]  }
  0xed   : > { %7794 = vmatpush1.bf16.msra.mxu0 %v11854_v26  ;;  %8748 = vmatpush1.bf16.msra.mxu1 %v11855_v27  ;;  %v11928_v13 = vld [vmem:[%s14235_s25 + $0x248] ss:$16 sps:$4 sm:$0xff]   ;;  %v11933_v14 = vld [vmem:[%s14235_s25 + $0x264] ss:$16 sps:$4 sm:$0xff]   ;;  %v11936_v15 = vld [vmem:[%s14235_s25 + $0x26c] ss:$16 sps:$4 sm:$0xff]  }
  0xee   : > { %7795 = vmatprep.subr.bf16.mxu0 %v11856_v28  ;;  %8749 = vmatprep.subr.bf16.mxu1 %v11858_v29  ;;  %v11931_v16 = vld [vmem:[%s14235_s25 + $0x260] ss:$16 sps:$4 sm:$0xff]   ;;  %v11934_v17 = vld [vmem:[%s14235_s25 + $0x268] ss:$16 sps:$4 sm:$0xff]   ;;  %v11939_v18 = vld [vmem:[%s14235_s25 + $0x284] ss:$16 sps:$4 sm:$0xff]  }
  0xef   : > { %v11942_v19 = vld [vmem:[%s14235_s25 + $0x28c] ss:$16 sps:$4 sm:$0xff]   ;;  %v11937_v20 = vld [vmem:[%s14235_s25 + $0x280] ss:$16 sps:$4 sm:$0xff]   ;;  %v11940_v21 = vld [vmem:[%s14235_s25 + $0x288] ss:$16 sps:$4 sm:$0xff]  }
  0xf0   : > { %v11945_v22 = vld [vmem:[%s14235_s25 + $0x2a4] ss:$16 sps:$4 sm:$0xff]   ;;  %v11948_v23 = vld [vmem:[%s14235_s25 + $0x2ac] ss:$16 sps:$4 sm:$0xff]   ;;  %v11943_v25 = vld [vmem:[%s14235_s25 + $0x2a0] ss:$16 sps:$4 sm:$0xff]  }
  0xf1   : > { %7796 = vmatpush1.bf16.msra.mxu0 %v11860_v30  ;;  %8750 = vmatpush1.bf16.msra.mxu1 %v11861_v31  ;;  %v11997_v24 = vld [vmem:[#allocation2 + $0x124] ss:$144 sps:$4 sm:$0xff]   ;;  %v11946_v26 = vld [vmem:[%s14235_s25 + $0x2a8] ss:$16 sps:$4 sm:$0xff]   ;;  %v11954_v28 = vld [vmem:[%s14235_s25 + $0x2cc] ss:$16 sps:$4 sm:$0xff]  }
  0xf2   : > { %7797 = vmatprep.subr.bf16.mxu0 %v11862_v32  ;;  %8751 = vmatprep.subr.bf16.mxu1 %v11864_v33  ;;  %v11951_v27 = vld [vmem:[%s14235_s25 + $0x2c4] ss:$16 sps:$4 sm:$0xff]   ;;  %v12005_v29 = vld [vmem:[#allocation2 + $0x120] ss:$144 sps:$4 sm:$0xff]   ;;  %v11952_v31 = vld [vmem:[%s14235_s25 + $0x2c8] ss:$16 sps:$4 sm:$0xff]  }
  0xf3   : > { %v11949_v30 = vld [vmem:[%s14235_s25 + $0x2c0] ss:$16 sps:$4 sm:$0xff]   ;;  %v11957_v32 = vld [vmem:[%s14235_s25 + $0x2e4] ss:$16 sps:$4 sm:$0xff]   ;;  %v11960_v33 = vld [vmem:[%s14235_s25 + $0x2ec] ss:$16 sps:$4 sm:$0xff]  }
  0xf4   : > { %v11976_v48 = vld [vmem:[%s14235_s25 + $0x348] ss:$16 sps:$4 sm:$0xff]   ;;  %s15560_s7 = scalar_lea.vmem [#allocation13], %s10219_s14  ;;  %s11454_s13 = sshll.u32 %s14088_s1, 9 }
  0xf5   : > { %7798 = vmatpush1.bf16.msra.mxu0 %v11866_v34  ;;  %8752 = vmatpush1.bf16.msra.mxu1 %v11867_v35  ;;  %v12014_v34 = vld [vmem:[#allocation2 + $0xc] ss:$144 sps:$4 sm:$0xff]   ;;  %v11955_v35 = vld [vmem:[%s14235_s25 + $0x2e0] ss:$16 sps:$4 sm:$0xff]   ;;  %s10024_s28 = sshll.u32 %s15560_s7, 4  ;;  %s15595_s26 = scalar_lea.hbm %s15655_s6, %s11454_s13  ;;  %s15597_s28 = int_to_ptr.vmem [resolvable:$true] %s10024_s28 }
  0xf6   : > { %7799 = vmatprep.subr.bf16.mxu0 %v11868_v36  ;;  %8753 = vmatprep.subr.bf16.mxu1 %v11870_v37  ;;  %v11958_v36 = vld [vmem:[%s14235_s25 + $0x2e8] ss:$16 sps:$4 sm:$0xff]   ;;  %v11963_v37 = vld [vmem:[%s14235_s25 + $0x304] ss:$16 sps:$4 sm:$0xff]   ;;  %s10011_s30 = scalar_lea.sflag [#allocation4], %s14232_s29  ;;  %s13836_s15 = scalar_lea.vmem %s15597_s28, 2048 }
  0xf7   : > { %p13837_p2 = scmp.ne.s32.totalorder %s15597_s28, %s13836_s15  ;;  %p15698_p4 = scmp.ne.s32.totalorder %s15684_s8, 0 }
  0xf8   : > { %s13927_s11 = smov [#allocation13]  }
  0xf9   : > { %7800 = vmatpush1.bf16.msra.mxu0 %v11872_v38  ;;  %8754 = vmatpush1.bf16.msra.mxu1 %v11873_v39  ;;  %v11966_v38 = vld [vmem:[%s14235_s25 + $0x30c] ss:$16 sps:$4 sm:$0xff]   ;;  %v11961_v39 = vld [vmem:[%s14235_s25 + $0x300] ss:$16 sps:$4 sm:$0xff]   ;;  %p13838_p0 = pnand %p13837_p2, %p15698_p4  ;;  %s13840_s9 = sshll.u32 %s13927_s11, 4  ;;  %s13841_s9 = int_to_ptr.vmem [resolvable:$false] %s13840_s9 }
  0xfa   : > { %7801 = vmatprep.subr.bf16.mxu0 %v11874_v40  ;;  %8755 = vmatprep.subr.bf16.mxu1 %v11876_v41  ;;  %v11964_v40 = vld [vmem:[%s14235_s25 + $0x308] ss:$16 sps:$4 sm:$0xff]   ;;  %v11969_v41 = vld [vmem:[%s14235_s25 + $0x324] ss:$16 sps:$4 sm:$0xff]   ;;  %s13842_s18 = scalar_lea.vmem %s13841_s9, 4096  ;;  %p13843_p10 = scmp.lt.s32.totalorder %s15597_s28, %s13841_s9 }
  0xfb   : > { %p13839_p8 = pneg %p13838_p0  ;;  %p13844_p5 = scmp.lt.s32.totalorder %s13842_s18, %s13836_s15 }
  0xfd   : > { %7802 = vmatpush1.bf16.msra.mxu0 %v11878_v42  ;;  %8756 = vmatpush1.bf16.msra.mxu1 %v11879_v43  ;;  %v11972_v42 = vld [vmem:[%s14235_s25 + $0x32c] ss:$16 sps:$4 sm:$0xff]   ;;  %v11967_v43 = vld [vmem:[%s14235_s25 + $0x320] ss:$16 sps:$4 sm:$0xff]   ;;  %p13845_p11 = por %p13844_p5, %p13843_p10 }
  0xfe   : > { %7803 = vmatprep.subr.bf16.mxu0 %v11880_v44  ;;  %8757 = vmatprep.subr.bf16.mxu1 %v11882_v45  ;;  %v11970_v44 = vld [vmem:[%s14235_s25 + $0x328] ss:$16 sps:$4 sm:$0xff]   ;;  %v11975_v45 = vld [vmem:[%s14235_s25 + $0x344] ss:$16 sps:$4 sm:$0xff]  }
  0xff   : > { %p13846_p3 = pnand %p13845_p11, %p13839_p8 }
 0x101   : > { %7804 = vmatpush1.bf16.msra.mxu0 %v11884_v46  ;;  %8758 = vmatpush1.bf16.msra.mxu1 %v11885_v47  ;;  %v11978_v46 = vld [vmem:[%s14235_s25 + $0x34c] ss:$16 sps:$4 sm:$0xff]   ;;  %v11973_v47 = vld [vmem:[%s14235_s25 + $0x340] ss:$16 sps:$4 sm:$0xff]  }
 0x102   : > { %7805 = vmatprep.subr.bf16.mxu0 %v11886_v49  ;;  %8759 = vmatprep.subr.bf16.mxu1 %v11888_v50  ;;  %v11981_v49 = vld [vmem:[%s14235_s25 + $0x364] ss:$16 sps:$4 sm:$0xff]   ;;  %v11984_v50 = vld [vmem:[%s14235_s25 + $0x36c] ss:$16 sps:$4 sm:$0xff]  }
 0x105   : > { %7806 = vmatpush1.bf16.msra.mxu0 %v11890_v51  ;;  %8760 = vmatpush1.bf16.msra.mxu1 %v11891_v52  ;;  %v11979_v51 = vld [vmem:[%s14235_s25 + $0x360] ss:$16 sps:$4 sm:$0xff]   ;;  %v11982_v52 = vld [vmem:[%s14235_s25 + $0x368] ss:$16 sps:$4 sm:$0xff]  }
 0x106   : > { %7807 = vmatprep.subr.bf16.mxu0 %v11892_v53  ;;  %8761 = vmatprep.subr.bf16.mxu1 %v11894_v54  ;;  %v11987_v53 = vld [vmem:[%s14235_s25 + $0x384] ss:$16 sps:$4 sm:$0xff]   ;;  %v11990_v54 = vld [vmem:[%s14235_s25 + $0x38c] ss:$16 sps:$4 sm:$0xff]  }
 0x109   : > { %7808 = vmatpush1.bf16.msra.mxu0 %v11896_v55  ;;  %8762 = vmatpush1.bf16.msra.mxu1 %v11897_v56  ;;  %v11985_v55 = vld [vmem:[%s14235_s25 + $0x380] ss:$16 sps:$4 sm:$0xff]   ;;  %v11988_v56 = vld [vmem:[%s14235_s25 + $0x388] ss:$16 sps:$4 sm:$0xff]  }
 0x10a   : > { %7809 = vmatprep.subr.bf16.mxu0 %v11898_v57  ;;  %8763 = vmatprep.subr.bf16.mxu1 %v11900_v58  ;;  %v11993_v57 = vld [vmem:[%s14235_s25 + $0x3a4] ss:$16 sps:$4 sm:$0xff]   ;;  %v11996_v58 = vld [vmem:[%s14235_s25 + $0x3ac] ss:$16 sps:$4 sm:$0xff]  }
 0x10d   : > { %7810 = vmatpush1.bf16.msra.mxu0 %v11902_v59  ;;  %8764 = vmatpush1.bf16.msra.mxu1 %v11903_v60  ;;  %v11991_v59 = vld [vmem:[%s14235_s25 + $0x3a0] ss:$16 sps:$4 sm:$0xff]   ;;  %v11994_v60 = vld [vmem:[%s14235_s25 + $0x3a8] ss:$16 sps:$4 sm:$0xff]  }
 0x10e   : > { %7811 = vmatprep.subr.bf16.mxu0 %v11904_v61  ;;  %8765 = vmatprep.subr.bf16.mxu1 %v11906_v62  ;;  %v12001_v61 = vld [vmem:[%s14235_s25 + $0x3c4] ss:$16 sps:$4 sm:$0xff]   ;;  %v12004_v62 = vld [vmem:[%s14235_s25 + $0x3cc] ss:$16 sps:$4 sm:$0xff]  }
 0x111   : > { %7812 = vmatpush1.bf16.msra.mxu0 %v11908_v63  ;;  %8766 = vmatpush1.bf16.msra.mxu1 %v11909_v0  ;;  %v11999_v63 = vld [vmem:[%s14235_s25 + $0x3c0] ss:$16 sps:$4 sm:$0xff]   ;;  %v12002_v0 = vld [vmem:[%s14235_s25 + $0x3c8] ss:$16 sps:$4 sm:$0xff]  }
 0x112   : > { %7834 = vmatprep.subr.bf16.mxu0 %v11915_v1  ;;  %8788 = vmatprep.subr.bf16.mxu1 %v11918_v2  ;;  %v12008_v1 = vld [vmem:[%s14235_s25 + $0x3e4] ss:$16 sps:$4 sm:$0xff]   ;;  %v12011_v2 = vld [vmem:[%s14235_s25 + $0x3ec] ss:$16 sps:$4 sm:$0xff]  }
 0x114   : > { %7814 = vmatmul.mubr.bf16.vlgmr.msra.gmra.mrb[0].mxu0 %v11910_v3  ;;  %8768 = vmatmul.mubr.bf16.vlgmr.msra.gmra.mrb[0].mxu1 %v11910_v3  ;;  %v12006_v3 = vld [vmem:[%s14235_s25 + $0x3e0] ss:$16 sps:$4 sm:$0xff]  }
 0x115   : > { %7835 = vmatpush1.bf16.msra.mxu0 %v11913_v4  ;;  %8789 = vmatpush1.bf16.msra.mxu1 %v11916_v5  ;;  %v12009_v4 = vld [vmem:[%s14235_s25 + $0x3e8] ss:$16 sps:$4 sm:$0xff]   ;;  %v12017_v5 = vld [vmem:[%s14235_s25 + $0x404] ss:$16 sps:$4 sm:$0xff]  }
 0x116   : > { %7836 = vmatprep.subr.bf16.mxu0 %v11921_v6  ;;  %8790 = vmatprep.subr.bf16.mxu1 %v11924_v7  ;;  %v12020_v6 = vld [vmem:[%s14235_s25 + $0x40c] ss:$16 sps:$4 sm:$0xff]   ;;  %v12012_v7 = vld [vmem:[#allocation2 + $0x8] ss:$144 sps:$4 sm:$0xff]  }
 0x117   : > { %7823 = vmatprep.mubr.bf16.mxu0 %v11997_v24  ;;  %8777 = vmatprep.mubr.bf16.mxu1 %v11997_v24  ;;  %v12036_v24 = vld [vmem:[%s14235_s25 + $0x468] ss:$16 sps:$4 sm:$0xff]  }
 0x119   : > { %7837 = vmatpush1.bf16.msra.mxu0 %v11919_v8  ;;  %8791 = vmatpush1.bf16.msra.mxu1 %v11922_v9  ;;  %v12015_v8 = vld [vmem:[%s14235_s25 + $0x400] ss:$16 sps:$4 sm:$0xff]   ;;  %v12018_v9 = vld [vmem:[%s14235_s25 + $0x408] ss:$16 sps:$4 sm:$0xff]  }
 0x11a   : > { %7838 = vmatprep.subr.bf16.mxu0 %v11927_v10  ;;  %8792 = vmatprep.subr.bf16.mxu1 %v11930_v11  ;;  %v12023_v10 = vld [vmem:[%s14235_s25 + $0x424] ss:$16 sps:$4 sm:$0xff]   ;;  %v12026_v11 = vld [vmem:[%s14235_s25 + $0x42c] ss:$16 sps:$4 sm:$0xff]  }
 0x11c   : > { %7824 = vmatmul.mubr.bf16.gmra.mrb[4].mxu0 %v12005_v29  ;;  %8778 = vmatmul.mubr.bf16.gmra.mrb[4].mxu1 %v12005_v29  ;;  %v12047_v29 = vld [vmem:[%s14235_s25 + $0x4a4] ss:$16 sps:$4 sm:$0xff]  }
 0x11d   : > { %7839 = vmatpush1.bf16.msra.mxu0 %v11925_v12  ;;  %8793 = vmatpush1.bf16.msra.mxu1 %v11928_v13  ;;  %v12099_v12 = vld [vmem:[#allocation2 + $0x12c] ss:$144 sps:$4 sm:$0xff]   ;;  %v12021_v13 = vld [vmem:[%s14235_s25 + $0x420] ss:$16 sps:$4 sm:$0xff]  }
 0x11e   : > { %7840 = vmatprep.subr.bf16.mxu0 %v11933_v14  ;;  %8794 = vmatprep.subr.bf16.mxu1 %v11936_v15  ;;  %v12024_v14 = vld [vmem:[%s14235_s25 + $0x428] ss:$16 sps:$4 sm:$0xff]   ;;  %v12029_v15 = vld [vmem:[%s14235_s25 + $0x444] ss:$16 sps:$4 sm:$0xff]  }
 0x11f   : > { %7866 = vmatprep.mubr.bf16.mxu0 %v12014_v34  ;;  %8820 = vmatprep.mubr.bf16.mxu1 %v12014_v34  ;;  %v12056_v34 = vld [vmem:[%s14235_s25 + $0x4cc] ss:$16 sps:$4 sm:$0xff]  }
 0x121   : > { %7841 = vmatpush1.bf16.msra.mxu0 %v11931_v16  ;;  %8795 = vmatpush1.bf16.msra.mxu1 %v11934_v17  ;;  %v12032_v16 = vld [vmem:[%s14235_s25 + $0x44c] ss:$16 sps:$4 sm:$0xff]   ;;  %v12027_v17 = vld [vmem:[%s14235_s25 + $0x440] ss:$16 sps:$4 sm:$0xff]  }
 0x122   : > { %7842 = vmatprep.subr.bf16.mxu0 %v11939_v18  ;;  %8796 = vmatprep.subr.bf16.mxu1 %v11942_v19  ;;  %v12030_v18 = vld [vmem:[%s14235_s25 + $0x448] ss:$16 sps:$4 sm:$0xff]  }
 0x123   : > { %v12107_v19 = vld [vmem:[#allocation2 + $0x128] ss:$144 sps:$4 sm:$0xff]  }
 0x125   : > { %7843 = vmatpush1.bf16.msra.mxu0 %v11937_v20  ;;  %8797 = vmatpush1.bf16.msra.mxu1 %v11940_v21  ;;  %v12035_v20 = vld [vmem:[%s14235_s25 + $0x464] ss:$16 sps:$4 sm:$0xff]   ;;  %v12038_v21 = vld [vmem:[%s14235_s25 + $0x46c] ss:$16 sps:$4 sm:$0xff]  }
 0x126   : > { %7844 = vmatprep.subr.bf16.mxu0 %v11945_v22  ;;  %8798 = vmatprep.subr.bf16.mxu1 %v11948_v23  ;;  %v12116_v22 = vld [vmem:[#allocation2 + $0x14] ss:$144 sps:$4 sm:$0xff]   ;;  %v12033_v23 = vld [vmem:[%s14235_s25 + $0x460] ss:$16 sps:$4 sm:$0xff]  }
 0x129   : > { %7845 = vmatpush1.bf16.msra.mxu0 %v11943_v25  ;;  %8799 = vmatpush1.bf16.msra.mxu1 %v11946_v26  ;;  %v12041_v25 = vld [vmem:[%s14235_s25 + $0x484] ss:$16 sps:$4 sm:$0xff]   ;;  %v12044_v26 = vld [vmem:[%s14235_s25 + $0x48c] ss:$16 sps:$4 sm:$0xff]  }
 0x12a   : > { %7846 = vmatprep.subr.bf16.mxu0 %v11951_v27  ;;  %8800 = vmatprep.subr.bf16.mxu1 %v11954_v28  ;;  %v12039_v27 = vld [vmem:[%s14235_s25 + $0x480] ss:$16 sps:$4 sm:$0xff]   ;;  %v12042_v28 = vld [vmem:[%s14235_s25 + $0x488] ss:$16 sps:$4 sm:$0xff]  }
 0x12d   : > { %7847 = vmatpush1.bf16.msra.mxu0 %v11949_v30  ;;  %8801 = vmatpush1.bf16.msra.mxu1 %v11952_v31  ;;  %v12050_v30 = vld [vmem:[%s14235_s25 + $0x4ac] ss:$16 sps:$4 sm:$0xff]   ;;  %v12045_v31 = vld [vmem:[%s14235_s25 + $0x4a0] ss:$16 sps:$4 sm:$0xff]  }
 0x12e   : > { %7848 = vmatprep.subr.bf16.mxu0 %v11957_v32  ;;  %8802 = vmatprep.subr.bf16.mxu1 %v11960_v33  ;;  %v12048_v32 = vld [vmem:[%s14235_s25 + $0x4a8] ss:$16 sps:$4 sm:$0xff]   ;;  %v12053_v33 = vld [vmem:[%s14235_s25 + $0x4c4] ss:$16 sps:$4 sm:$0xff]  }
 0x131   : > { %7849 = vmatpush1.bf16.msra.mxu0 %v11955_v35  ;;  %8803 = vmatpush1.bf16.msra.mxu1 %v11958_v36  ;;  %v12051_v35 = vld [vmem:[%s14235_s25 + $0x4c0] ss:$16 sps:$4 sm:$0xff]   ;;  %v12054_v36 = vld [vmem:[%s14235_s25 + $0x4c8] ss:$16 sps:$4 sm:$0xff]  }
 0x132   : > { %7850 = vmatprep.subr.bf16.mxu0 %v11963_v37  ;;  %8804 = vmatprep.subr.bf16.mxu1 %v11966_v38  ;;  %v12059_v37 = vld [vmem:[%s14235_s25 + $0x4e4] ss:$16 sps:$4 sm:$0xff]   ;;  %v12062_v38 = vld [vmem:[%s14235_s25 + $0x4ec] ss:$16 sps:$4 sm:$0xff]  }
 0x135   : > { %7851 = vmatpush1.bf16.msra.mxu0 %v11961_v39  ;;  %8805 = vmatpush1.bf16.msra.mxu1 %v11964_v40  ;;  %v12057_v39 = vld [vmem:[%s14235_s25 + $0x4e0] ss:$16 sps:$4 sm:$0xff]   ;;  %v12060_v40 = vld [vmem:[%s14235_s25 + $0x4e8] ss:$16 sps:$4 sm:$0xff]  }
 0x136   : > { %7852 = vmatprep.subr.bf16.mxu0 %v11969_v41  ;;  %8806 = vmatprep.subr.bf16.mxu1 %v11972_v42  ;;  %v12065_v41 = vld [vmem:[%s14235_s25 + $0x504] ss:$16 sps:$4 sm:$0xff]   ;;  %v12068_v42 = vld [vmem:[%s14235_s25 + $0x50c] ss:$16 sps:$4 sm:$0xff]  }
 0x139   : > { %7853 = vmatpush1.bf16.msra.mxu0 %v11967_v43  ;;  %8807 = vmatpush1.bf16.msra.mxu1 %v11970_v44  ;;  %v12063_v43 = vld [vmem:[%s14235_s25 + $0x500] ss:$16 sps:$4 sm:$0xff]   ;;  %v12066_v44 = vld [vmem:[%s14235_s25 + $0x508] ss:$16 sps:$4 sm:$0xff]  }
 0x13a   : > { %7854 = vmatprep.subr.bf16.mxu0 %v11975_v45  ;;  %8808 = vmatprep.subr.bf16.mxu1 %v11978_v46  ;;  %v12071_v45 = vld [vmem:[%s14235_s25 + $0x524] ss:$16 sps:$4 sm:$0xff]   ;;  %v12074_v46 = vld [vmem:[%s14235_s25 + $0x52c] ss:$16 sps:$4 sm:$0xff]  }
 0x13d   : > { %7855 = vmatpush1.bf16.msra.mxu0 %v11973_v47  ;;  %8809 = vmatpush1.bf16.msra.mxu1 %v11976_v48  ;;  %v12069_v47 = vld [vmem:[%s14235_s25 + $0x520] ss:$16 sps:$4 sm:$0xff]   ;;  %v12072_v48 = vld [vmem:[%s14235_s25 + $0x528] ss:$16 sps:$4 sm:$0xff]  }
 0x13e   : > { %7856 = vmatprep.subr.bf16.mxu0 %v11981_v49  ;;  %8810 = vmatprep.subr.bf16.mxu1 %v11984_v50  ;;  %v12077_v49 = vld [vmem:[%s14235_s25 + $0x544] ss:$16 sps:$4 sm:$0xff]   ;;  %v12080_v50 = vld [vmem:[%s14235_s25 + $0x54c] ss:$16 sps:$4 sm:$0xff]  }
 0x141   : > { %7857 = vmatpush1.bf16.msra.mxu0 %v11979_v51  ;;  %8811 = vmatpush1.bf16.msra.mxu1 %v11982_v52  ;;  %v12075_v51 = vld [vmem:[%s14235_s25 + $0x540] ss:$16 sps:$4 sm:$0xff]   ;;  %v12078_v52 = vld [vmem:[%s14235_s25 + $0x548] ss:$16 sps:$4 sm:$0xff]  }
 0x142   : > { %7858 = vmatprep.subr.bf16.mxu0 %v11987_v53  ;;  %8812 = vmatprep.subr.bf16.mxu1 %v11990_v54  ;;  %v12083_v53 = vld [vmem:[%s14235_s25 + $0x564] ss:$16 sps:$4 sm:$0xff]   ;;  %v12086_v54 = vld [vmem:[%s14235_s25 + $0x56c] ss:$16 sps:$4 sm:$0xff]  }
 0x145   : > { %7859 = vmatpush1.bf16.msra.mxu0 %v11985_v55  ;;  %8813 = vmatpush1.bf16.msra.mxu1 %v11988_v56  ;;  %v12081_v55 = vld [vmem:[%s14235_s25 + $0x560] ss:$16 sps:$4 sm:$0xff]   ;;  %v12084_v56 = vld [vmem:[%s14235_s25 + $0x568] ss:$16 sps:$4 sm:$0xff]  }
 0x146   : > { %7860 = vmatprep.subr.bf16.mxu0 %v11993_v57  ;;  %8814 = vmatprep.subr.bf16.mxu1 %v11996_v58  ;;  %v12089_v57 = vld [vmem:[%s14235_s25 + $0x584] ss:$16 sps:$4 sm:$0xff]   ;;  %v12092_v58 = vld [vmem:[%s14235_s25 + $0x58c] ss:$16 sps:$4 sm:$0xff]  }
 0x149   : > { %7861 = vmatpush1.bf16.msra.mxu0 %v11991_v59  ;;  %8815 = vmatpush1.bf16.msra.mxu1 %v11994_v60  ;;  %v12087_v59 = vld [vmem:[%s14235_s25 + $0x580] ss:$16 sps:$4 sm:$0xff]   ;;  %v12090_v60 = vld [vmem:[%s14235_s25 + $0x588] ss:$16 sps:$4 sm:$0xff]  }
 0x14a   : > { %7862 = vmatprep.subr.bf16.mxu0 %v12001_v61  ;;  %8816 = vmatprep.subr.bf16.mxu1 %v12004_v62  ;;  %v12095_v61 = vld [vmem:[%s14235_s25 + $0x5a4] ss:$16 sps:$4 sm:$0xff]   ;;  %v12098_v62 = vld [vmem:[%s14235_s25 + $0x5ac] ss:$16 sps:$4 sm:$0xff]  }
 0x14d   : > { %7863 = vmatpush1.bf16.msra.mxu0 %v11999_v63  ;;  %8817 = vmatpush1.bf16.msra.mxu1 %v12002_v0  ;;  %v12093_v63 = vld [vmem:[%s14235_s25 + $0x5a0] ss:$16 sps:$4 sm:$0xff]   ;;  %v12096_v0 = vld [vmem:[%s14235_s25 + $0x5a8] ss:$16 sps:$4 sm:$0xff]  }
 0x14e   : > { %7864 = vmatprep.subr.bf16.mxu0 %v12008_v1  ;;  %8818 = vmatprep.subr.bf16.mxu1 %v12011_v2  ;;  %v12103_v1 = vld [vmem:[%s14235_s25 + $0x5c4] ss:$16 sps:$4 sm:$0xff]   ;;  %v12106_v2 = vld [vmem:[%s14235_s25 + $0x5cc] ss:$16 sps:$4 sm:$0xff]  }
 0x151   : > { %7865 = vmatpush1.bf16.msra.mxu0 %v12006_v3  ;;  %8819 = vmatpush1.bf16.msra.mxu1 %v12009_v4  ;;  %v12101_v3 = vld [vmem:[%s14235_s25 + $0x5c0] ss:$16 sps:$4 sm:$0xff]   ;;  %v12104_v4 = vld [vmem:[%s14235_s25 + $0x5c8] ss:$16 sps:$4 sm:$0xff]  }
 0x152   : > { %7887 = vmatprep.subr.bf16.mxu0 %v12017_v5  ;;  %8841 = vmatprep.subr.bf16.mxu1 %v12020_v6  ;;  %v12110_v5 = vld [vmem:[%s14235_s25 + $0x5e4] ss:$16 sps:$4 sm:$0xff]   ;;  %v12113_v6 = vld [vmem:[%s14235_s25 + $0x5ec] ss:$16 sps:$4 sm:$0xff]  }
 0x154   : > { %7867 = vmatmul.mubr.bf16.vlgmr.msra.gmra.mrb[0].mxu0 %v12012_v7  ;;  %8821 = vmatmul.mubr.bf16.vlgmr.msra.gmra.mrb[0].mxu1 %v12012_v7  ;;  %v12108_v7 = vld [vmem:[%s14235_s25 + $0x5e0] ss:$16 sps:$4 sm:$0xff]  }
 0x155   : > { %7888 = vmatpush1.bf16.msra.mxu0 %v12015_v8  ;;  %8842 = vmatpush1.bf16.msra.mxu1 %v12018_v9  ;;  %v12111_v8 = vld [vmem:[%s14235_s25 + $0x5e8] ss:$16 sps:$4 sm:$0xff]   ;;  %v12119_v9 = vld [vmem:[%s14235_s25 + $0x604] ss:$16 sps:$4 sm:$0xff]  }
 0x156   : > { %7889 = vmatprep.subr.bf16.mxu0 %v12023_v10  ;;  %8843 = vmatprep.subr.bf16.mxu1 %v12026_v11  ;;  %v12122_v10 = vld [vmem:[%s14235_s25 + $0x60c] ss:$16 sps:$4 sm:$0xff]   ;;  %v12114_v11 = vld [vmem:[#allocation2 + $0x10] ss:$144 sps:$4 sm:$0xff]  }
 0x157   : > { %7876 = vmatprep.mubr.bf16.mxu0 %v12099_v12  ;;  %8830 = vmatprep.mubr.bf16.mxu1 %v12099_v12  ;;  %v12117_v12 = vld [vmem:[%s14235_s25 + $0x600] ss:$16 sps:$4 sm:$0xff]  }
 0x159   : > { %7890 = vmatpush1.bf16.msra.mxu0 %v12021_v13  ;;  %8844 = vmatpush1.bf16.msra.mxu1 %v12024_v14  ;;  %v12120_v13 = vld [vmem:[%s14235_s25 + $0x608] ss:$16 sps:$4 sm:$0xff]   ;;  %v12125_v14 = vld [vmem:[%s14235_s25 + $0x624] ss:$16 sps:$4 sm:$0xff]  }
 0x15a   : > { %7891 = vmatprep.subr.bf16.mxu0 %v12029_v15  ;;  %8845 = vmatprep.subr.bf16.mxu1 %v12032_v16  ;;  %v12128_v15 = vld [vmem:[%s14235_s25 + $0x62c] ss:$16 sps:$4 sm:$0xff]   ;;  %v12201_v16 = vld [vmem:[#allocation2 + $0x134] ss:$144 sps:$4 sm:$0xff]  }
 0x15c   : > { %7877 = vmatmul.mubr.bf16.gmra.mrb[4].mxu0 %v12107_v19  ;;  %8831 = vmatmul.mubr.bf16.gmra.mrb[4].mxu1 %v12107_v19  ;;  %v12131_v19 = vld [vmem:[%s14235_s25 + $0x644] ss:$16 sps:$4 sm:$0xff]  }
 0x15d   : > { %7892 = vmatpush1.bf16.msra.mxu0 %v12027_v17  ;;  %8846 = vmatpush1.bf16.msra.mxu1 %v12030_v18  ;;  %v12123_v17 = vld [vmem:[%s14235_s25 + $0x620] ss:$16 sps:$4 sm:$0xff]   ;;  %v12126_v18 = vld [vmem:[%s14235_s25 + $0x628] ss:$16 sps:$4 sm:$0xff]  }
 0x15e   : > { %7893 = vmatprep.subr.bf16.mxu0 %v12035_v20  ;;  %8847 = vmatprep.subr.bf16.mxu1 %v12038_v21  ;;  %v12134_v20 = vld [vmem:[%s14235_s25 + $0x64c] ss:$16 sps:$4 sm:$0xff]   ;;  %v12129_v21 = vld [vmem:[%s14235_s25 + $0x640] ss:$16 sps:$4 sm:$0xff]  }
 0x15f   : > { %7919 = vmatprep.mubr.bf16.mxu0 %v12116_v22  ;;  %8873 = vmatprep.mubr.bf16.mxu1 %v12116_v22  ;;  %v12132_v22 = vld [vmem:[%s14235_s25 + $0x648] ss:$16 sps:$4 sm:$0xff]  }
 0x161   : > { %7894 = vmatpush1.bf16.msra.mxu0 %v12033_v23  ;;  %8848 = vmatpush1.bf16.msra.mxu1 %v12036_v24  ;;  %v12209_v23 = vld [vmem:[#allocation2 + $0x130] ss:$144 sps:$4 sm:$0xff]   ;;  %v12137_v24 = vld [vmem:[%s14235_s25 + $0x664] ss:$16 sps:$4 sm:$0xff]  }
 0x162   : > { %7895 = vmatprep.subr.bf16.mxu0 %v12041_v25  ;;  %8849 = vmatprep.subr.bf16.mxu1 %v12044_v26  ;;  %v12140_v25 = vld [vmem:[%s14235_s25 + $0x66c] ss:$16 sps:$4 sm:$0xff]  }
 0x163   : > { %v12218_v26 = vld [vmem:[#allocation2 + $0x1c] ss:$144 sps:$4 sm:$0xff]  }
 0x165   : > { %7896 = vmatpush1.bf16.msra.mxu0 %v12039_v27  ;;  %8850 = vmatpush1.bf16.msra.mxu1 %v12042_v28  ;;  %v12135_v27 = vld [vmem:[%s14235_s25 + $0x660] ss:$16 sps:$4 sm:$0xff]   ;;  %v12138_v28 = vld [vmem:[%s14235_s25 + $0x668] ss:$16 sps:$4 sm:$0xff]  }
 0x166   : > { %7897 = vmatprep.subr.bf16.mxu0 %v12047_v29  ;;  %8851 = vmatprep.subr.bf16.mxu1 %v12050_v30  ;;  %v12143_v29 = vld [vmem:[%s14235_s25 + $0x684] ss:$16 sps:$4 sm:$0xff]   ;;  %v12146_v30 = vld [vmem:[%s14235_s25 + $0x68c] ss:$16 sps:$4 sm:$0xff]  }
 0x169   : > { %7898 = vmatpush1.bf16.msra.mxu0 %v12045_v31  ;;  %8852 = vmatpush1.bf16.msra.mxu1 %v12048_v32  ;;  %v12141_v31 = vld [vmem:[%s14235_s25 + $0x680] ss:$16 sps:$4 sm:$0xff]   ;;  %v12144_v32 = vld [vmem:[%s14235_s25 + $0x688] ss:$16 sps:$4 sm:$0xff]  }
 0x16a   : > { %7899 = vmatprep.subr.bf16.mxu0 %v12053_v33  ;;  %8853 = vmatprep.subr.bf16.mxu1 %v12056_v34  ;;  %v12149_v33 = vld [vmem:[%s14235_s25 + $0x6a4] ss:$16 sps:$4 sm:$0xff]   ;;  %v12152_v34 = vld [vmem:[%s14235_s25 + $0x6ac] ss:$16 sps:$4 sm:$0xff]  }
 0x16d   : > { %7900 = vmatpush1.bf16.msra.mxu0 %v12051_v35  ;;  %8854 = vmatpush1.bf16.msra.mxu1 %v12054_v36  ;;  %v12147_v35 = vld [vmem:[%s14235_s25 + $0x6a0] ss:$16 sps:$4 sm:$0xff]   ;;  %v12150_v36 = vld [vmem:[%s14235_s25 + $0x6a8] ss:$16 sps:$4 sm:$0xff]  }
 0x16e   : > { %7901 = vmatprep.subr.bf16.mxu0 %v12059_v37  ;;  %8855 = vmatprep.subr.bf16.mxu1 %v12062_v38  ;;  %v12155_v37 = vld [vmem:[%s14235_s25 + $0x6c4] ss:$16 sps:$4 sm:$0xff]   ;;  %v12158_v38 = vld [vmem:[%s14235_s25 + $0x6cc] ss:$16 sps:$4 sm:$0xff]  }
 0x171   : > { %7902 = vmatpush1.bf16.msra.mxu0 %v12057_v39  ;;  %8856 = vmatpush1.bf16.msra.mxu1 %v12060_v40  ;;  %v12153_v39 = vld [vmem:[%s14235_s25 + $0x6c0] ss:$16 sps:$4 sm:$0xff]   ;;  %v12156_v40 = vld [vmem:[%s14235_s25 + $0x6c8] ss:$16 sps:$4 sm:$0xff]  }
 0x172   : > { %7903 = vmatprep.subr.bf16.mxu0 %v12065_v41  ;;  %8857 = vmatprep.subr.bf16.mxu1 %v12068_v42  ;;  %v12161_v41 = vld [vmem:[%s14235_s25 + $0x6e4] ss:$16 sps:$4 sm:$0xff]   ;;  %v12164_v42 = vld [vmem:[%s14235_s25 + $0x6ec] ss:$16 sps:$4 sm:$0xff]  }
 0x175   : > { %7904 = vmatpush1.bf16.msra.mxu0 %v12063_v43  ;;  %8858 = vmatpush1.bf16.msra.mxu1 %v12066_v44  ;;  %v12159_v43 = vld [vmem:[%s14235_s25 + $0x6e0] ss:$16 sps:$4 sm:$0xff]   ;;  %v12162_v44 = vld [vmem:[%s14235_s25 + $0x6e8] ss:$16 sps:$4 sm:$0xff]  }
 0x176   : > { %7905 = vmatprep.subr.bf16.mxu0 %v12071_v45  ;;  %8859 = vmatprep.subr.bf16.mxu1 %v12074_v46  ;;  %v12167_v45 = vld [vmem:[%s14235_s25 + $0x704] ss:$16 sps:$4 sm:$0xff]   ;;  %v12170_v46 = vld [vmem:[%s14235_s25 + $0x70c] ss:$16 sps:$4 sm:$0xff]  }
 0x179   : > { %7906 = vmatpush1.bf16.msra.mxu0 %v12069_v47  ;;  %8860 = vmatpush1.bf16.msra.mxu1 %v12072_v48  ;;  %v12165_v47 = vld [vmem:[%s14235_s25 + $0x700] ss:$16 sps:$4 sm:$0xff]   ;;  %v12168_v48 = vld [vmem:[%s14235_s25 + $0x708] ss:$16 sps:$4 sm:$0xff]  }
 0x17a   : > { %7907 = vmatprep.subr.bf16.mxu0 %v12077_v49  ;;  %8861 = vmatprep.subr.bf16.mxu1 %v12080_v50  ;;  %v12173_v49 = vld [vmem:[%s14235_s25 + $0x724] ss:$16 sps:$4 sm:$0xff]   ;;  %v12176_v50 = vld [vmem:[%s14235_s25 + $0x72c] ss:$16 sps:$4 sm:$0xff]  }
 0x17d   : > { %7908 = vmatpush1.bf16.msra.mxu0 %v12075_v51  ;;  %8862 = vmatpush1.bf16.msra.mxu1 %v12078_v52  ;;  %v12171_v51 = vld [vmem:[%s14235_s25 + $0x720] ss:$16 sps:$4 sm:$0xff]   ;;  %v12174_v52 = vld [vmem:[%s14235_s25 + $0x728] ss:$16 sps:$4 sm:$0xff]  }
 0x17e   : > { %7909 = vmatprep.subr.bf16.mxu0 %v12083_v53  ;;  %8863 = vmatprep.subr.bf16.mxu1 %v12086_v54  ;;  %v12179_v53 = vld [vmem:[%s14235_s25 + $0x744] ss:$16 sps:$4 sm:$0xff]   ;;  %v12182_v54 = vld [vmem:[%s14235_s25 + $0x74c] ss:$16 sps:$4 sm:$0xff]  }
 0x181   : > { %7910 = vmatpush1.bf16.msra.mxu0 %v12081_v55  ;;  %8864 = vmatpush1.bf16.msra.mxu1 %v12084_v56  ;;  %v12177_v55 = vld [vmem:[%s14235_s25 + $0x740] ss:$16 sps:$4 sm:$0xff]   ;;  %v12180_v56 = vld [vmem:[%s14235_s25 + $0x748] ss:$16 sps:$4 sm:$0xff]  }
 0x182   : > { %7911 = vmatprep.subr.bf16.mxu0 %v12089_v57  ;;  %8865 = vmatprep.subr.bf16.mxu1 %v12092_v58  ;;  %v12185_v57 = vld [vmem:[%s14235_s25 + $0x764] ss:$16 sps:$4 sm:$0xff]   ;;  %v12188_v58 = vld [vmem:[%s14235_s25 + $0x76c] ss:$16 sps:$4 sm:$0xff]  }
 0x185   : > { %7912 = vmatpush1.bf16.msra.mxu0 %v12087_v59  ;;  %8866 = vmatpush1.bf16.msra.mxu1 %v12090_v60  ;;  %v12183_v59 = vld [vmem:[%s14235_s25 + $0x760] ss:$16 sps:$4 sm:$0xff]   ;;  %v12186_v60 = vld [vmem:[%s14235_s25 + $0x768] ss:$16 sps:$4 sm:$0xff]  }
 0x186   : > { %7913 = vmatprep.subr.bf16.mxu0 %v12095_v61  ;;  %8867 = vmatprep.subr.bf16.mxu1 %v12098_v62  ;;  %v12191_v61 = vld [vmem:[%s14235_s25 + $0x784] ss:$16 sps:$4 sm:$0xff]   ;;  %v12194_v62 = vld [vmem:[%s14235_s25 + $0x78c] ss:$16 sps:$4 sm:$0xff]  }
 0x189   : > { %7914 = vmatpush1.bf16.msra.mxu0 %v12093_v63  ;;  %8868 = vmatpush1.bf16.msra.mxu1 %v12096_v0  ;;  %v12189_v63 = vld [vmem:[%s14235_s25 + $0x780] ss:$16 sps:$4 sm:$0xff]   ;;  %v12192_v0 = vld [vmem:[%s14235_s25 + $0x788] ss:$16 sps:$4 sm:$0xff]  }
 0x18a   : > { %7915 = vmatprep.subr.bf16.mxu0 %v12103_v1  ;;  %8869 = vmatprep.subr.bf16.mxu1 %v12106_v2  ;;  %v12197_v1 = vld [vmem:[%s14235_s25 + $0x7a4] ss:$16 sps:$4 sm:$0xff]   ;;  %v12200_v2 = vld [vmem:[%s14235_s25 + $0x7ac] ss:$16 sps:$4 sm:$0xff]  }
 0x18d   : > { %7916 = vmatpush1.bf16.msra.mxu0 %v12101_v3  ;;  %8870 = vmatpush1.bf16.msra.mxu1 %v12104_v4  ;;  %v12195_v3 = vld [vmem:[%s14235_s25 + $0x7a0] ss:$16 sps:$4 sm:$0xff]   ;;  %v12198_v4 = vld [vmem:[%s14235_s25 + $0x7a8] ss:$16 sps:$4 sm:$0xff]  }
 0x18e   : > { %7917 = vmatprep.subr.bf16.mxu0 %v12110_v5  ;;  %8871 = vmatprep.subr.bf16.mxu1 %v12113_v6  ;;  %v12205_v5 = vld [vmem:[%s14235_s25 + $0x7c4] ss:$16 sps:$4 sm:$0xff]   ;;  %v12208_v6 = vld [vmem:[%s14235_s25 + $0x7cc] ss:$16 sps:$4 sm:$0xff]  }
 0x191   : > { %7918 = vmatpush1.bf16.msra.mxu0 %v12108_v7  ;;  %8872 = vmatpush1.bf16.msra.mxu1 %v12111_v8  ;;  %v12203_v7 = vld [vmem:[%s14235_s25 + $0x7c0] ss:$16 sps:$4 sm:$0xff]   ;;  %v12206_v8 = vld [vmem:[%s14235_s25 + $0x7c8] ss:$16 sps:$4 sm:$0xff]  }
 0x192   : > { %7940 = vmatprep.subr.bf16.mxu0 %v12119_v9  ;;  %8894 = vmatprep.subr.bf16.mxu1 %v12122_v10  ;;  %v12212_v9 = vld [vmem:[%s14235_s25 + $0x7e4] ss:$16 sps:$4 sm:$0xff]   ;;  %v12215_v10 = vld [vmem:[%s14235_s25 + $0x7ec] ss:$16 sps:$4 sm:$0xff]  }
 0x194   : > { %7920 = vmatmul.mubr.bf16.vlgmr.msra.gmra.mrb[0].mxu0 %v12114_v11  ;;  %8874 = vmatmul.mubr.bf16.vlgmr.msra.gmra.mrb[0].mxu1 %v12114_v11  ;;  %v12210_v11 = vld [vmem:[%s14235_s25 + $0x7e0] ss:$16 sps:$4 sm:$0xff]  }
 0x195   : > { %7941 = vmatpush1.bf16.msra.mxu0 %v12117_v12  ;;  %8895 = vmatpush1.bf16.msra.mxu1 %v12120_v13  ;;  %v12213_v12 = vld [vmem:[%s14235_s25 + $0x7e8] ss:$16 sps:$4 sm:$0xff]   ;;  %v12221_v13 = vld [vmem:[%s14235_s25 + $0x804] ss:$16 sps:$4 sm:$0xff]  }
 0x196   : > { %7942 = vmatprep.subr.bf16.mxu0 %v12125_v14  ;;  %8896 = vmatprep.subr.bf16.mxu1 %v12128_v15  ;;  %v12224_v14 = vld [vmem:[%s14235_s25 + $0x80c] ss:$16 sps:$4 sm:$0xff]   ;;  %v12216_v15 = vld [vmem:[#allocation2 + $0x18] ss:$144 sps:$4 sm:$0xff]  }
 0x197   : > { %7929 = vmatprep.mubr.bf16.mxu0 %v12201_v16  ;;  %8883 = vmatprep.mubr.bf16.mxu1 %v12201_v16  ;;  %v12219_v16 = vld [vmem:[%s14235_s25 + $0x800] ss:$16 sps:$4 sm:$0xff]  }
 0x199   : > { %7943 = vmatpush1.bf16.msra.mxu0 %v12123_v17  ;;  %8897 = vmatpush1.bf16.msra.mxu1 %v12126_v18  ;;  %v12222_v17 = vld [vmem:[%s14235_s25 + $0x808] ss:$16 sps:$4 sm:$0xff]   ;;  %v12227_v18 = vld [vmem:[%s14235_s25 + $0x824] ss:$16 sps:$4 sm:$0xff]  }
 0x19a   : > { %7944 = vmatprep.subr.bf16.mxu0 %v12131_v19  ;;  %8898 = vmatprep.subr.bf16.mxu1 %v12134_v20  ;;  %v12230_v19 = vld [vmem:[%s14235_s25 + $0x82c] ss:$16 sps:$4 sm:$0xff]  }
 0x19b   : > { %v12303_v20 = vld [vmem:[#allocation2 + $0x13c] ss:$144 sps:$4 sm:$0xff]  }
 0x19c   : > { %7930 = vmatmul.mubr.bf16.gmra.mrb[4].mxu0 %v12209_v23  ;;  %8884 = vmatmul.mubr.bf16.gmra.mrb[4].mxu1 %v12209_v23  ;;  %v12233_v23 = vld [vmem:[%s14235_s25 + $0x844] ss:$16 sps:$4 sm:$0xff]  }
 0x19d   : > { %7945 = vmatpush1.bf16.msra.mxu0 %v12129_v21  ;;  %8899 = vmatpush1.bf16.msra.mxu1 %v12132_v22  ;;  %v12225_v21 = vld [vmem:[%s14235_s25 + $0x820] ss:$16 sps:$4 sm:$0xff]   ;;  %v12228_v22 = vld [vmem:[%s14235_s25 + $0x828] ss:$16 sps:$4 sm:$0xff]  }
 0x19e   : > { %7946 = vmatprep.subr.bf16.mxu0 %v12137_v24  ;;  %8900 = vmatprep.subr.bf16.mxu1 %v12140_v25  ;;  %v12236_v24 = vld [vmem:[%s14235_s25 + $0x84c] ss:$16 sps:$4 sm:$0xff]   ;;  %v12231_v25 = vld [vmem:[%s14235_s25 + $0x840] ss:$16 sps:$4 sm:$0xff]  }
 0x19f   : > { %7972 = vmatprep.mubr.bf16.mxu0 %v12218_v26  ;;  %8926 = vmatprep.mubr.bf16.mxu1 %v12218_v26  ;;  %v12311_v26 = vld [vmem:[#allocation2 + $0x138] ss:$144 sps:$4 sm:$0xff]  }
 0x1a1   : > { %7947 = vmatpush1.bf16.msra.mxu0 %v12135_v27  ;;  %8901 = vmatpush1.bf16.msra.mxu1 %v12138_v28  ;;  %v12234_v27 = vld [vmem:[%s14235_s25 + $0x848] ss:$16 sps:$4 sm:$0xff]   ;;  %v12239_v28 = vld [vmem:[%s14235_s25 + $0x864] ss:$16 sps:$4 sm:$0xff]  }
 0x1a2   : > { %7948 = vmatprep.subr.bf16.mxu0 %v12143_v29  ;;  %8902 = vmatprep.subr.bf16.mxu1 %v12146_v30  ;;  %v12242_v29 = vld [vmem:[%s14235_s25 + $0x86c] ss:$16 sps:$4 sm:$0xff]   ;;  %v12320_v30 = vld [vmem:[#allocation2 + $0x24] ss:$144 sps:$4 sm:$0xff]  }
 0x1a5   : > { %7949 = vmatpush1.bf16.msra.mxu0 %v12141_v31  ;;  %8903 = vmatpush1.bf16.msra.mxu1 %v12144_v32  ;;  %v12237_v31 = vld [vmem:[%s14235_s25 + $0x860] ss:$16 sps:$4 sm:$0xff]   ;;  %v12240_v32 = vld [vmem:[%s14235_s25 + $0x868] ss:$16 sps:$4 sm:$0xff]  }
 0x1a6   : > { %7950 = vmatprep.subr.bf16.mxu0 %v12149_v33  ;;  %8904 = vmatprep.subr.bf16.mxu1 %v12152_v34  ;;  %v12245_v33 = vld [vmem:[%s14235_s25 + $0x884] ss:$16 sps:$4 sm:$0xff]   ;;  %v12248_v34 = vld [vmem:[%s14235_s25 + $0x88c] ss:$16 sps:$4 sm:$0xff]  }
 0x1a9   : > { %7951 = vmatpush1.bf16.msra.mxu0 %v12147_v35  ;;  %8905 = vmatpush1.bf16.msra.mxu1 %v12150_v36  ;;  %v12243_v35 = vld [vmem:[%s14235_s25 + $0x880] ss:$16 sps:$4 sm:$0xff]   ;;  %v12246_v36 = vld [vmem:[%s14235_s25 + $0x888] ss:$16 sps:$4 sm:$0xff]  }
 0x1aa   : > { %7952 = vmatprep.subr.bf16.mxu0 %v12155_v37  ;;  %8906 = vmatprep.subr.bf16.mxu1 %v12158_v38  ;;  %v12251_v37 = vld [vmem:[%s14235_s25 + $0x8a4] ss:$16 sps:$4 sm:$0xff]   ;;  %v12254_v38 = vld [vmem:[%s14235_s25 + $0x8ac] ss:$16 sps:$4 sm:$0xff]  }
 0x1ad   : > { %7953 = vmatpush1.bf16.msra.mxu0 %v12153_v39  ;;  %8907 = vmatpush1.bf16.msra.mxu1 %v12156_v40  ;;  %v12249_v39 = vld [vmem:[%s14235_s25 + $0x8a0] ss:$16 sps:$4 sm:$0xff]   ;;  %v12252_v40 = vld [vmem:[%s14235_s25 + $0x8a8] ss:$16 sps:$4 sm:$0xff]  }
 0x1ae   : > { %7954 = vmatprep.subr.bf16.mxu0 %v12161_v41  ;;  %8908 = vmatprep.subr.bf16.mxu1 %v12164_v42  ;;  %v12257_v41 = vld [vmem:[%s14235_s25 + $0x8c4] ss:$16 sps:$4 sm:$0xff]   ;;  %v12260_v42 = vld [vmem:[%s14235_s25 + $0x8cc] ss:$16 sps:$4 sm:$0xff]  }
 0x1b1   : > { %7955 = vmatpush1.bf16.msra.mxu0 %v12159_v43  ;;  %8909 = vmatpush1.bf16.msra.mxu1 %v12162_v44  ;;  %v12255_v43 = vld [vmem:[%s14235_s25 + $0x8c0] ss:$16 sps:$4 sm:$0xff]   ;;  %v12258_v44 = vld [vmem:[%s14235_s25 + $0x8c8] ss:$16 sps:$4 sm:$0xff]  }
 0x1b2   : > { %7956 = vmatprep.subr.bf16.mxu0 %v12167_v45  ;;  %8910 = vmatprep.subr.bf16.mxu1 %v12170_v46  ;;  %v12263_v45 = vld [vmem:[%s14235_s25 + $0x8e4] ss:$16 sps:$4 sm:$0xff]   ;;  %v12266_v46 = vld [vmem:[%s14235_s25 + $0x8ec] ss:$16 sps:$4 sm:$0xff]  }
 0x1b5   : > { %7957 = vmatpush1.bf16.msra.mxu0 %v12165_v47  ;;  %8911 = vmatpush1.bf16.msra.mxu1 %v12168_v48  ;;  %v12261_v47 = vld [vmem:[%s14235_s25 + $0x8e0] ss:$16 sps:$4 sm:$0xff]   ;;  %v12264_v48 = vld [vmem:[%s14235_s25 + $0x8e8] ss:$16 sps:$4 sm:$0xff]  }
 0x1b6   : > { %7958 = vmatprep.subr.bf16.mxu0 %v12173_v49  ;;  %8912 = vmatprep.subr.bf16.mxu1 %v12176_v50  ;;  %v12269_v49 = vld [vmem:[%s14235_s25 + $0x904] ss:$16 sps:$4 sm:$0xff]   ;;  %v12272_v50 = vld [vmem:[%s14235_s25 + $0x90c] ss:$16 sps:$4 sm:$0xff]  }
 0x1b9   : > { %7959 = vmatpush1.bf16.msra.mxu0 %v12171_v51  ;;  %8913 = vmatpush1.bf16.msra.mxu1 %v12174_v52  ;;  %v12267_v51 = vld [vmem:[%s14235_s25 + $0x900] ss:$16 sps:$4 sm:$0xff]   ;;  %v12270_v52 = vld [vmem:[%s14235_s25 + $0x908] ss:$16 sps:$4 sm:$0xff]  }
 0x1ba   : > { %7960 = vmatprep.subr.bf16.mxu0 %v12179_v53  ;;  %8914 = vmatprep.subr.bf16.mxu1 %v12182_v54  ;;  %v12275_v53 = vld [vmem:[%s14235_s25 + $0x924] ss:$16 sps:$4 sm:$0xff]   ;;  %v12278_v54 = vld [vmem:[%s14235_s25 + $0x92c] ss:$16 sps:$4 sm:$0xff]  }
 0x1bd   : > { %7961 = vmatpush1.bf16.msra.mxu0 %v12177_v55  ;;  %8915 = vmatpush1.bf16.msra.mxu1 %v12180_v56  ;;  %v12273_v55 = vld [vmem:[%s14235_s25 + $0x920] ss:$16 sps:$4 sm:$0xff]   ;;  %v12276_v56 = vld [vmem:[%s14235_s25 + $0x928] ss:$16 sps:$4 sm:$0xff]  }
 0x1be   : > { %7962 = vmatprep.subr.bf16.mxu0 %v12185_v57  ;;  %8916 = vmatprep.subr.bf16.mxu1 %v12188_v58  ;;  %v12281_v57 = vld [vmem:[%s14235_s25 + $0x944] ss:$16 sps:$4 sm:$0xff]   ;;  %v12284_v58 = vld [vmem:[%s14235_s25 + $0x94c] ss:$16 sps:$4 sm:$0xff]  }
 0x1c1   : > { %7963 = vmatpush1.bf16.msra.mxu0 %v12183_v59  ;;  %8917 = vmatpush1.bf16.msra.mxu1 %v12186_v60  ;;  %v12279_v59 = vld [vmem:[%s14235_s25 + $0x940] ss:$16 sps:$4 sm:$0xff]   ;;  %v12282_v60 = vld [vmem:[%s14235_s25 + $0x948] ss:$16 sps:$4 sm:$0xff]  }
 0x1c2   : > { %7964 = vmatprep.subr.bf16.mxu0 %v12191_v61  ;;  %8918 = vmatprep.subr.bf16.mxu1 %v12194_v62  ;;  %v12287_v61 = vld [vmem:[%s14235_s25 + $0x964] ss:$16 sps:$4 sm:$0xff]   ;;  %v12290_v62 = vld [vmem:[%s14235_s25 + $0x96c] ss:$16 sps:$4 sm:$0xff]  }
 0x1c5   : > { %7965 = vmatpush1.bf16.msra.mxu0 %v12189_v63  ;;  %8919 = vmatpush1.bf16.msra.mxu1 %v12192_v0  ;;  %v12285_v63 = vld [vmem:[%s14235_s25 + $0x960] ss:$16 sps:$4 sm:$0xff]   ;;  %v12288_v0 = vld [vmem:[%s14235_s25 + $0x968] ss:$16 sps:$4 sm:$0xff]  }
 0x1c6   : > { %7966 = vmatprep.subr.bf16.mxu0 %v12197_v1  ;;  %8920 = vmatprep.subr.bf16.mxu1 %v12200_v2  ;;  %v12293_v1 = vld [vmem:[%s14235_s25 + $0x984] ss:$16 sps:$4 sm:$0xff]   ;;  %v12296_v2 = vld [vmem:[%s14235_s25 + $0x98c] ss:$16 sps:$4 sm:$0xff]  }
 0x1c9   : > { %7967 = vmatpush1.bf16.msra.mxu0 %v12195_v3  ;;  %8921 = vmatpush1.bf16.msra.mxu1 %v12198_v4  ;;  %v12291_v3 = vld [vmem:[%s14235_s25 + $0x980] ss:$16 sps:$4 sm:$0xff]   ;;  %v12294_v4 = vld [vmem:[%s14235_s25 + $0x988] ss:$16 sps:$4 sm:$0xff]  }
 0x1ca   : > { %7968 = vmatprep.subr.bf16.mxu0 %v12205_v5  ;;  %8922 = vmatprep.subr.bf16.mxu1 %v12208_v6  ;;  %v12299_v5 = vld [vmem:[%s14235_s25 + $0x9a4] ss:$16 sps:$4 sm:$0xff]   ;;  %v12302_v6 = vld [vmem:[%s14235_s25 + $0x9ac] ss:$16 sps:$4 sm:$0xff]  }
 0x1cd   : > { %7969 = vmatpush1.bf16.msra.mxu0 %v12203_v7  ;;  %8923 = vmatpush1.bf16.msra.mxu1 %v12206_v8  ;;  %v12297_v7 = vld [vmem:[%s14235_s25 + $0x9a0] ss:$16 sps:$4 sm:$0xff]   ;;  %v12300_v8 = vld [vmem:[%s14235_s25 + $0x9a8] ss:$16 sps:$4 sm:$0xff]  }
 0x1ce   : > { %7970 = vmatprep.subr.bf16.mxu0 %v12212_v9  ;;  %8924 = vmatprep.subr.bf16.mxu1 %v12215_v10  ;;  %v12307_v9 = vld [vmem:[%s14235_s25 + $0x9c4] ss:$16 sps:$4 sm:$0xff]   ;;  %v12310_v10 = vld [vmem:[%s14235_s25 + $0x9cc] ss:$16 sps:$4 sm:$0xff]  }
 0x1d1   : > { %7971 = vmatpush1.bf16.msra.mxu0 %v12210_v11  ;;  %8925 = vmatpush1.bf16.msra.mxu1 %v12213_v12  ;;  %v12305_v11 = vld [vmem:[%s14235_s25 + $0x9c0] ss:$16 sps:$4 sm:$0xff]   ;;  %v12308_v12 = vld [vmem:[%s14235_s25 + $0x9c8] ss:$16 sps:$4 sm:$0xff]  }
 0x1d2   : > { %7993 = vmatprep.subr.bf16.mxu0 %v12221_v13  ;;  %8947 = vmatprep.subr.bf16.mxu1 %v12224_v14  ;;  %v12314_v13 = vld [vmem:[%s14235_s25 + $0x9e4] ss:$16 sps:$4 sm:$0xff]   ;;  %v12317_v14 = vld [vmem:[%s14235_s25 + $0x9ec] ss:$16 sps:$4 sm:$0xff]  }
 0x1d4   : > { %7973 = vmatmul.mubr.bf16.vlgmr.msra.gmra.mrb[0].mxu0 %v12216_v15  ;;  %8927 = vmatmul.mubr.bf16.vlgmr.msra.gmra.mrb[0].mxu1 %v12216_v15  ;;  %v12312_v15 = vld [vmem:[%s14235_s25 + $0x9e0] ss:$16 sps:$4 sm:$0xff]  }
 0x1d5   : > { %7994 = vmatpush1.bf16.msra.mxu0 %v12219_v16  ;;  %8948 = vmatpush1.bf16.msra.mxu1 %v12222_v17  ;;  %v12315_v16 = vld [vmem:[%s14235_s25 + $0x9e8] ss:$16 sps:$4 sm:$0xff]   ;;  %v12318_v17 = vld [vmem:[#allocation2 + $0x20] ss:$144 sps:$4 sm:$0xff]  }
 0x1d6   : > { %7995 = vmatprep.subr.bf16.mxu0 %v12227_v18  ;;  %8949 = vmatprep.subr.bf16.mxu1 %v12230_v19  ;;  %v12323_v18 = vld [vmem:[%s14235_s25 + $0xa04] ss:$16 sps:$4 sm:$0xff]   ;;  %v12326_v19 = vld [vmem:[%s14235_s25 + $0xa0c] ss:$16 sps:$4 sm:$0xff]  }
 0x1d7   : > { %7982 = vmatprep.mubr.bf16.mxu0 %v12303_v20  ;;  %8936 = vmatprep.mubr.bf16.mxu1 %v12303_v20  ;;  %v12321_v20 = vld [vmem:[%s14235_s25 + $0xa00] ss:$16 sps:$4 sm:$0xff]  }
 0x1d9   : > { %7996 = vmatpush1.bf16.msra.mxu0 %v12225_v21  ;;  %8950 = vmatpush1.bf16.msra.mxu1 %v12228_v22  ;;  %v12324_v21 = vld [vmem:[%s14235_s25 + $0xa08] ss:$16 sps:$4 sm:$0xff]   ;;  %v12329_v22 = vld [vmem:[%s14235_s25 + $0xa24] ss:$16 sps:$4 sm:$0xff]  }
 0x1da   : > { %7997 = vmatprep.subr.bf16.mxu0 %v12233_v23  ;;  %8951 = vmatprep.subr.bf16.mxu1 %v12236_v24  ;;  %v12332_v23 = vld [vmem:[%s14235_s25 + $0xa2c] ss:$16 sps:$4 sm:$0xff]   ;;  %v12405_v24 = vld [vmem:[#allocation2 + $0x144] ss:$144 sps:$4 sm:$0xff]  }
 0x1dc   : > { %7983 = vmatmul.mubr.bf16.gmra.mrb[4].mxu0 %v12311_v26  ;;  %8937 = vmatmul.mubr.bf16.gmra.mrb[4].mxu1 %v12311_v26  ;;  %v12330_v26 = vld [vmem:[%s14235_s25 + $0xa28] ss:$16 sps:$4 sm:$0xff]  }
 0x1dd   : > { %7998 = vmatpush1.bf16.msra.mxu0 %v12231_v25  ;;  %8952 = vmatpush1.bf16.msra.mxu1 %v12234_v27  ;;  %v12327_v25 = vld [vmem:[%s14235_s25 + $0xa20] ss:$16 sps:$4 sm:$0xff]   ;;  %v12335_v27 = vld [vmem:[%s14235_s25 + $0xa44] ss:$16 sps:$4 sm:$0xff]  }
 0x1de   : > { %7999 = vmatprep.subr.bf16.mxu0 %v12239_v28  ;;  %8953 = vmatprep.subr.bf16.mxu1 %v12242_v29  ;;  %v12338_v28 = vld [vmem:[%s14235_s25 + $0xa4c] ss:$16 sps:$4 sm:$0xff]   ;;  %v12413_v29 = vld [vmem:[#allocation2 + $0x140] ss:$144 sps:$4 sm:$0xff]  }
 0x1df   : > { %8025 = vmatprep.mubr.bf16.mxu0 %v12320_v30  ;;  %8979 = vmatprep.mubr.bf16.mxu1 %v12320_v30  ;;  %v12333_v30 = vld [vmem:[%s14235_s25 + $0xa40] ss:$16 sps:$4 sm:$0xff]  }
 0x1e1   : > { %8000 = vmatpush1.bf16.msra.mxu0 %v12237_v31  ;;  %8954 = vmatpush1.bf16.msra.mxu1 %v12240_v32  ;;  %v12336_v31 = vld [vmem:[%s14235_s25 + $0xa48] ss:$16 sps:$4 sm:$0xff]   ;;  %v12341_v32 = vld [vmem:[%s14235_s25 + $0xa64] ss:$16 sps:$4 sm:$0xff]  }
 0x1e2   : > { %8001 = vmatprep.subr.bf16.mxu0 %v12245_v33  ;;  %8955 = vmatprep.subr.bf16.mxu1 %v12248_v34  ;;  %v12344_v33 = vld [vmem:[%s14235_s25 + $0xa6c] ss:$16 sps:$4 sm:$0xff]  }
 0x1e3   : > { %v12422_v34 = vld [vmem:[#allocation2 + $0x2c] ss:$144 sps:$4 sm:$0xff]  }
 0x1e5   : > { %8002 = vmatpush1.bf16.msra.mxu0 %v12243_v35  ;;  %8956 = vmatpush1.bf16.msra.mxu1 %v12246_v36  ;;  %v12339_v35 = vld [vmem:[%s14235_s25 + $0xa60] ss:$16 sps:$4 sm:$0xff]   ;;  %v12342_v36 = vld [vmem:[%s14235_s25 + $0xa68] ss:$16 sps:$4 sm:$0xff]  }
 0x1e6   : > { %8003 = vmatprep.subr.bf16.mxu0 %v12251_v37  ;;  %8957 = vmatprep.subr.bf16.mxu1 %v12254_v38  ;;  %v12347_v37 = vld [vmem:[%s14235_s25 + $0xa84] ss:$16 sps:$4 sm:$0xff]   ;;  %v12350_v38 = vld [vmem:[%s14235_s25 + $0xa8c] ss:$16 sps:$4 sm:$0xff]  }
 0x1e9   : > { %8004 = vmatpush1.bf16.msra.mxu0 %v12249_v39  ;;  %8958 = vmatpush1.bf16.msra.mxu1 %v12252_v40  ;;  %v12345_v39 = vld [vmem:[%s14235_s25 + $0xa80] ss:$16 sps:$4 sm:$0xff]   ;;  %v12348_v40 = vld [vmem:[%s14235_s25 + $0xa88] ss:$16 sps:$4 sm:$0xff]  }
 0x1ea   : > { %8005 = vmatprep.subr.bf16.mxu0 %v12257_v41  ;;  %8959 = vmatprep.subr.bf16.mxu1 %v12260_v42  ;;  %v12353_v41 = vld [vmem:[%s14235_s25 + $0xaa4] ss:$16 sps:$4 sm:$0xff]   ;;  %v12356_v42 = vld [vmem:[%s14235_s25 + $0xaac] ss:$16 sps:$4 sm:$0xff]  }
 0x1ed   : > { %8006 = vmatpush1.bf16.msra.mxu0 %v12255_v43  ;;  %8960 = vmatpush1.bf16.msra.mxu1 %v12258_v44  ;;  %v12351_v43 = vld [vmem:[%s14235_s25 + $0xaa0] ss:$16 sps:$4 sm:$0xff]   ;;  %v12354_v44 = vld [vmem:[%s14235_s25 + $0xaa8] ss:$16 sps:$4 sm:$0xff]  }
 0x1ee   : > { %8007 = vmatprep.subr.bf16.mxu0 %v12263_v45  ;;  %8961 = vmatprep.subr.bf16.mxu1 %v12266_v46  ;;  %v12359_v45 = vld [vmem:[%s14235_s25 + $0xac4] ss:$16 sps:$4 sm:$0xff]   ;;  %v12362_v46 = vld [vmem:[%s14235_s25 + $0xacc] ss:$16 sps:$4 sm:$0xff]  }
 0x1f1   : > { %8008 = vmatpush1.bf16.msra.mxu0 %v12261_v47  ;;  %8962 = vmatpush1.bf16.msra.mxu1 %v12264_v48  ;;  %v12357_v47 = vld [vmem:[%s14235_s25 + $0xac0] ss:$16 sps:$4 sm:$0xff]   ;;  %v12360_v48 = vld [vmem:[%s14235_s25 + $0xac8] ss:$16 sps:$4 sm:$0xff]  }
 0x1f2   : > { %8009 = vmatprep.subr.bf16.mxu0 %v12269_v49  ;;  %8963 = vmatprep.subr.bf16.mxu1 %v12272_v50  ;;  %v12365_v49 = vld [vmem:[%s14235_s25 + $0xae4] ss:$16 sps:$4 sm:$0xff]   ;;  %v12368_v50 = vld [vmem:[%s14235_s25 + $0xaec] ss:$16 sps:$4 sm:$0xff]  }
 0x1f5   : > { %8010 = vmatpush1.bf16.msra.mxu0 %v12267_v51  ;;  %8964 = vmatpush1.bf16.msra.mxu1 %v12270_v52  ;;  %v12363_v51 = vld [vmem:[%s14235_s25 + $0xae0] ss:$16 sps:$4 sm:$0xff]   ;;  %v12366_v52 = vld [vmem:[%s14235_s25 + $0xae8] ss:$16 sps:$4 sm:$0xff]  }
 0x1f6   : > { %8011 = vmatprep.subr.bf16.mxu0 %v12275_v53  ;;  %8965 = vmatprep.subr.bf16.mxu1 %v12278_v54  ;;  %v12371_v53 = vld [vmem:[%s14235_s25 + $0xb04] ss:$16 sps:$4 sm:$0xff]   ;;  %v12374_v54 = vld [vmem:[%s14235_s25 + $0xb0c] ss:$16 sps:$4 sm:$0xff]  }
 0x1f9   : > { %8012 = vmatpush1.bf16.msra.mxu0 %v12273_v55  ;;  %8966 = vmatpush1.bf16.msra.mxu1 %v12276_v56  ;;  %v12369_v55 = vld [vmem:[%s14235_s25 + $0xb00] ss:$16 sps:$4 sm:$0xff]   ;;  %v12372_v56 = vld [vmem:[%s14235_s25 + $0xb08] ss:$16 sps:$4 sm:$0xff]  }
 0x1fa   : > { %8013 = vmatprep.subr.bf16.mxu0 %v12281_v57  ;;  %8967 = vmatprep.subr.bf16.mxu1 %v12284_v58  ;;  %v12377_v57 = vld [vmem:[%s14235_s25 + $0xb24] ss:$16 sps:$4 sm:$0xff]   ;;  %v12380_v58 = vld [vmem:[%s14235_s25 + $0xb2c] ss:$16 sps:$4 sm:$0xff]  }
 0x1fd   : > { %8014 = vmatpush1.bf16.msra.mxu0 %v12279_v59  ;;  %8968 = vmatpush1.bf16.msra.mxu1 %v12282_v60  ;;  %v12375_v59 = vld [vmem:[%s14235_s25 + $0xb20] ss:$16 sps:$4 sm:$0xff]   ;;  %v12378_v60 = vld [vmem:[%s14235_s25 + $0xb28] ss:$16 sps:$4 sm:$0xff]  }
 0x1fe   : > { %8015 = vmatprep.subr.bf16.mxu0 %v12287_v61  ;;  %8969 = vmatprep.subr.bf16.mxu1 %v12290_v62  ;;  %v12383_v61 = vld [vmem:[%s14235_s25 + $0xb44] ss:$16 sps:$4 sm:$0xff]   ;;  %v12386_v62 = vld [vmem:[%s14235_s25 + $0xb4c] ss:$16 sps:$4 sm:$0xff]  }
 0x201   : > { %8016 = vmatpush1.bf16.msra.mxu0 %v12285_v63  ;;  %8970 = vmatpush1.bf16.msra.mxu1 %v12288_v0  ;;  %v12381_v63 = vld [vmem:[%s14235_s25 + $0xb40] ss:$16 sps:$4 sm:$0xff]   ;;  %v12384_v0 = vld [vmem:[%s14235_s25 + $0xb48] ss:$16 sps:$4 sm:$0xff]  }
 0x202   : > { %8017 = vmatprep.subr.bf16.mxu0 %v12293_v1  ;;  %8971 = vmatprep.subr.bf16.mxu1 %v12296_v2  ;;  %v12389_v1 = vld [vmem:[%s14235_s25 + $0xb64] ss:$16 sps:$4 sm:$0xff]   ;;  %v12392_v2 = vld [vmem:[%s14235_s25 + $0xb6c] ss:$16 sps:$4 sm:$0xff]  }
 0x205   : > { %8018 = vmatpush1.bf16.msra.mxu0 %v12291_v3  ;;  %8972 = vmatpush1.bf16.msra.mxu1 %v12294_v4  ;;  %v12387_v3 = vld [vmem:[%s14235_s25 + $0xb60] ss:$16 sps:$4 sm:$0xff]   ;;  %v12390_v4 = vld [vmem:[%s14235_s25 + $0xb68] ss:$16 sps:$4 sm:$0xff]  }
 0x206   : > { %8019 = vmatprep.subr.bf16.mxu0 %v12299_v5  ;;  %8973 = vmatprep.subr.bf16.mxu1 %v12302_v6  ;;  %v12395_v5 = vld [vmem:[%s14235_s25 + $0xb84] ss:$16 sps:$4 sm:$0xff]   ;;  %v12398_v6 = vld [vmem:[%s14235_s25 + $0xb8c] ss:$16 sps:$4 sm:$0xff]  }
 0x209   : > { %8020 = vmatpush1.bf16.msra.mxu0 %v12297_v7  ;;  %8974 = vmatpush1.bf16.msra.mxu1 %v12300_v8  ;;  %v12393_v7 = vld [vmem:[%s14235_s25 + $0xb80] ss:$16 sps:$4 sm:$0xff]   ;;  %v12396_v8 = vld [vmem:[%s14235_s25 + $0xb88] ss:$16 sps:$4 sm:$0xff]  }
 0x20a   : > { %8021 = vmatprep.subr.bf16.mxu0 %v12307_v9  ;;  %8975 = vmatprep.subr.bf16.mxu1 %v12310_v10  ;;  %v12401_v9 = vld [vmem:[%s14235_s25 + $0xba4] ss:$16 sps:$4 sm:$0xff]   ;;  %v12404_v10 = vld [vmem:[%s14235_s25 + $0xbac] ss:$16 sps:$4 sm:$0xff]  }
 0x20d   : > { %8022 = vmatpush1.bf16.msra.mxu0 %v12305_v11  ;;  %8976 = vmatpush1.bf16.msra.mxu1 %v12308_v12  ;;  %v12399_v11 = vld [vmem:[%s14235_s25 + $0xba0] ss:$16 sps:$4 sm:$0xff]   ;;  %v12402_v12 = vld [vmem:[%s14235_s25 + $0xba8] ss:$16 sps:$4 sm:$0xff]  }
 0x20e   : > { %8023 = vmatprep.subr.bf16.mxu0 %v12314_v13  ;;  %8977 = vmatprep.subr.bf16.mxu1 %v12317_v14  ;;  %v12409_v13 = vld [vmem:[%s14235_s25 + $0xbc4] ss:$16 sps:$4 sm:$0xff]   ;;  %v12412_v14 = vld [vmem:[%s14235_s25 + $0xbcc] ss:$16 sps:$4 sm:$0xff]  }
 0x211   : > { %8024 = vmatpush1.bf16.msra.mxu0 %v12312_v15  ;;  %8978 = vmatpush1.bf16.msra.mxu1 %v12315_v16  ;;  %v12407_v15 = vld [vmem:[%s14235_s25 + $0xbc0] ss:$16 sps:$4 sm:$0xff]   ;;  %v12410_v16 = vld [vmem:[%s14235_s25 + $0xbc8] ss:$16 sps:$4 sm:$0xff]  }
 0x212   : > { %8046 = vmatprep.subr.bf16.mxu0 %v12323_v18  ;;  %9000 = vmatprep.subr.bf16.mxu1 %v12326_v19  ;;  %v12419_v18 = vld [vmem:[%s14235_s25 + $0xbec] ss:$16 sps:$4 sm:$0xff]   ;;  %v12414_v19 = vld [vmem:[%s14235_s25 + $0xbe0] ss:$16 sps:$4 sm:$0xff]  }
 0x214   : > { %8026 = vmatmul.mubr.bf16.vlgmr.msra.gmra.mrb[0].mxu0 %v12318_v17  ;;  %8980 = vmatmul.mubr.bf16.vlgmr.msra.gmra.mrb[0].mxu1 %v12318_v17  ;;  %v12416_v17 = vld [vmem:[%s14235_s25 + $0xbe4] ss:$16 sps:$4 sm:$0xff]  }
 0x215   : > { %8047 = vmatpush1.bf16.msra.mxu0 %v12321_v20  ;;  %9001 = vmatpush1.bf16.msra.mxu1 %v12324_v21  ;;  %v12417_v20 = vld [vmem:[%s14235_s25 + $0xbe8] ss:$16 sps:$4 sm:$0xff]  }
 0x216   : > { %8048 = vmatprep.subr.bf16.mxu0 %v12329_v22  ;;  %9002 = vmatprep.subr.bf16.mxu1 %v12332_v23  ;;  %v12420_v21 = vld [vmem:[#allocation2 + $0x28] ss:$144 sps:$4 sm:$0xff]   ;;  %v12425_v22 = vld [vmem:[%s14235_s25 + $0xc04] ss:$16 sps:$4 sm:$0xff]   ;;  %v12428_v23 = vld [vmem:[%s14235_s25 + $0xc0c] ss:$16 sps:$4 sm:$0xff]  }
 0x217   : > { %8035 = vmatprep.mubr.bf16.mxu0 %v12405_v24  ;;  %8989 = vmatprep.mubr.bf16.mxu1 %v12405_v24  ;;  %v12423_v24 = vld [vmem:[%s14235_s25 + $0xc00] ss:$16 sps:$4 sm:$0xff]  }
 0x219   : > { %8049 = vmatpush1.bf16.msra.mxu0 %v12327_v25  ;;  %9003 = vmatpush1.bf16.msra.mxu1 %v12330_v26  ;;  %v12426_v25 = vld [vmem:[%s14235_s25 + $0xc08] ss:$16 sps:$4 sm:$0xff]   ;;  %v12431_v26 = vld [vmem:[%s14235_s25 + $0xc24] ss:$16 sps:$4 sm:$0xff]  }
 0x21a   : > { %8050 = vmatprep.subr.bf16.mxu0 %v12335_v27  ;;  %9004 = vmatprep.subr.bf16.mxu1 %v12338_v28  ;;  %v12434_v27 = vld [vmem:[%s14235_s25 + $0xc2c] ss:$16 sps:$4 sm:$0xff]  }
 0x21b   : > { %v12507_v28 = vld [vmem:[#allocation2 + $0x14c] ss:$144 sps:$4 sm:$0xff]  }
 0x21c   : > { %8036 = vmatmul.mubr.bf16.gmra.mrb[4].mxu0 %v12413_v29  ;;  %8990 = vmatmul.mubr.bf16.gmra.mrb[4].mxu1 %v12413_v29  ;;  %v12429_v29 = vld [vmem:[%s14235_s25 + $0xc20] ss:$16 sps:$4 sm:$0xff]  }
 0x21d   : > { %8051 = vmatpush1.bf16.msra.mxu0 %v12333_v30  ;;  %9005 = vmatpush1.bf16.msra.mxu1 %v12336_v31  ;;  %v12432_v30 = vld [vmem:[%s14235_s25 + $0xc28] ss:$16 sps:$4 sm:$0xff]   ;;  %v12437_v31 = vld [vmem:[%s14235_s25 + $0xc44] ss:$16 sps:$4 sm:$0xff]  }
 0x21e   : > { %8052 = vmatprep.subr.bf16.mxu0 %v12341_v32  ;;  %9006 = vmatprep.subr.bf16.mxu1 %v12344_v33  ;;  %v12440_v32 = vld [vmem:[%s14235_s25 + $0xc4c] ss:$16 sps:$4 sm:$0xff]   ;;  %v12515_v33 = vld [vmem:[#allocation2 + $0x148] ss:$144 sps:$4 sm:$0xff]  }
 0x21f   : > { %8078 = vmatprep.mubr.bf16.mxu0 %v12422_v34  ;;  %9032 = vmatprep.mubr.bf16.mxu1 %v12422_v34  ;;  %v12435_v34 = vld [vmem:[%s14235_s25 + $0xc40] ss:$16 sps:$4 sm:$0xff]  }
 0x221   : > { %8053 = vmatpush1.bf16.msra.mxu0 %v12339_v35  ;;  %9007 = vmatpush1.bf16.msra.mxu1 %v12342_v36  ;;  %v12438_v35 = vld [vmem:[%s14235_s25 + $0xc48] ss:$16 sps:$4 sm:$0xff]   ;;  %v12443_v36 = vld [vmem:[%s14235_s25 + $0xc64] ss:$16 sps:$4 sm:$0xff]  }
 0x222   : > { %8054 = vmatprep.subr.bf16.mxu0 %v12347_v37  ;;  %9008 = vmatprep.subr.bf16.mxu1 %v12350_v38  ;;  %v12446_v37 = vld [vmem:[%s14235_s25 + $0xc6c] ss:$16 sps:$4 sm:$0xff]   ;;  %v12524_v38 = vld [vmem:[#allocation2 + $0x34] ss:$144 sps:$4 sm:$0xff]  }
 0x225   : > { %8055 = vmatpush1.bf16.msra.mxu0 %v12345_v39  ;;  %9009 = vmatpush1.bf16.msra.mxu1 %v12348_v40  ;;  %v12441_v39 = vld [vmem:[%s14235_s25 + $0xc60] ss:$16 sps:$4 sm:$0xff]   ;;  %v12444_v40 = vld [vmem:[%s14235_s25 + $0xc68] ss:$16 sps:$4 sm:$0xff]  }
 0x226   : > { %8056 = vmatprep.subr.bf16.mxu0 %v12353_v41  ;;  %9010 = vmatprep.subr.bf16.mxu1 %v12356_v42  ;;  %v12449_v41 = vld [vmem:[%s14235_s25 + $0xc84] ss:$16 sps:$4 sm:$0xff]   ;;  %v12452_v42 = vld [vmem:[%s14235_s25 + $0xc8c] ss:$16 sps:$4 sm:$0xff]  }
 0x229   : > { %8057 = vmatpush1.bf16.msra.mxu0 %v12351_v43  ;;  %9011 = vmatpush1.bf16.msra.mxu1 %v12354_v44  ;;  %v12447_v43 = vld [vmem:[%s14235_s25 + $0xc80] ss:$16 sps:$4 sm:$0xff]   ;;  %v12450_v44 = vld [vmem:[%s14235_s25 + $0xc88] ss:$16 sps:$4 sm:$0xff]  }
 0x22a   : > { %8058 = vmatprep.subr.bf16.mxu0 %v12359_v45  ;;  %9012 = vmatprep.subr.bf16.mxu1 %v12362_v46  ;;  %v12455_v45 = vld [vmem:[%s14235_s25 + $0xca4] ss:$16 sps:$4 sm:$0xff]   ;;  %v12458_v46 = vld [vmem:[%s14235_s25 + $0xcac] ss:$16 sps:$4 sm:$0xff]  }
 0x22d   : > { %8059 = vmatpush1.bf16.msra.mxu0 %v12357_v47  ;;  %9013 = vmatpush1.bf16.msra.mxu1 %v12360_v48  ;;  %v12453_v47 = vld [vmem:[%s14235_s25 + $0xca0] ss:$16 sps:$4 sm:$0xff]   ;;  %v12456_v48 = vld [vmem:[%s14235_s25 + $0xca8] ss:$16 sps:$4 sm:$0xff]  }
 0x22e   : > { %8060 = vmatprep.subr.bf16.mxu0 %v12365_v49  ;;  %9014 = vmatprep.subr.bf16.mxu1 %v12368_v50  ;;  %v12461_v49 = vld [vmem:[%s14235_s25 + $0xcc4] ss:$16 sps:$4 sm:$0xff]   ;;  %v12464_v50 = vld [vmem:[%s14235_s25 + $0xccc] ss:$16 sps:$4 sm:$0xff]  }
 0x231   : > { %8061 = vmatpush1.bf16.msra.mxu0 %v12363_v51  ;;  %9015 = vmatpush1.bf16.msra.mxu1 %v12366_v52  ;;  %v12459_v51 = vld [vmem:[%s14235_s25 + $0xcc0] ss:$16 sps:$4 sm:$0xff]   ;;  %v12462_v52 = vld [vmem:[%s14235_s25 + $0xcc8] ss:$16 sps:$4 sm:$0xff]  }
 0x232   : > { %8062 = vmatprep.subr.bf16.mxu0 %v12371_v53  ;;  %9016 = vmatprep.subr.bf16.mxu1 %v12374_v54  ;;  %v12467_v53 = vld [vmem:[%s14235_s25 + $0xce4] ss:$16 sps:$4 sm:$0xff]   ;;  %v12470_v54 = vld [vmem:[%s14235_s25 + $0xcec] ss:$16 sps:$4 sm:$0xff]  }
 0x235   : > { %8063 = vmatpush1.bf16.msra.mxu0 %v12369_v55  ;;  %9017 = vmatpush1.bf16.msra.mxu1 %v12372_v56  ;;  %v12465_v55 = vld [vmem:[%s14235_s25 + $0xce0] ss:$16 sps:$4 sm:$0xff]   ;;  %v12468_v56 = vld [vmem:[%s14235_s25 + $0xce8] ss:$16 sps:$4 sm:$0xff]  }
 0x236   : > { %8064 = vmatprep.subr.bf16.mxu0 %v12377_v57  ;;  %9018 = vmatprep.subr.bf16.mxu1 %v12380_v58  ;;  %v12473_v57 = vld [vmem:[%s14235_s25 + $0xd04] ss:$16 sps:$4 sm:$0xff]   ;;  %v12476_v58 = vld [vmem:[%s14235_s25 + $0xd0c] ss:$16 sps:$4 sm:$0xff]  }
 0x239   : > { %8065 = vmatpush1.bf16.msra.mxu0 %v12375_v59  ;;  %9019 = vmatpush1.bf16.msra.mxu1 %v12378_v60  ;;  %v12471_v59 = vld [vmem:[%s14235_s25 + $0xd00] ss:$16 sps:$4 sm:$0xff]   ;;  %v12474_v60 = vld [vmem:[%s14235_s25 + $0xd08] ss:$16 sps:$4 sm:$0xff]  }
 0x23a   : > { %8066 = vmatprep.subr.bf16.mxu0 %v12383_v61  ;;  %9020 = vmatprep.subr.bf16.mxu1 %v12386_v62  ;;  %v12479_v61 = vld [vmem:[%s14235_s25 + $0xd24] ss:$16 sps:$4 sm:$0xff]   ;;  %v12482_v62 = vld [vmem:[%s14235_s25 + $0xd2c] ss:$16 sps:$4 sm:$0xff]  }
 0x23d   : > { %8067 = vmatpush1.bf16.msra.mxu0 %v12381_v63  ;;  %9021 = vmatpush1.bf16.msra.mxu1 %v12384_v0  ;;  %v12477_v63 = vld [vmem:[%s14235_s25 + $0xd20] ss:$16 sps:$4 sm:$0xff]   ;;  %v12480_v0 = vld [vmem:[%s14235_s25 + $0xd28] ss:$16 sps:$4 sm:$0xff]  }
 0x23e   : > { %8068 = vmatprep.subr.bf16.mxu0 %v12389_v1  ;;  %9022 = vmatprep.subr.bf16.mxu1 %v12392_v2  ;;  %v12485_v1 = vld [vmem:[%s14235_s25 + $0xd44] ss:$16 sps:$4 sm:$0xff]   ;;  %v12488_v2 = vld [vmem:[%s14235_s25 + $0xd4c] ss:$16 sps:$4 sm:$0xff]  }
 0x241   : > { %8069 = vmatpush1.bf16.msra.mxu0 %v12387_v3  ;;  %9023 = vmatpush1.bf16.msra.mxu1 %v12390_v4  ;;  %v12483_v3 = vld [vmem:[%s14235_s25 + $0xd40] ss:$16 sps:$4 sm:$0xff]   ;;  %v12486_v4 = vld [vmem:[%s14235_s25 + $0xd48] ss:$16 sps:$4 sm:$0xff]  }
 0x242   : > { %8070 = vmatprep.subr.bf16.mxu0 %v12395_v5  ;;  %9024 = vmatprep.subr.bf16.mxu1 %v12398_v6  ;;  %v12491_v5 = vld [vmem:[%s14235_s25 + $0xd64] ss:$16 sps:$4 sm:$0xff]   ;;  %v12494_v6 = vld [vmem:[%s14235_s25 + $0xd6c] ss:$16 sps:$4 sm:$0xff]  }
 0x245   : > { %8071 = vmatpush1.bf16.msra.mxu0 %v12393_v7  ;;  %9025 = vmatpush1.bf16.msra.mxu1 %v12396_v8  ;;  %v12489_v7 = vld [vmem:[%s14235_s25 + $0xd60] ss:$16 sps:$4 sm:$0xff]   ;;  %v12492_v8 = vld [vmem:[%s14235_s25 + $0xd68] ss:$16 sps:$4 sm:$0xff]  }
 0x246   : > { %8072 = vmatprep.subr.bf16.mxu0 %v12401_v9  ;;  %9026 = vmatprep.subr.bf16.mxu1 %v12404_v10  ;;  %v12497_v9 = vld [vmem:[%s14235_s25 + $0xd84] ss:$16 sps:$4 sm:$0xff]   ;;  %v12500_v10 = vld [vmem:[%s14235_s25 + $0xd8c] ss:$16 sps:$4 sm:$0xff]  }
 0x249   : > { %8073 = vmatpush1.bf16.msra.mxu0 %v12399_v11  ;;  %9027 = vmatpush1.bf16.msra.mxu1 %v12402_v12  ;;  %v12495_v11 = vld [vmem:[%s14235_s25 + $0xd80] ss:$16 sps:$4 sm:$0xff]   ;;  %v12498_v12 = vld [vmem:[%s14235_s25 + $0xd88] ss:$16 sps:$4 sm:$0xff]  }
 0x24a   : > { %8074 = vmatprep.subr.bf16.mxu0 %v12409_v13  ;;  %9028 = vmatprep.subr.bf16.mxu1 %v12412_v14  ;;  %v12503_v13 = vld [vmem:[%s14235_s25 + $0xda4] ss:$16 sps:$4 sm:$0xff]   ;;  %v12506_v14 = vld [vmem:[%s14235_s25 + $0xdac] ss:$16 sps:$4 sm:$0xff]  }
 0x24d   : > { %8075 = vmatpush1.bf16.msra.mxu0 %v12407_v15  ;;  %9029 = vmatpush1.bf16.msra.mxu1 %v12410_v16  ;;  %v12501_v15 = vld [vmem:[%s14235_s25 + $0xda0] ss:$16 sps:$4 sm:$0xff]   ;;  %v12504_v16 = vld [vmem:[%s14235_s25 + $0xda8] ss:$16 sps:$4 sm:$0xff]  }
 0x24e   : > { %8076 = vmatprep.subr.bf16.mxu0 %v12416_v17  ;;  %9030 = vmatprep.subr.bf16.mxu1 %v12419_v18  ;;  %v12511_v17 = vld [vmem:[%s14235_s25 + $0xdc4] ss:$16 sps:$4 sm:$0xff]   ;;  %v12514_v18 = vld [vmem:[%s14235_s25 + $0xdcc] ss:$16 sps:$4 sm:$0xff]  }
 0x251   : > { %8077 = vmatpush1.bf16.msra.mxu0 %v12414_v19  ;;  %9031 = vmatpush1.bf16.msra.mxu1 %v12417_v20  ;;  %v12509_v19 = vld [vmem:[%s14235_s25 + $0xdc0] ss:$16 sps:$4 sm:$0xff]   ;;  %v12512_v20 = vld [vmem:[%s14235_s25 + $0xdc8] ss:$16 sps:$4 sm:$0xff]  }
 0x252   : > { %8099 = vmatprep.subr.bf16.mxu0 %v12425_v22  ;;  %9053 = vmatprep.subr.bf16.mxu1 %v12428_v23  ;;  %v12521_v22 = vld [vmem:[%s14235_s25 + $0xdec] ss:$16 sps:$4 sm:$0xff]   ;;  %v12516_v23 = vld [vmem:[%s14235_s25 + $0xde0] ss:$16 sps:$4 sm:$0xff]  }
 0x254   : > { %8079 = vmatmul.mubr.bf16.vlgmr.msra.gmra.mrb[0].mxu0 %v12420_v21  ;;  %9033 = vmatmul.mubr.bf16.vlgmr.msra.gmra.mrb[0].mxu1 %v12420_v21  ;;  %v12518_v21 = vld [vmem:[%s14235_s25 + $0xde4] ss:$16 sps:$4 sm:$0xff]  }
 0x255   : > { %8100 = vmatpush1.bf16.msra.mxu0 %v12423_v24  ;;  %9054 = vmatpush1.bf16.msra.mxu1 %v12426_v25  ;;  %v12519_v24 = vld [vmem:[%s14235_s25 + $0xde8] ss:$16 sps:$4 sm:$0xff]   ;;  %v12522_v25 = vld [vmem:[#allocation2 + $0x30] ss:$144 sps:$4 sm:$0xff]  }
 0x256   : > { %8101 = vmatprep.subr.bf16.mxu0 %v12431_v26  ;;  %9055 = vmatprep.subr.bf16.mxu1 %v12434_v27  ;;  %v12527_v26 = vld [vmem:[%s14235_s25 + $0xe04] ss:$16 sps:$4 sm:$0xff]   ;;  %v12530_v27 = vld [vmem:[%s14235_s25 + $0xe0c] ss:$16 sps:$4 sm:$0xff]  }
 0x257   : > { %8088 = vmatprep.mubr.bf16.mxu0 %v12507_v28  ;;  %9042 = vmatprep.mubr.bf16.mxu1 %v12507_v28  ;;  %v12525_v28 = vld [vmem:[%s14235_s25 + $0xe00] ss:$16 sps:$4 sm:$0xff]  }
 0x259   : > { %8102 = vmatpush1.bf16.msra.mxu0 %v12429_v29  ;;  %9056 = vmatpush1.bf16.msra.mxu1 %v12432_v30  ;;  %v12528_v29 = vld [vmem:[%s14235_s25 + $0xe08] ss:$16 sps:$4 sm:$0xff]   ;;  %v12533_v30 = vld [vmem:[%s14235_s25 + $0xe24] ss:$16 sps:$4 sm:$0xff]  }
 0x25a   : > { %8103 = vmatprep.subr.bf16.mxu0 %v12437_v31  ;;  %9057 = vmatprep.subr.bf16.mxu1 %v12440_v32  ;;  %v12536_v31 = vld [vmem:[%s14235_s25 + $0xe2c] ss:$16 sps:$4 sm:$0xff]   ;;  %v12609_v32 = vld [vmem:[#allocation2 + $0x154] ss:$144 sps:$4 sm:$0xff]  }
 0x25c   : > { %8089 = vmatmul.mubr.bf16.gmra.mrb[4].mxu0 %v12515_v33  ;;  %9043 = vmatmul.mubr.bf16.gmra.mrb[4].mxu1 %v12515_v33  ;;  %v12531_v33 = vld [vmem:[%s14235_s25 + $0xe20] ss:$16 sps:$4 sm:$0xff]  }
 0x25d   : > { %8104 = vmatpush1.bf16.msra.mxu0 %v12435_v34  ;;  %9058 = vmatpush1.bf16.msra.mxu1 %v12438_v35  ;;  %v12534_v34 = vld [vmem:[%s14235_s25 + $0xe28] ss:$16 sps:$4 sm:$0xff]   ;;  %v12539_v35 = vld [vmem:[%s14235_s25 + $0xe44] ss:$16 sps:$4 sm:$0xff]  }
 0x25e   : > { %8105 = vmatprep.subr.bf16.mxu0 %v12443_v36  ;;  %9059 = vmatprep.subr.bf16.mxu1 %v12446_v37  ;;  %v12542_v36 = vld [vmem:[%s14235_s25 + $0xe4c] ss:$16 sps:$4 sm:$0xff]   ;;  %v12617_v37 = vld [vmem:[#allocation2 + $0x150] ss:$144 sps:$4 sm:$0xff]  }
 0x25f   : > { %8131 = vmatprep.mubr.bf16.mxu0 %v12524_v38  ;;  %9085 = vmatprep.mubr.bf16.mxu1 %v12524_v38  ;;  %v12537_v38 = vld [vmem:[%s14235_s25 + $0xe40] ss:$16 sps:$4 sm:$0xff]  }
 0x261   : > { %8106 = vmatpush1.bf16.msra.mxu0 %v12441_v39  ;;  %9060 = vmatpush1.bf16.msra.mxu1 %v12444_v40  ;;  %v12540_v39 = vld [vmem:[%s14235_s25 + $0xe48] ss:$16 sps:$4 sm:$0xff]   ;;  %v12545_v40 = vld [vmem:[%s14235_s25 + $0xe64] ss:$16 sps:$4 sm:$0xff]  }
 0x262   : > { %8107 = vmatprep.subr.bf16.mxu0 %v12449_v41  ;;  %9061 = vmatprep.subr.bf16.mxu1 %v12452_v42  ;;  %v12548_v41 = vld [vmem:[%s14235_s25 + $0xe6c] ss:$16 sps:$4 sm:$0xff]  }
 0x263   : > { %v12626_v42 = vld [vmem:[#allocation2 + $0x3c] ss:$144 sps:$4 sm:$0xff]  }
 0x265   : > { %8108 = vmatpush1.bf16.msra.mxu0 %v12447_v43  ;;  %9062 = vmatpush1.bf16.msra.mxu1 %v12450_v44  ;;  %v12543_v43 = vld [vmem:[%s14235_s25 + $0xe60] ss:$16 sps:$4 sm:$0xff]   ;;  %v12546_v44 = vld [vmem:[%s14235_s25 + $0xe68] ss:$16 sps:$4 sm:$0xff]  }
 0x266   : > { %8109 = vmatprep.subr.bf16.mxu0 %v12455_v45  ;;  %9063 = vmatprep.subr.bf16.mxu1 %v12458_v46  ;;  %v12551_v45 = vld [vmem:[%s14235_s25 + $0xe84] ss:$16 sps:$4 sm:$0xff]   ;;  %v12554_v46 = vld [vmem:[%s14235_s25 + $0xe8c] ss:$16 sps:$4 sm:$0xff]  }
 0x269   : > { %8110 = vmatpush1.bf16.msra.mxu0 %v12453_v47  ;;  %9064 = vmatpush1.bf16.msra.mxu1 %v12456_v48  ;;  %v12549_v47 = vld [vmem:[%s14235_s25 + $0xe80] ss:$16 sps:$4 sm:$0xff]   ;;  %v12552_v48 = vld [vmem:[%s14235_s25 + $0xe88] ss:$16 sps:$4 sm:$0xff]  }
 0x26a   : > { %8111 = vmatprep.subr.bf16.mxu0 %v12461_v49  ;;  %9065 = vmatprep.subr.bf16.mxu1 %v12464_v50  ;;  %v12557_v49 = vld [vmem:[%s14235_s25 + $0xea4] ss:$16 sps:$4 sm:$0xff]   ;;  %v12560_v50 = vld [vmem:[%s14235_s25 + $0xeac] ss:$16 sps:$4 sm:$0xff]  }
 0x26d   : > { %8112 = vmatpush1.bf16.msra.mxu0 %v12459_v51  ;;  %9066 = vmatpush1.bf16.msra.mxu1 %v12462_v52  ;;  %v12555_v51 = vld [vmem:[%s14235_s25 + $0xea0] ss:$16 sps:$4 sm:$0xff]   ;;  %v12558_v52 = vld [vmem:[%s14235_s25 + $0xea8] ss:$16 sps:$4 sm:$0xff]  }
 0x26e   : > { %8113 = vmatprep.subr.bf16.mxu0 %v12467_v53  ;;  %9067 = vmatprep.subr.bf16.mxu1 %v12470_v54  ;;  %v12563_v53 = vld [vmem:[%s14235_s25 + $0xec4] ss:$16 sps:$4 sm:$0xff]   ;;  %v12566_v54 = vld [vmem:[%s14235_s25 + $0xecc] ss:$16 sps:$4 sm:$0xff]  }
 0x271   : > { %8114 = vmatpush1.bf16.msra.mxu0 %v12465_v55  ;;  %9068 = vmatpush1.bf16.msra.mxu1 %v12468_v56  ;;  %v12561_v55 = vld [vmem:[%s14235_s25 + $0xec0] ss:$16 sps:$4 sm:$0xff]   ;;  %v12564_v56 = vld [vmem:[%s14235_s25 + $0xec8] ss:$16 sps:$4 sm:$0xff]  }
 0x272   : > { %8115 = vmatprep.subr.bf16.mxu0 %v12473_v57  ;;  %9069 = vmatprep.subr.bf16.mxu1 %v12476_v58  ;;  %v12569_v57 = vld [vmem:[%s14235_s25 + $0xee4] ss:$16 sps:$4 sm:$0xff]   ;;  %v12572_v58 = vld [vmem:[%s14235_s25 + $0xeec] ss:$16 sps:$4 sm:$0xff]  }
 0x275   : > { %8116 = vmatpush1.bf16.msra.mxu0 %v12471_v59  ;;  %9070 = vmatpush1.bf16.msra.mxu1 %v12474_v60  ;;  %v12567_v59 = vld [vmem:[%s14235_s25 + $0xee0] ss:$16 sps:$4 sm:$0xff]   ;;  %v12570_v60 = vld [vmem:[%s14235_s25 + $0xee8] ss:$16 sps:$4 sm:$0xff]  }
 0x276   : > { %8117 = vmatprep.subr.bf16.mxu0 %v12479_v61  ;;  %9071 = vmatprep.subr.bf16.mxu1 %v12482_v62  ;;  %v12575_v61 = vld [vmem:[%s14235_s25 + $0xf04] ss:$16 sps:$4 sm:$0xff]   ;;  %v12578_v62 = vld [vmem:[%s14235_s25 + $0xf0c] ss:$16 sps:$4 sm:$0xff]  }
 0x279   : > { %8118 = vmatpush1.bf16.msra.mxu0 %v12477_v63  ;;  %9072 = vmatpush1.bf16.msra.mxu1 %v12480_v0  ;;  %v12573_v63 = vld [vmem:[%s14235_s25 + $0xf00] ss:$16 sps:$4 sm:$0xff]   ;;  %v12576_v0 = vld [vmem:[%s14235_s25 + $0xf08] ss:$16 sps:$4 sm:$0xff]  }
 0x27a   : > { %8119 = vmatprep.subr.bf16.mxu0 %v12485_v1  ;;  %9073 = vmatprep.subr.bf16.mxu1 %v12488_v2  ;;  %v12581_v1 = vld [vmem:[%s14235_s25 + $0xf24] ss:$16 sps:$4 sm:$0xff]   ;;  %v12584_v2 = vld [vmem:[%s14235_s25 + $0xf2c] ss:$16 sps:$4 sm:$0xff]  }
 0x27d   : > { %8120 = vmatpush1.bf16.msra.mxu0 %v12483_v3  ;;  %9074 = vmatpush1.bf16.msra.mxu1 %v12486_v4  ;;  %v12579_v3 = vld [vmem:[%s14235_s25 + $0xf20] ss:$16 sps:$4 sm:$0xff]   ;;  %v12582_v4 = vld [vmem:[%s14235_s25 + $0xf28] ss:$16 sps:$4 sm:$0xff]  }
 0x27e   : > { %8121 = vmatprep.subr.bf16.mxu0 %v12491_v5  ;;  %9075 = vmatprep.subr.bf16.mxu1 %v12494_v6  ;;  %v12587_v5 = vld [vmem:[%s14235_s25 + $0xf44] ss:$16 sps:$4 sm:$0xff]   ;;  %v12590_v6 = vld [vmem:[%s14235_s25 + $0xf4c] ss:$16 sps:$4 sm:$0xff]  }
 0x281   : > { %8122 = vmatpush1.bf16.msra.mxu0 %v12489_v7  ;;  %9076 = vmatpush1.bf16.msra.mxu1 %v12492_v8  ;;  %v12585_v7 = vld [vmem:[%s14235_s25 + $0xf40] ss:$16 sps:$4 sm:$0xff]   ;;  %v12588_v8 = vld [vmem:[%s14235_s25 + $0xf48] ss:$16 sps:$4 sm:$0xff]  }
 0x282   : > { %8123 = vmatprep.subr.bf16.mxu0 %v12497_v9  ;;  %9077 = vmatprep.subr.bf16.mxu1 %v12500_v10  ;;  %v12593_v9 = vld [vmem:[%s14235_s25 + $0xf64] ss:$16 sps:$4 sm:$0xff]   ;;  %v12596_v10 = vld [vmem:[%s14235_s25 + $0xf6c] ss:$16 sps:$4 sm:$0xff]  }
 0x285   : > { %8124 = vmatpush1.bf16.msra.mxu0 %v12495_v11  ;;  %9078 = vmatpush1.bf16.msra.mxu1 %v12498_v12  ;;  %v12591_v11 = vld [vmem:[%s14235_s25 + $0xf60] ss:$16 sps:$4 sm:$0xff]   ;;  %v12594_v12 = vld [vmem:[%s14235_s25 + $0xf68] ss:$16 sps:$4 sm:$0xff]  }
 0x286   : > { %8125 = vmatprep.subr.bf16.mxu0 %v12503_v13  ;;  %9079 = vmatprep.subr.bf16.mxu1 %v12506_v14  ;;  %v12599_v13 = vld [vmem:[%s14235_s25 + $0xf84] ss:$16 sps:$4 sm:$0xff]   ;;  %v12602_v14 = vld [vmem:[%s14235_s25 + $0xf8c] ss:$16 sps:$4 sm:$0xff]  }
 0x289   : > { %8126 = vmatpush1.bf16.msra.mxu0 %v12501_v15  ;;  %9080 = vmatpush1.bf16.msra.mxu1 %v12504_v16  ;;  %v12597_v15 = vld [vmem:[%s14235_s25 + $0xf80] ss:$16 sps:$4 sm:$0xff]   ;;  %v12600_v16 = vld [vmem:[%s14235_s25 + $0xf88] ss:$16 sps:$4 sm:$0xff]  }
 0x28a   : > { %8127 = vmatprep.subr.bf16.mxu0 %v12511_v17  ;;  %9081 = vmatprep.subr.bf16.mxu1 %v12514_v18  ;;  %v12605_v17 = vld [vmem:[%s14235_s25 + $0xfa4] ss:$16 sps:$4 sm:$0xff]   ;;  %v12608_v18 = vld [vmem:[%s14235_s25 + $0xfac] ss:$16 sps:$4 sm:$0xff]  }
 0x28d   : > { %8128 = vmatpush1.bf16.msra.mxu0 %v12509_v19  ;;  %9082 = vmatpush1.bf16.msra.mxu1 %v12512_v20  ;;  %v12603_v19 = vld [vmem:[%s14235_s25 + $0xfa0] ss:$16 sps:$4 sm:$0xff]   ;;  %v12606_v20 = vld [vmem:[%s14235_s25 + $0xfa8] ss:$16 sps:$4 sm:$0xff]  }
 0x28e   : > { %8129 = vmatprep.subr.bf16.mxu0 %v12518_v21  ;;  %9083 = vmatprep.subr.bf16.mxu1 %v12521_v22  ;;  %v12613_v21 = vld [vmem:[%s14235_s25 + $0xfc4] ss:$16 sps:$4 sm:$0xff]   ;;  %v12616_v22 = vld [vmem:[%s14235_s25 + $0xfcc] ss:$16 sps:$4 sm:$0xff]  }
 0x291   : > { %8130 = vmatpush1.bf16.msra.mxu0 %v12516_v23  ;;  %9084 = vmatpush1.bf16.msra.mxu1 %v12519_v24  ;;  %v12611_v23 = vld [vmem:[%s14235_s25 + $0xfc0] ss:$16 sps:$4 sm:$0xff]   ;;  %v12614_v24 = vld [vmem:[%s14235_s25 + $0xfc8] ss:$16 sps:$4 sm:$0xff]  }
 0x292   : > { %8152 = vmatprep.subr.bf16.mxu0 %v12527_v26  ;;  %9106 = vmatprep.subr.bf16.mxu1 %v12530_v27  ;;  %v12623_v26 = vld [vmem:[%s14235_s25 + $0xfec] ss:$16 sps:$4 sm:$0xff]   ;;  %v12618_v27 = vld [vmem:[%s14235_s25 + $0xfe0] ss:$16 sps:$4 sm:$0xff]  }
 0x294   : > { %8132 = vmatmul.mubr.bf16.vlgmr.msra.gmra.mrb[0].mxu0 %v12522_v25  ;;  %9086 = vmatmul.mubr.bf16.vlgmr.msra.gmra.mrb[0].mxu1 %v12522_v25  ;;  %v12620_v25 = vld [vmem:[%s14235_s25 + $0xfe4] ss:$16 sps:$4 sm:$0xff]  }
 0x295   : > { %8153 = vmatpush1.bf16.msra.mxu0 %v12525_v28  ;;  %9107 = vmatpush1.bf16.msra.mxu1 %v12528_v29  ;;  %v12621_v28 = vld [vmem:[%s14235_s25 + $0xfe8] ss:$16 sps:$4 sm:$0xff]  }
 0x296   : > { %8154 = vmatprep.subr.bf16.mxu0 %v12533_v30  ;;  %9108 = vmatprep.subr.bf16.mxu1 %v12536_v31  ;;  %v12624_v29 = vld [vmem:[#allocation2 + $0x38] ss:$144 sps:$4 sm:$0xff]   ;;  %v12629_v30 = vld [vmem:[%s14235_s25 + $0x1004] ss:$16 sps:$4 sm:$0xff]   ;;  %v12632_v31 = vld [vmem:[%s14235_s25 + $0x100c] ss:$16 sps:$4 sm:$0xff]  }
 0x297   : > { %8141 = vmatprep.mubr.bf16.mxu0 %v12609_v32  ;;  %9095 = vmatprep.mubr.bf16.mxu1 %v12609_v32  ;;  %v12627_v32 = vld [vmem:[%s14235_s25 + $0x1000] ss:$16 sps:$4 sm:$0xff]  }
 0x299   : > { %8155 = vmatpush1.bf16.msra.mxu0 %v12531_v33  ;;  %9109 = vmatpush1.bf16.msra.mxu1 %v12534_v34  ;;  %v12630_v33 = vld [vmem:[%s14235_s25 + $0x1008] ss:$16 sps:$4 sm:$0xff]   ;;  %v12635_v34 = vld [vmem:[%s14235_s25 + $0x1024] ss:$16 sps:$4 sm:$0xff]  }
 0x29a   : > { %8156 = vmatprep.subr.bf16.mxu0 %v12539_v35  ;;  %9110 = vmatprep.subr.bf16.mxu1 %v12542_v36  ;;  %v12638_v35 = vld [vmem:[%s14235_s25 + $0x102c] ss:$16 sps:$4 sm:$0xff]  }
 0x29b   : > { %v12711_v36 = vld [vmem:[#allocation2 + $0x15c] ss:$144 sps:$4 sm:$0xff]  }
 0x29c   : > { %8142 = vmatmul.mubr.bf16.gmra.mrb[4].mxu0 %v12617_v37  ;;  %9096 = vmatmul.mubr.bf16.gmra.mrb[4].mxu1 %v12617_v37  ;;  %v12633_v37 = vld [vmem:[%s14235_s25 + $0x1020] ss:$16 sps:$4 sm:$0xff]  }
 0x29d   : > { %8157 = vmatpush1.bf16.msra.mxu0 %v12537_v38  ;;  %9111 = vmatpush1.bf16.msra.mxu1 %v12540_v39  ;;  %v12636_v38 = vld [vmem:[%s14235_s25 + $0x1028] ss:$16 sps:$4 sm:$0xff]   ;;  %v12641_v39 = vld [vmem:[%s14235_s25 + $0x1044] ss:$16 sps:$4 sm:$0xff]  }
 0x29e   : > { %8158 = vmatprep.subr.bf16.mxu0 %v12545_v40  ;;  %9112 = vmatprep.subr.bf16.mxu1 %v12548_v41  ;;  %v12644_v40 = vld [vmem:[%s14235_s25 + $0x104c] ss:$16 sps:$4 sm:$0xff]   ;;  %v12719_v41 = vld [vmem:[#allocation2 + $0x158] ss:$144 sps:$4 sm:$0xff]  }
 0x29f   : > { %8184 = vmatprep.mubr.bf16.mxu0 %v12626_v42  ;;  %9138 = vmatprep.mubr.bf16.mxu1 %v12626_v42  ;;  %v12639_v42 = vld [vmem:[%s14235_s25 + $0x1040] ss:$16 sps:$4 sm:$0xff]  }
 0x2a1   : > { %8159 = vmatpush1.bf16.msra.mxu0 %v12543_v43  ;;  %9113 = vmatpush1.bf16.msra.mxu1 %v12546_v44  ;;  %v12642_v43 = vld [vmem:[%s14235_s25 + $0x1048] ss:$16 sps:$4 sm:$0xff]   ;;  %v12647_v44 = vld [vmem:[%s14235_s25 + $0x1064] ss:$16 sps:$4 sm:$0xff]  }
 0x2a2   : > { %8160 = vmatprep.subr.bf16.mxu0 %v12551_v45  ;;  %9114 = vmatprep.subr.bf16.mxu1 %v12554_v46  ;;  %v12650_v45 = vld [vmem:[%s14235_s25 + $0x106c] ss:$16 sps:$4 sm:$0xff]   ;;  %v12728_v46 = vld [vmem:[#allocation2 + $0x44] ss:$144 sps:$4 sm:$0xff]  }
 0x2a5   : > { %8161 = vmatpush1.bf16.msra.mxu0 %v12549_v47  ;;  %9115 = vmatpush1.bf16.msra.mxu1 %v12552_v48  ;;  %v12645_v47 = vld [vmem:[%s14235_s25 + $0x1060] ss:$16 sps:$4 sm:$0xff]   ;;  %v12648_v48 = vld [vmem:[%s14235_s25 + $0x1068] ss:$16 sps:$4 sm:$0xff]  }
 0x2a6   : > { %8162 = vmatprep.subr.bf16.mxu0 %v12557_v49  ;;  %9116 = vmatprep.subr.bf16.mxu1 %v12560_v50  ;;  %v12653_v49 = vld [vmem:[%s14235_s25 + $0x1084] ss:$16 sps:$4 sm:$0xff]   ;;  %v12656_v50 = vld [vmem:[%s14235_s25 + $0x108c] ss:$16 sps:$4 sm:$0xff]  }
 0x2a9   : > { %8163 = vmatpush1.bf16.msra.mxu0 %v12555_v51  ;;  %9117 = vmatpush1.bf16.msra.mxu1 %v12558_v52  ;;  %v12651_v51 = vld [vmem:[%s14235_s25 + $0x1080] ss:$16 sps:$4 sm:$0xff]   ;;  %v12654_v52 = vld [vmem:[%s14235_s25 + $0x1088] ss:$16 sps:$4 sm:$0xff]  }
 0x2aa   : > { %8164 = vmatprep.subr.bf16.mxu0 %v12563_v53  ;;  %9118 = vmatprep.subr.bf16.mxu1 %v12566_v54  ;;  %v12659_v53 = vld [vmem:[%s14235_s25 + $0x10a4] ss:$16 sps:$4 sm:$0xff]   ;;  %v12662_v54 = vld [vmem:[%s14235_s25 + $0x10ac] ss:$16 sps:$4 sm:$0xff]  }
 0x2ad   : > { %8165 = vmatpush1.bf16.msra.mxu0 %v12561_v55  ;;  %9119 = vmatpush1.bf16.msra.mxu1 %v12564_v56  ;;  %v12657_v55 = vld [vmem:[%s14235_s25 + $0x10a0] ss:$16 sps:$4 sm:$0xff]   ;;  %v12660_v56 = vld [vmem:[%s14235_s25 + $0x10a8] ss:$16 sps:$4 sm:$0xff]  }
 0x2ae   : > { %8166 = vmatprep.subr.bf16.mxu0 %v12569_v57  ;;  %9120 = vmatprep.subr.bf16.mxu1 %v12572_v58  ;;  %v12665_v57 = vld [vmem:[%s14235_s25 + $0x10c4] ss:$16 sps:$4 sm:$0xff]   ;;  %v12668_v58 = vld [vmem:[%s14235_s25 + $0x10cc] ss:$16 sps:$4 sm:$0xff]  }
 0x2b1   : > { %8167 = vmatpush1.bf16.msra.mxu0 %v12567_v59  ;;  %9121 = vmatpush1.bf16.msra.mxu1 %v12570_v60  ;;  %v12663_v59 = vld [vmem:[%s14235_s25 + $0x10c0] ss:$16 sps:$4 sm:$0xff]   ;;  %v12666_v60 = vld [vmem:[%s14235_s25 + $0x10c8] ss:$16 sps:$4 sm:$0xff]  }
 0x2b2   : > { %8168 = vmatprep.subr.bf16.mxu0 %v12575_v61  ;;  %9122 = vmatprep.subr.bf16.mxu1 %v12578_v62  ;;  %v12671_v61 = vld [vmem:[%s14235_s25 + $0x10e4] ss:$16 sps:$4 sm:$0xff]   ;;  %v12674_v62 = vld [vmem:[%s14235_s25 + $0x10ec] ss:$16 sps:$4 sm:$0xff]  }
 0x2b5   : > { %8169 = vmatpush1.bf16.msra.mxu0 %v12573_v63  ;;  %9123 = vmatpush1.bf16.msra.mxu1 %v12576_v0  ;;  %v12669_v63 = vld [vmem:[%s14235_s25 + $0x10e0] ss:$16 sps:$4 sm:$0xff]   ;;  %v12672_v0 = vld [vmem:[%s14235_s25 + $0x10e8] ss:$16 sps:$4 sm:$0xff]  }
 0x2b6   : > { %8170 = vmatprep.subr.bf16.mxu0 %v12581_v1  ;;  %9124 = vmatprep.subr.bf16.mxu1 %v12584_v2  ;;  %v12677_v1 = vld [vmem:[%s14235_s25 + $0x1104] ss:$16 sps:$4 sm:$0xff]   ;;  %v12680_v2 = vld [vmem:[%s14235_s25 + $0x110c] ss:$16 sps:$4 sm:$0xff]  }
 0x2b9   : > { %8171 = vmatpush1.bf16.msra.mxu0 %v12579_v3  ;;  %9125 = vmatpush1.bf16.msra.mxu1 %v12582_v4  ;;  %v12675_v3 = vld [vmem:[%s14235_s25 + $0x1100] ss:$16 sps:$4 sm:$0xff]   ;;  %v12678_v4 = vld [vmem:[%s14235_s25 + $0x1108] ss:$16 sps:$4 sm:$0xff]  }
 0x2ba   : > { %8172 = vmatprep.subr.bf16.mxu0 %v12587_v5  ;;  %9126 = vmatprep.subr.bf16.mxu1 %v12590_v6  ;;  %v12683_v5 = vld [vmem:[%s14235_s25 + $0x1124] ss:$16 sps:$4 sm:$0xff]   ;;  %v12686_v6 = vld [vmem:[%s14235_s25 + $0x112c] ss:$16 sps:$4 sm:$0xff]  }
 0x2bd   : > { %8173 = vmatpush1.bf16.msra.mxu0 %v12585_v7  ;;  %9127 = vmatpush1.bf16.msra.mxu1 %v12588_v8  ;;  %v12681_v7 = vld [vmem:[%s14235_s25 + $0x1120] ss:$16 sps:$4 sm:$0xff]   ;;  %v12684_v8 = vld [vmem:[%s14235_s25 + $0x1128] ss:$16 sps:$4 sm:$0xff]  }
 0x2be   : > { %8174 = vmatprep.subr.bf16.mxu0 %v12593_v9  ;;  %9128 = vmatprep.subr.bf16.mxu1 %v12596_v10  ;;  %v12689_v9 = vld [vmem:[%s14235_s25 + $0x1144] ss:$16 sps:$4 sm:$0xff]   ;;  %v12692_v10 = vld [vmem:[%s14235_s25 + $0x114c] ss:$16 sps:$4 sm:$0xff]  }
 0x2c1   : > { %8175 = vmatpush1.bf16.msra.mxu0 %v12591_v11  ;;  %9129 = vmatpush1.bf16.msra.mxu1 %v12594_v12  ;;  %v12687_v11 = vld [vmem:[%s14235_s25 + $0x1140] ss:$16 sps:$4 sm:$0xff]   ;;  %v12690_v12 = vld [vmem:[%s14235_s25 + $0x1148] ss:$16 sps:$4 sm:$0xff]  }
 0x2c2   : > { %8176 = vmatprep.subr.bf16.mxu0 %v12599_v13  ;;  %9130 = vmatprep.subr.bf16.mxu1 %v12602_v14  ;;  %v12695_v13 = vld [vmem:[%s14235_s25 + $0x1164] ss:$16 sps:$4 sm:$0xff]   ;;  %v12698_v14 = vld [vmem:[%s14235_s25 + $0x116c] ss:$16 sps:$4 sm:$0xff]  }
 0x2c5   : > { %8177 = vmatpush1.bf16.msra.mxu0 %v12597_v15  ;;  %9131 = vmatpush1.bf16.msra.mxu1 %v12600_v16  ;;  %v12693_v15 = vld [vmem:[%s14235_s25 + $0x1160] ss:$16 sps:$4 sm:$0xff]   ;;  %v12696_v16 = vld [vmem:[%s14235_s25 + $0x1168] ss:$16 sps:$4 sm:$0xff]  }
 0x2c6   : > { %8178 = vmatprep.subr.bf16.mxu0 %v12605_v17  ;;  %9132 = vmatprep.subr.bf16.mxu1 %v12608_v18  ;;  %v12701_v17 = vld [vmem:[%s14235_s25 + $0x1184] ss:$16 sps:$4 sm:$0xff]   ;;  %v12704_v18 = vld [vmem:[%s14235_s25 + $0x118c] ss:$16 sps:$4 sm:$0xff]  }
 0x2c9   : > { %8179 = vmatpush1.bf16.msra.mxu0 %v12603_v19  ;;  %9133 = vmatpush1.bf16.msra.mxu1 %v12606_v20  ;;  %v12699_v19 = vld [vmem:[%s14235_s25 + $0x1180] ss:$16 sps:$4 sm:$0xff]   ;;  %v12702_v20 = vld [vmem:[%s14235_s25 + $0x1188] ss:$16 sps:$4 sm:$0xff]  }
 0x2ca   : > { %8180 = vmatprep.subr.bf16.mxu0 %v12613_v21  ;;  %9134 = vmatprep.subr.bf16.mxu1 %v12616_v22  ;;  %v12707_v21 = vld [vmem:[%s14235_s25 + $0x11a4] ss:$16 sps:$4 sm:$0xff]   ;;  %v12710_v22 = vld [vmem:[%s14235_s25 + $0x11ac] ss:$16 sps:$4 sm:$0xff]  }
 0x2cd   : > { %8181 = vmatpush1.bf16.msra.mxu0 %v12611_v23  ;;  %9135 = vmatpush1.bf16.msra.mxu1 %v12614_v24  ;;  %v12705_v23 = vld [vmem:[%s14235_s25 + $0x11a0] ss:$16 sps:$4 sm:$0xff]   ;;  %v12708_v24 = vld [vmem:[%s14235_s25 + $0x11a8] ss:$16 sps:$4 sm:$0xff]  }
 0x2ce   : > { %8182 = vmatprep.subr.bf16.mxu0 %v12620_v25  ;;  %9136 = vmatprep.subr.bf16.mxu1 %v12623_v26  ;;  %v12715_v25 = vld [vmem:[%s14235_s25 + $0x11c4] ss:$16 sps:$4 sm:$0xff]   ;;  %v12718_v26 = vld [vmem:[%s14235_s25 + $0x11cc] ss:$16 sps:$4 sm:$0xff]  }
 0x2d1   : > { %8183 = vmatpush1.bf16.msra.mxu0 %v12618_v27  ;;  %9137 = vmatpush1.bf16.msra.mxu1 %v12621_v28  ;;  %v12713_v27 = vld [vmem:[%s14235_s25 + $0x11c0] ss:$16 sps:$4 sm:$0xff]   ;;  %v12716_v28 = vld [vmem:[%s14235_s25 + $0x11c8] ss:$16 sps:$4 sm:$0xff]  }
 0x2d2   : > { %8205 = vmatprep.subr.bf16.mxu0 %v12629_v30  ;;  %9159 = vmatprep.subr.bf16.mxu1 %v12632_v31  ;;  %v12725_v30 = vld [vmem:[%s14235_s25 + $0x11ec] ss:$16 sps:$4 sm:$0xff]   ;;  %v12720_v31 = vld [vmem:[%s14235_s25 + $0x11e0] ss:$16 sps:$4 sm:$0xff]  }
 0x2d4   : > { %8185 = vmatmul.mubr.bf16.vlgmr.msra.gmra.mrb[0].mxu0 %v12624_v29  ;;  %9139 = vmatmul.mubr.bf16.vlgmr.msra.gmra.mrb[0].mxu1 %v12624_v29  ;;  %v12722_v29 = vld [vmem:[%s14235_s25 + $0x11e4] ss:$16 sps:$4 sm:$0xff]  }
 0x2d5   : > { %8206 = vmatpush1.bf16.msra.mxu0 %v12627_v32  ;;  %9160 = vmatpush1.bf16.msra.mxu1 %v12630_v33  ;;  %v12723_v32 = vld [vmem:[%s14235_s25 + $0x11e8] ss:$16 sps:$4 sm:$0xff]   ;;  %v12726_v33 = vld [vmem:[#allocation2 + $0x40] ss:$144 sps:$4 sm:$0xff]  }
 0x2d6   : > { %8207 = vmatprep.subr.bf16.mxu0 %v12635_v34  ;;  %9161 = vmatprep.subr.bf16.mxu1 %v12638_v35  ;;  %v12731_v34 = vld [vmem:[%s14235_s25 + $0x1204] ss:$16 sps:$4 sm:$0xff]   ;;  %v12734_v35 = vld [vmem:[%s14235_s25 + $0x120c] ss:$16 sps:$4 sm:$0xff]  }
 0x2d7   : > { %8194 = vmatprep.mubr.bf16.mxu0 %v12711_v36  ;;  %9148 = vmatprep.mubr.bf16.mxu1 %v12711_v36  ;;  %v12729_v36 = vld [vmem:[%s14235_s25 + $0x1200] ss:$16 sps:$4 sm:$0xff]  }
 0x2d9   : > { %8208 = vmatpush1.bf16.msra.mxu0 %v12633_v37  ;;  %9162 = vmatpush1.bf16.msra.mxu1 %v12636_v38  ;;  %v12732_v37 = vld [vmem:[%s14235_s25 + $0x1208] ss:$16 sps:$4 sm:$0xff]   ;;  %v12737_v38 = vld [vmem:[%s14235_s25 + $0x1224] ss:$16 sps:$4 sm:$0xff]  }
 0x2da   : > { %8209 = vmatprep.subr.bf16.mxu0 %v12641_v39  ;;  %9163 = vmatprep.subr.bf16.mxu1 %v12644_v40  ;;  %v12740_v39 = vld [vmem:[%s14235_s25 + $0x122c] ss:$16 sps:$4 sm:$0xff]   ;;  %v12813_v40 = vld [vmem:[#allocation2 + $0x164] ss:$144 sps:$4 sm:$0xff]  }
 0x2dc   : > { %8195 = vmatmul.mubr.bf16.gmra.mrb[4].mxu0 %v12719_v41  ;;  %9149 = vmatmul.mubr.bf16.gmra.mrb[4].mxu1 %v12719_v41  ;;  %v12735_v41 = vld [vmem:[%s14235_s25 + $0x1220] ss:$16 sps:$4 sm:$0xff]  }
 0x2dd   : > { %8210 = vmatpush1.bf16.msra.mxu0 %v12639_v42  ;;  %9164 = vmatpush1.bf16.msra.mxu1 %v12642_v43  ;;  %v12738_v42 = vld [vmem:[%s14235_s25 + $0x1228] ss:$16 sps:$4 sm:$0xff]   ;;  %v12743_v43 = vld [vmem:[%s14235_s25 + $0x1244] ss:$16 sps:$4 sm:$0xff]  }
 0x2de   : > { %8211 = vmatprep.subr.bf16.mxu0 %v12647_v44  ;;  %9165 = vmatprep.subr.bf16.mxu1 %v12650_v45  ;;  %v12746_v44 = vld [vmem:[%s14235_s25 + $0x124c] ss:$16 sps:$4 sm:$0xff]   ;;  %v12821_v45 = vld [vmem:[#allocation2 + $0x160] ss:$144 sps:$4 sm:$0xff]  }
 0x2df   : > { %8237 = vmatprep.mubr.bf16.mxu0 %v12728_v46  ;;  %9191 = vmatprep.mubr.bf16.mxu1 %v12728_v46  ;;  %v12741_v46 = vld [vmem:[%s14235_s25 + $0x1240] ss:$16 sps:$4 sm:$0xff]  }
 0x2e1   : > { %8212 = vmatpush1.bf16.msra.mxu0 %v12645_v47  ;;  %9166 = vmatpush1.bf16.msra.mxu1 %v12648_v48  ;;  %v12744_v47 = vld [vmem:[%s14235_s25 + $0x1248] ss:$16 sps:$4 sm:$0xff]   ;;  %v12749_v48 = vld [vmem:[%s14235_s25 + $0x1264] ss:$16 sps:$4 sm:$0xff]  }
 0x2e2   : > { %8213 = vmatprep.subr.bf16.mxu0 %v12653_v49  ;;  %9167 = vmatprep.subr.bf16.mxu1 %v12656_v50  ;;  %v12752_v49 = vld [vmem:[%s14235_s25 + $0x126c] ss:$16 sps:$4 sm:$0xff]  }
 0x2e3   : > { %v12830_v50 = vld [vmem:[#allocation2 + $0x4c] ss:$144 sps:$4 sm:$0xff]  }
 0x2e5   : > { %8214 = vmatpush1.bf16.msra.mxu0 %v12651_v51  ;;  %9168 = vmatpush1.bf16.msra.mxu1 %v12654_v52  ;;  %v12747_v51 = vld [vmem:[%s14235_s25 + $0x1260] ss:$16 sps:$4 sm:$0xff]   ;;  %v12750_v52 = vld [vmem:[%s14235_s25 + $0x1268] ss:$16 sps:$4 sm:$0xff]  }
 0x2e6   : > { %8215 = vmatprep.subr.bf16.mxu0 %v12659_v53  ;;  %9169 = vmatprep.subr.bf16.mxu1 %v12662_v54  ;;  %v12755_v53 = vld [vmem:[%s14235_s25 + $0x1284] ss:$16 sps:$4 sm:$0xff]   ;;  %v12758_v54 = vld [vmem:[%s14235_s25 + $0x128c] ss:$16 sps:$4 sm:$0xff]  }
 0x2e9   : > { %8216 = vmatpush1.bf16.msra.mxu0 %v12657_v55  ;;  %9170 = vmatpush1.bf16.msra.mxu1 %v12660_v56  ;;  %v12753_v55 = vld [vmem:[%s14235_s25 + $0x1280] ss:$16 sps:$4 sm:$0xff]   ;;  %v12756_v56 = vld [vmem:[%s14235_s25 + $0x1288] ss:$16 sps:$4 sm:$0xff]  }
 0x2ea   : > { %8217 = vmatprep.subr.bf16.mxu0 %v12665_v57  ;;  %9171 = vmatprep.subr.bf16.mxu1 %v12668_v58  ;;  %v12761_v57 = vld [vmem:[%s14235_s25 + $0x12a4] ss:$16 sps:$4 sm:$0xff]   ;;  %v12764_v58 = vld [vmem:[%s14235_s25 + $0x12ac] ss:$16 sps:$4 sm:$0xff]  }
 0x2ed   : > { %8218 = vmatpush1.bf16.msra.mxu0 %v12663_v59  ;;  %9172 = vmatpush1.bf16.msra.mxu1 %v12666_v60  ;;  %v12759_v59 = vld [vmem:[%s14235_s25 + $0x12a0] ss:$16 sps:$4 sm:$0xff]   ;;  %v12762_v60 = vld [vmem:[%s14235_s25 + $0x12a8] ss:$16 sps:$4 sm:$0xff]  }
 0x2ee   : > { %8219 = vmatprep.subr.bf16.mxu0 %v12671_v61  ;;  %9173 = vmatprep.subr.bf16.mxu1 %v12674_v62  ;;  %v12767_v61 = vld [vmem:[%s14235_s25 + $0x12c4] ss:$16 sps:$4 sm:$0xff]   ;;  %v12770_v62 = vld [vmem:[%s14235_s25 + $0x12cc] ss:$16 sps:$4 sm:$0xff]  }
 0x2f1   : > { %8220 = vmatpush1.bf16.msra.mxu0 %v12669_v63  ;;  %9174 = vmatpush1.bf16.msra.mxu1 %v12672_v0  ;;  %v12765_v63 = vld [vmem:[%s14235_s25 + $0x12c0] ss:$16 sps:$4 sm:$0xff]   ;;  %v12768_v0 = vld [vmem:[%s14235_s25 + $0x12c8] ss:$16 sps:$4 sm:$0xff]  }
 0x2f2   : > { %8221 = vmatprep.subr.bf16.mxu0 %v12677_v1  ;;  %9175 = vmatprep.subr.bf16.mxu1 %v12680_v2  ;;  %v12773_v1 = vld [vmem:[%s14235_s25 + $0x12e4] ss:$16 sps:$4 sm:$0xff]   ;;  %v12776_v2 = vld [vmem:[%s14235_s25 + $0x12ec] ss:$16 sps:$4 sm:$0xff]  }
 0x2f5   : > { %8222 = vmatpush1.bf16.msra.mxu0 %v12675_v3  ;;  %9176 = vmatpush1.bf16.msra.mxu1 %v12678_v4  ;;  %v12771_v3 = vld [vmem:[%s14235_s25 + $0x12e0] ss:$16 sps:$4 sm:$0xff]   ;;  %v12774_v4 = vld [vmem:[%s14235_s25 + $0x12e8] ss:$16 sps:$4 sm:$0xff]  }
 0x2f6   : > { %8223 = vmatprep.subr.bf16.mxu0 %v12683_v5  ;;  %9177 = vmatprep.subr.bf16.mxu1 %v12686_v6  ;;  %v12779_v5 = vld [vmem:[%s14235_s25 + $0x1304] ss:$16 sps:$4 sm:$0xff]   ;;  %v12782_v6 = vld [vmem:[%s14235_s25 + $0x130c] ss:$16 sps:$4 sm:$0xff]  }
 0x2f9   : > { %8224 = vmatpush1.bf16.msra.mxu0 %v12681_v7  ;;  %9178 = vmatpush1.bf16.msra.mxu1 %v12684_v8  ;;  %v12777_v7 = vld [vmem:[%s14235_s25 + $0x1300] ss:$16 sps:$4 sm:$0xff]   ;;  %v12780_v8 = vld [vmem:[%s14235_s25 + $0x1308] ss:$16 sps:$4 sm:$0xff]  }
 0x2fa   : > { %8225 = vmatprep.subr.bf16.mxu0 %v12689_v9  ;;  %9179 = vmatprep.subr.bf16.mxu1 %v12692_v10  ;;  %v12785_v9 = vld [vmem:[%s14235_s25 + $0x1324] ss:$16 sps:$4 sm:$0xff]   ;;  %v12788_v10 = vld [vmem:[%s14235_s25 + $0x132c] ss:$16 sps:$4 sm:$0xff]  }
 0x2fd   : > { %8226 = vmatpush1.bf16.msra.mxu0 %v12687_v11  ;;  %9180 = vmatpush1.bf16.msra.mxu1 %v12690_v12  ;;  %v12783_v11 = vld [vmem:[%s14235_s25 + $0x1320] ss:$16 sps:$4 sm:$0xff]   ;;  %v12786_v12 = vld [vmem:[%s14235_s25 + $0x1328] ss:$16 sps:$4 sm:$0xff]  }
 0x2fe   : > { %8227 = vmatprep.subr.bf16.mxu0 %v12695_v13  ;;  %9181 = vmatprep.subr.bf16.mxu1 %v12698_v14  ;;  %v12791_v13 = vld [vmem:[%s14235_s25 + $0x1344] ss:$16 sps:$4 sm:$0xff]   ;;  %v12794_v14 = vld [vmem:[%s14235_s25 + $0x134c] ss:$16 sps:$4 sm:$0xff]  }
 0x301   : > { %8228 = vmatpush1.bf16.msra.mxu0 %v12693_v15  ;;  %9182 = vmatpush1.bf16.msra.mxu1 %v12696_v16  ;;  %v12789_v15 = vld [vmem:[%s14235_s25 + $0x1340] ss:$16 sps:$4 sm:$0xff]   ;;  %v12792_v16 = vld [vmem:[%s14235_s25 + $0x1348] ss:$16 sps:$4 sm:$0xff]  }
 0x302   : > { %8229 = vmatprep.subr.bf16.mxu0 %v12701_v17  ;;  %9183 = vmatprep.subr.bf16.mxu1 %v12704_v18  ;;  %v12797_v17 = vld [vmem:[%s14235_s25 + $0x1364] ss:$16 sps:$4 sm:$0xff]   ;;  %v12800_v18 = vld [vmem:[%s14235_s25 + $0x136c] ss:$16 sps:$4 sm:$0xff]  }
 0x305   : > { %8230 = vmatpush1.bf16.msra.mxu0 %v12699_v19  ;;  %9184 = vmatpush1.bf16.msra.mxu1 %v12702_v20  ;;  %v12795_v19 = vld [vmem:[%s14235_s25 + $0x1360] ss:$16 sps:$4 sm:$0xff]   ;;  %v12798_v20 = vld [vmem:[%s14235_s25 + $0x1368] ss:$16 sps:$4 sm:$0xff]  }
 0x306   : > { %8231 = vmatprep.subr.bf16.mxu0 %v12707_v21  ;;  %9185 = vmatprep.subr.bf16.mxu1 %v12710_v22  ;;  %v12803_v21 = vld [vmem:[%s14235_s25 + $0x1384] ss:$16 sps:$4 sm:$0xff]   ;;  %v12806_v22 = vld [vmem:[%s14235_s25 + $0x138c] ss:$16 sps:$4 sm:$0xff]  }
 0x309   : > { %8232 = vmatpush1.bf16.msra.mxu0 %v12705_v23  ;;  %9186 = vmatpush1.bf16.msra.mxu1 %v12708_v24  ;;  %v12801_v23 = vld [vmem:[%s14235_s25 + $0x1380] ss:$16 sps:$4 sm:$0xff]   ;;  %v12804_v24 = vld [vmem:[%s14235_s25 + $0x1388] ss:$16 sps:$4 sm:$0xff]  }
 0x30a   : > { %8233 = vmatprep.subr.bf16.mxu0 %v12715_v25  ;;  %9187 = vmatprep.subr.bf16.mxu1 %v12718_v26  ;;  %v12809_v25 = vld [vmem:[%s14235_s25 + $0x13a4] ss:$16 sps:$4 sm:$0xff]   ;;  %v12812_v26 = vld [vmem:[%s14235_s25 + $0x13ac] ss:$16 sps:$4 sm:$0xff]  }
 0x30d   : > { %8234 = vmatpush1.bf16.msra.mxu0 %v12713_v27  ;;  %9188 = vmatpush1.bf16.msra.mxu1 %v12716_v28  ;;  %v12807_v27 = vld [vmem:[%s14235_s25 + $0x13a0] ss:$16 sps:$4 sm:$0xff]   ;;  %v12810_v28 = vld [vmem:[%s14235_s25 + $0x13a8] ss:$16 sps:$4 sm:$0xff]  }
 0x30e   : > { %8235 = vmatprep.subr.bf16.mxu0 %v12722_v29  ;;  %9189 = vmatprep.subr.bf16.mxu1 %v12725_v30  ;;  %v12817_v29 = vld [vmem:[%s14235_s25 + $0x13c4] ss:$16 sps:$4 sm:$0xff]   ;;  %v12820_v30 = vld [vmem:[%s14235_s25 + $0x13cc] ss:$16 sps:$4 sm:$0xff]  }
 0x311   : > { %8236 = vmatpush1.bf16.msra.mxu0 %v12720_v31  ;;  %9190 = vmatpush1.bf16.msra.mxu1 %v12723_v32  ;;  %v12815_v31 = vld [vmem:[%s14235_s25 + $0x13c0] ss:$16 sps:$4 sm:$0xff]   ;;  %v12818_v32 = vld [vmem:[%s14235_s25 + $0x13c8] ss:$16 sps:$4 sm:$0xff]  }
 0x312   : > { %8258 = vmatprep.subr.bf16.mxu0 %v12731_v34  ;;  %9212 = vmatprep.subr.bf16.mxu1 %v12734_v35  ;;  %v12827_v34 = vld [vmem:[%s14235_s25 + $0x13ec] ss:$16 sps:$4 sm:$0xff]   ;;  %v12822_v35 = vld [vmem:[%s14235_s25 + $0x13e0] ss:$16 sps:$4 sm:$0xff]  }
 0x314   : > { %8238 = vmatmul.mubr.bf16.vlgmr.msra.gmra.mrb[0].mxu0 %v12726_v33  ;;  %9192 = vmatmul.mubr.bf16.vlgmr.msra.gmra.mrb[0].mxu1 %v12726_v33  ;;  %v12824_v33 = vld [vmem:[%s14235_s25 + $0x13e4] ss:$16 sps:$4 sm:$0xff]  }
 0x315   : > { %8259 = vmatpush1.bf16.msra.mxu0 %v12729_v36  ;;  %9213 = vmatpush1.bf16.msra.mxu1 %v12732_v37  ;;  %v12825_v36 = vld [vmem:[%s14235_s25 + $0x13e8] ss:$16 sps:$4 sm:$0xff]  }
 0x316   : > { %8260 = vmatprep.subr.bf16.mxu0 %v12737_v38  ;;  %9214 = vmatprep.subr.bf16.mxu1 %v12740_v39  ;;  %v12828_v37 = vld [vmem:[#allocation2 + $0x48] ss:$144 sps:$4 sm:$0xff]   ;;  %v12833_v38 = vld [vmem:[%s14235_s25 + $0x1404] ss:$16 sps:$4 sm:$0xff]   ;;  %v12836_v39 = vld [vmem:[%s14235_s25 + $0x140c] ss:$16 sps:$4 sm:$0xff]  }
 0x317   : > { %8247 = vmatprep.mubr.bf16.mxu0 %v12813_v40  ;;  %9201 = vmatprep.mubr.bf16.mxu1 %v12813_v40  ;;  %v12831_v40 = vld [vmem:[%s14235_s25 + $0x1400] ss:$16 sps:$4 sm:$0xff]  }
 0x319   : > { %8261 = vmatpush1.bf16.msra.mxu0 %v12735_v41  ;;  %9215 = vmatpush1.bf16.msra.mxu1 %v12738_v42  ;;  %v12834_v41 = vld [vmem:[%s14235_s25 + $0x1408] ss:$16 sps:$4 sm:$0xff]   ;;  %v12839_v42 = vld [vmem:[%s14235_s25 + $0x1424] ss:$16 sps:$4 sm:$0xff]  }
 0x31a   : > { %8262 = vmatprep.subr.bf16.mxu0 %v12743_v43  ;;  %9216 = vmatprep.subr.bf16.mxu1 %v12746_v44  ;;  %v12842_v43 = vld [vmem:[%s14235_s25 + $0x142c] ss:$16 sps:$4 sm:$0xff]  }
 0x31b   : > { %v12915_v44 = vld [vmem:[#allocation2 + $0x16c] ss:$144 sps:$4 sm:$0xff]  }
 0x31c   : > { %8248 = vmatmul.mubr.bf16.gmra.mrb[4].mxu0 %v12821_v45  ;;  %9202 = vmatmul.mubr.bf16.gmra.mrb[4].mxu1 %v12821_v45  ;;  %v12837_v45 = vld [vmem:[%s14235_s25 + $0x1420] ss:$16 sps:$4 sm:$0xff]  }
 0x31d   : > { %8263 = vmatpush1.bf16.msra.mxu0 %v12741_v46  ;;  %9217 = vmatpush1.bf16.msra.mxu1 %v12744_v47  ;;  %v12840_v46 = vld [vmem:[%s14235_s25 + $0x1428] ss:$16 sps:$4 sm:$0xff]   ;;  %v12845_v47 = vld [vmem:[%s14235_s25 + $0x1444] ss:$16 sps:$4 sm:$0xff]  }
 0x31e   : > { %8264 = vmatprep.subr.bf16.mxu0 %v12749_v48  ;;  %9218 = vmatprep.subr.bf16.mxu1 %v12752_v49  ;;  %v12848_v48 = vld [vmem:[%s14235_s25 + $0x144c] ss:$16 sps:$4 sm:$0xff]   ;;  %v12923_v49 = vld [vmem:[#allocation2 + $0x168] ss:$144 sps:$4 sm:$0xff]  }
 0x31f   : > { %8290 = vmatprep.mubr.bf16.mxu0 %v12830_v50  ;;  %9244 = vmatprep.mubr.bf16.mxu1 %v12830_v50  ;;  %v12843_v50 = vld [vmem:[%s14235_s25 + $0x1440] ss:$16 sps:$4 sm:$0xff]  }
 0x321   : > { %8265 = vmatpush1.bf16.msra.mxu0 %v12747_v51  ;;  %9219 = vmatpush1.bf16.msra.mxu1 %v12750_v52  ;;  %v12846_v51 = vld [vmem:[%s14235_s25 + $0x1448] ss:$16 sps:$4 sm:$0xff]   ;;  %v12851_v52 = vld [vmem:[%s14235_s25 + $0x1464] ss:$16 sps:$4 sm:$0xff]  }
 0x322   : > { %8266 = vmatprep.subr.bf16.mxu0 %v12755_v53  ;;  %9220 = vmatprep.subr.bf16.mxu1 %v12758_v54  ;;  %v12854_v53 = vld [vmem:[%s14235_s25 + $0x146c] ss:$16 sps:$4 sm:$0xff]   ;;  %v12932_v54 = vld [vmem:[#allocation2 + $0x54] ss:$144 sps:$4 sm:$0xff]  }
 0x325   : > { %8267 = vmatpush1.bf16.msra.mxu0 %v12753_v55  ;;  %9221 = vmatpush1.bf16.msra.mxu1 %v12756_v56  ;;  %v12849_v55 = vld [vmem:[%s14235_s25 + $0x1460] ss:$16 sps:$4 sm:$0xff]   ;;  %v12852_v56 = vld [vmem:[%s14235_s25 + $0x1468] ss:$16 sps:$4 sm:$0xff]  }
 0x326   : > { %8268 = vmatprep.subr.bf16.mxu0 %v12761_v57  ;;  %9222 = vmatprep.subr.bf16.mxu1 %v12764_v58  ;;  %v12857_v57 = vld [vmem:[%s14235_s25 + $0x1484] ss:$16 sps:$4 sm:$0xff]   ;;  %v12860_v58 = vld [vmem:[%s14235_s25 + $0x148c] ss:$16 sps:$4 sm:$0xff]  }
 0x329   : > { %8269 = vmatpush1.bf16.msra.mxu0 %v12759_v59  ;;  %9223 = vmatpush1.bf16.msra.mxu1 %v12762_v60  ;;  %v12855_v59 = vld [vmem:[%s14235_s25 + $0x1480] ss:$16 sps:$4 sm:$0xff]   ;;  %v12858_v60 = vld [vmem:[%s14235_s25 + $0x1488] ss:$16 sps:$4 sm:$0xff]  }
 0x32a   : > { %8270 = vmatprep.subr.bf16.mxu0 %v12767_v61  ;;  %9224 = vmatprep.subr.bf16.mxu1 %v12770_v62  ;;  %v12863_v61 = vld [vmem:[%s14235_s25 + $0x14a4] ss:$16 sps:$4 sm:$0xff]   ;;  %v12866_v62 = vld [vmem:[%s14235_s25 + $0x14ac] ss:$16 sps:$4 sm:$0xff]  }
 0x32d   : > { %8271 = vmatpush1.bf16.msra.mxu0 %v12765_v63  ;;  %9225 = vmatpush1.bf16.msra.mxu1 %v12768_v0  ;;  %v12861_v63 = vld [vmem:[%s14235_s25 + $0x14a0] ss:$16 sps:$4 sm:$0xff]   ;;  %v12864_v0 = vld [vmem:[%s14235_s25 + $0x14a8] ss:$16 sps:$4 sm:$0xff]  }
 0x32e   : > { %8272 = vmatprep.subr.bf16.mxu0 %v12773_v1  ;;  %9226 = vmatprep.subr.bf16.mxu1 %v12776_v2  ;;  %v12869_v1 = vld [vmem:[%s14235_s25 + $0x14c4] ss:$16 sps:$4 sm:$0xff]   ;;  %v12872_v2 = vld [vmem:[%s14235_s25 + $0x14cc] ss:$16 sps:$4 sm:$0xff]  }
 0x331   : > { %8273 = vmatpush1.bf16.msra.mxu0 %v12771_v3  ;;  %9227 = vmatpush1.bf16.msra.mxu1 %v12774_v4  ;;  %v12867_v3 = vld [vmem:[%s14235_s25 + $0x14c0] ss:$16 sps:$4 sm:$0xff]   ;;  %v12870_v4 = vld [vmem:[%s14235_s25 + $0x14c8] ss:$16 sps:$4 sm:$0xff]  }
 0x332   : > { %8274 = vmatprep.subr.bf16.mxu0 %v12779_v5  ;;  %9228 = vmatprep.subr.bf16.mxu1 %v12782_v6  ;;  %v12875_v5 = vld [vmem:[%s14235_s25 + $0x14e4] ss:$16 sps:$4 sm:$0xff]   ;;  %v12878_v6 = vld [vmem:[%s14235_s25 + $0x14ec] ss:$16 sps:$4 sm:$0xff]  }
 0x335   : > { %8275 = vmatpush1.bf16.msra.mxu0 %v12777_v7  ;;  %9229 = vmatpush1.bf16.msra.mxu1 %v12780_v8  ;;  %v12873_v7 = vld [vmem:[%s14235_s25 + $0x14e0] ss:$16 sps:$4 sm:$0xff]   ;;  %v12876_v8 = vld [vmem:[%s14235_s25 + $0x14e8] ss:$16 sps:$4 sm:$0xff]  }
 0x336   : > { %8276 = vmatprep.subr.bf16.mxu0 %v12785_v9  ;;  %9230 = vmatprep.subr.bf16.mxu1 %v12788_v10  ;;  %v12881_v9 = vld [vmem:[%s14235_s25 + $0x1504] ss:$16 sps:$4 sm:$0xff]   ;;  %v12884_v10 = vld [vmem:[%s14235_s25 + $0x150c] ss:$16 sps:$4 sm:$0xff]  }
 0x339   : > { %8277 = vmatpush1.bf16.msra.mxu0 %v12783_v11  ;;  %9231 = vmatpush1.bf16.msra.mxu1 %v12786_v12  ;;  %v12879_v11 = vld [vmem:[%s14235_s25 + $0x1500] ss:$16 sps:$4 sm:$0xff]   ;;  %v12882_v12 = vld [vmem:[%s14235_s25 + $0x1508] ss:$16 sps:$4 sm:$0xff]  }
 0x33a   : > { %8278 = vmatprep.subr.bf16.mxu0 %v12791_v13  ;;  %9232 = vmatprep.subr.bf16.mxu1 %v12794_v14  ;;  %v12887_v13 = vld [vmem:[%s14235_s25 + $0x1524] ss:$16 sps:$4 sm:$0xff]   ;;  %v12890_v14 = vld [vmem:[%s14235_s25 + $0x152c] ss:$16 sps:$4 sm:$0xff]  }
 0x33d   : > { %8279 = vmatpush1.bf16.msra.mxu0 %v12789_v15  ;;  %9233 = vmatpush1.bf16.msra.mxu1 %v12792_v16  ;;  %v12885_v15 = vld [vmem:[%s14235_s25 + $0x1520] ss:$16 sps:$4 sm:$0xff]   ;;  %v12888_v16 = vld [vmem:[%s14235_s25 + $0x1528] ss:$16 sps:$4 sm:$0xff]  }
 0x33e   : > { %8280 = vmatprep.subr.bf16.mxu0 %v12797_v17  ;;  %9234 = vmatprep.subr.bf16.mxu1 %v12800_v18  ;;  %v12893_v17 = vld [vmem:[%s14235_s25 + $0x1544] ss:$16 sps:$4 sm:$0xff]   ;;  %v12896_v18 = vld [vmem:[%s14235_s25 + $0x154c] ss:$16 sps:$4 sm:$0xff]  }
 0x341   : > { %8281 = vmatpush1.bf16.msra.mxu0 %v12795_v19  ;;  %9235 = vmatpush1.bf16.msra.mxu1 %v12798_v20  ;;  %v12891_v19 = vld [vmem:[%s14235_s25 + $0x1540] ss:$16 sps:$4 sm:$0xff]   ;;  %v12894_v20 = vld [vmem:[%s14235_s25 + $0x1548] ss:$16 sps:$4 sm:$0xff]  }
 0x342   : > { %8282 = vmatprep.subr.bf16.mxu0 %v12803_v21  ;;  %9236 = vmatprep.subr.bf16.mxu1 %v12806_v22  ;;  %v12899_v21 = vld [vmem:[%s14235_s25 + $0x1564] ss:$16 sps:$4 sm:$0xff]   ;;  %v12902_v22 = vld [vmem:[%s14235_s25 + $0x156c] ss:$16 sps:$4 sm:$0xff]  }
 0x345   : > { %8283 = vmatpush1.bf16.msra.mxu0 %v12801_v23  ;;  %9237 = vmatpush1.bf16.msra.mxu1 %v12804_v24  ;;  %v12897_v23 = vld [vmem:[%s14235_s25 + $0x1560] ss:$16 sps:$4 sm:$0xff]   ;;  %v12900_v24 = vld [vmem:[%s14235_s25 + $0x1568] ss:$16 sps:$4 sm:$0xff]  }
 0x346   : > { %8284 = vmatprep.subr.bf16.mxu0 %v12809_v25  ;;  %9238 = vmatprep.subr.bf16.mxu1 %v12812_v26  ;;  %v12905_v25 = vld [vmem:[%s14235_s25 + $0x1584] ss:$16 sps:$4 sm:$0xff]   ;;  %v12908_v26 = vld [vmem:[%s14235_s25 + $0x158c] ss:$16 sps:$4 sm:$0xff]  }
 0x349   : > { %8285 = vmatpush1.bf16.msra.mxu0 %v12807_v27  ;;  %9239 = vmatpush1.bf16.msra.mxu1 %v12810_v28  ;;  %v12903_v27 = vld [vmem:[%s14235_s25 + $0x1580] ss:$16 sps:$4 sm:$0xff]   ;;  %v12906_v28 = vld [vmem:[%s14235_s25 + $0x1588] ss:$16 sps:$4 sm:$0xff]  }
 0x34a   : > { %8286 = vmatprep.subr.bf16.mxu0 %v12817_v29  ;;  %9240 = vmatprep.subr.bf16.mxu1 %v12820_v30  ;;  %v12911_v29 = vld [vmem:[%s14235_s25 + $0x15a4] ss:$16 sps:$4 sm:$0xff]   ;;  %v12914_v30 = vld [vmem:[%s14235_s25 + $0x15ac] ss:$16 sps:$4 sm:$0xff]  }
 0x34d   : > { %8287 = vmatpush1.bf16.msra.mxu0 %v12815_v31  ;;  %9241 = vmatpush1.bf16.msra.mxu1 %v12818_v32  ;;  %v12909_v31 = vld [vmem:[%s14235_s25 + $0x15a0] ss:$16 sps:$4 sm:$0xff]   ;;  %v12912_v32 = vld [vmem:[%s14235_s25 + $0x15a8] ss:$16 sps:$4 sm:$0xff]  }
 0x34e   : > { %8288 = vmatprep.subr.bf16.mxu0 %v12824_v33  ;;  %9242 = vmatprep.subr.bf16.mxu1 %v12827_v34  ;;  %v12919_v33 = vld [vmem:[%s14235_s25 + $0x15c4] ss:$16 sps:$4 sm:$0xff]   ;;  %v12922_v34 = vld [vmem:[%s14235_s25 + $0x15cc] ss:$16 sps:$4 sm:$0xff]  }
 0x351   : > { %8289 = vmatpush1.bf16.msra.mxu0 %v12822_v35  ;;  %9243 = vmatpush1.bf16.msra.mxu1 %v12825_v36  ;;  %v12917_v35 = vld [vmem:[%s14235_s25 + $0x15c0] ss:$16 sps:$4 sm:$0xff]   ;;  %v12920_v36 = vld [vmem:[%s14235_s25 + $0x15c8] ss:$16 sps:$4 sm:$0xff]  }
 0x352   : > { %8311 = vmatprep.subr.bf16.mxu0 %v12833_v38  ;;  %9265 = vmatprep.subr.bf16.mxu1 %v12836_v39  ;;  %v12929_v38 = vld [vmem:[%s14235_s25 + $0x15ec] ss:$16 sps:$4 sm:$0xff]   ;;  %v12924_v39 = vld [vmem:[%s14235_s25 + $0x15e0] ss:$16 sps:$4 sm:$0xff]  }
 0x354   : > { %8291 = vmatmul.mubr.bf16.vlgmr.msra.gmra.mrb[0].mxu0 %v12828_v37  ;;  %9245 = vmatmul.mubr.bf16.vlgmr.msra.gmra.mrb[0].mxu1 %v12828_v37  ;;  %v12926_v37 = vld [vmem:[%s14235_s25 + $0x15e4] ss:$16 sps:$4 sm:$0xff]  }
 0x355   : > { %8312 = vmatpush1.bf16.msra.mxu0 %v12831_v40  ;;  %9266 = vmatpush1.bf16.msra.mxu1 %v12834_v41  ;;  %v12927_v40 = vld [vmem:[%s14235_s25 + $0x15e8] ss:$16 sps:$4 sm:$0xff]   ;;  %v12935_v41 = vld [vmem:[%s14235_s25 + $0x1604] ss:$16 sps:$4 sm:$0xff]  }
 0x356   : > { %8313 = vmatprep.subr.bf16.mxu0 %v12839_v42  ;;  %9267 = vmatprep.subr.bf16.mxu1 %v12842_v43  ;;  %v12938_v42 = vld [vmem:[%s14235_s25 + $0x160c] ss:$16 sps:$4 sm:$0xff]   ;;  %v12930_v43 = vld [vmem:[#allocation2 + $0x50] ss:$144 sps:$4 sm:$0xff]  }
 0x357   : > { %8300 = vmatprep.mubr.bf16.mxu0 %v12915_v44  ;;  %9254 = vmatprep.mubr.bf16.mxu1 %v12915_v44  ;;  %v12933_v44 = vld [vmem:[%s14235_s25 + $0x1600] ss:$16 sps:$4 sm:$0xff]  }
 0x359   : > { %8314 = vmatpush1.bf16.msra.mxu0 %v12837_v45  ;;  %9268 = vmatpush1.bf16.msra.mxu1 %v12840_v46  ;;  %v12936_v45 = vld [vmem:[%s14235_s25 + $0x1608] ss:$16 sps:$4 sm:$0xff]   ;;  %v12941_v46 = vld [vmem:[%s14235_s25 + $0x1624] ss:$16 sps:$4 sm:$0xff]  }
 0x35a   : > { %8315 = vmatprep.subr.bf16.mxu0 %v12845_v47  ;;  %9269 = vmatprep.subr.bf16.mxu1 %v12848_v48  ;;  %v12944_v47 = vld [vmem:[%s14235_s25 + $0x162c] ss:$16 sps:$4 sm:$0xff]   ;;  %v13017_v48 = vld [vmem:[#allocation2 + $0x174] ss:$144 sps:$4 sm:$0xff]  }
 0x35c   : > { %8301 = vmatmul.mubr.bf16.gmra.mrb[4].mxu0 %v12923_v49  ;;  %9255 = vmatmul.mubr.bf16.gmra.mrb[4].mxu1 %v12923_v49  ;;  %v12939_v49 = vld [vmem:[%s14235_s25 + $0x1620] ss:$16 sps:$4 sm:$0xff]  }
 0x35d   : > { %8316 = vmatpush1.bf16.msra.mxu0 %v12843_v50  ;;  %9270 = vmatpush1.bf16.msra.mxu1 %v12846_v51  ;;  %v12942_v50 = vld [vmem:[%s14235_s25 + $0x1628] ss:$16 sps:$4 sm:$0xff]   ;;  %v12947_v51 = vld [vmem:[%s14235_s25 + $0x1644] ss:$16 sps:$4 sm:$0xff]  }
 0x35e   : > { %8317 = vmatprep.subr.bf16.mxu0 %v12851_v52  ;;  %9271 = vmatprep.subr.bf16.mxu1 %v12854_v53  ;;  %v12950_v52 = vld [vmem:[%s14235_s25 + $0x164c] ss:$16 sps:$4 sm:$0xff]   ;;  %v13025_v53 = vld [vmem:[#allocation2 + $0x170] ss:$144 sps:$4 sm:$0xff]  }
 0x35f   : > { %8343 = vmatprep.mubr.bf16.mxu0 %v12932_v54  ;;  %9297 = vmatprep.mubr.bf16.mxu1 %v12932_v54  ;;  %v12945_v54 = vld [vmem:[%s14235_s25 + $0x1640] ss:$16 sps:$4 sm:$0xff]  }
 0x361   : > { %8318 = vmatpush1.bf16.msra.mxu0 %v12849_v55  ;;  %9272 = vmatpush1.bf16.msra.mxu1 %v12852_v56  ;;  %v12948_v55 = vld [vmem:[%s14235_s25 + $0x1648] ss:$16 sps:$4 sm:$0xff]   ;;  %v12953_v56 = vld [vmem:[%s14235_s25 + $0x1664] ss:$16 sps:$4 sm:$0xff]  }
 0x362   : > { %8319 = vmatprep.subr.bf16.mxu0 %v12857_v57  ;;  %9273 = vmatprep.subr.bf16.mxu1 %v12860_v58  ;;  %v12956_v57 = vld [vmem:[%s14235_s25 + $0x166c] ss:$16 sps:$4 sm:$0xff]  }
 0x363   : > { %v13034_v58 = vld [vmem:[#allocation2 + $0x5c] ss:$144 sps:$4 sm:$0xff]  }
 0x365   : > { %8320 = vmatpush1.bf16.msra.mxu0 %v12855_v59  ;;  %9274 = vmatpush1.bf16.msra.mxu1 %v12858_v60  ;;  %v12951_v59 = vld [vmem:[%s14235_s25 + $0x1660] ss:$16 sps:$4 sm:$0xff]   ;;  %v12954_v60 = vld [vmem:[%s14235_s25 + $0x1668] ss:$16 sps:$4 sm:$0xff]  }
 0x366   : > { %8321 = vmatprep.subr.bf16.mxu0 %v12863_v61  ;;  %9275 = vmatprep.subr.bf16.mxu1 %v12866_v62  ;;  %v12959_v61 = vld [vmem:[%s14235_s25 + $0x1684] ss:$16 sps:$4 sm:$0xff]   ;;  %v12962_v62 = vld [vmem:[%s14235_s25 + $0x168c] ss:$16 sps:$4 sm:$0xff]  }
 0x369   : > { %8322 = vmatpush1.bf16.msra.mxu0 %v12861_v63  ;;  %9276 = vmatpush1.bf16.msra.mxu1 %v12864_v0  ;;  %v12957_v63 = vld [vmem:[%s14235_s25 + $0x1680] ss:$16 sps:$4 sm:$0xff]   ;;  %v12960_v0 = vld [vmem:[%s14235_s25 + $0x1688] ss:$16 sps:$4 sm:$0xff]  }
 0x36a   : > { %8323 = vmatprep.subr.bf16.mxu0 %v12869_v1  ;;  %9277 = vmatprep.subr.bf16.mxu1 %v12872_v2  ;;  %v12965_v1 = vld [vmem:[%s14235_s25 + $0x16a4] ss:$16 sps:$4 sm:$0xff]   ;;  %v12968_v2 = vld [vmem:[%s14235_s25 + $0x16ac] ss:$16 sps:$4 sm:$0xff]  }
 0x36d   : > { %8324 = vmatpush1.bf16.msra.mxu0 %v12867_v3  ;;  %9278 = vmatpush1.bf16.msra.mxu1 %v12870_v4  ;;  %v12963_v3 = vld [vmem:[%s14235_s25 + $0x16a0] ss:$16 sps:$4 sm:$0xff]   ;;  %v12966_v4 = vld [vmem:[%s14235_s25 + $0x16a8] ss:$16 sps:$4 sm:$0xff]  }
 0x36e   : > { %8325 = vmatprep.subr.bf16.mxu0 %v12875_v5  ;;  %9279 = vmatprep.subr.bf16.mxu1 %v12878_v6  ;;  %v12971_v5 = vld [vmem:[%s14235_s25 + $0x16c4] ss:$16 sps:$4 sm:$0xff]   ;;  %v12974_v6 = vld [vmem:[%s14235_s25 + $0x16cc] ss:$16 sps:$4 sm:$0xff]  }
 0x371   : > { %8326 = vmatpush1.bf16.msra.mxu0 %v12873_v7  ;;  %9280 = vmatpush1.bf16.msra.mxu1 %v12876_v8  ;;  %v12969_v7 = vld [vmem:[%s14235_s25 + $0x16c0] ss:$16 sps:$4 sm:$0xff]   ;;  %v12972_v8 = vld [vmem:[%s14235_s25 + $0x16c8] ss:$16 sps:$4 sm:$0xff]  }
 0x372   : > { %8327 = vmatprep.subr.bf16.mxu0 %v12881_v9  ;;  %9281 = vmatprep.subr.bf16.mxu1 %v12884_v10  ;;  %v12977_v9 = vld [vmem:[%s14235_s25 + $0x16e4] ss:$16 sps:$4 sm:$0xff]   ;;  %v12980_v10 = vld [vmem:[%s14235_s25 + $0x16ec] ss:$16 sps:$4 sm:$0xff]  }
 0x375   : > { %8328 = vmatpush1.bf16.msra.mxu0 %v12879_v11  ;;  %9282 = vmatpush1.bf16.msra.mxu1 %v12882_v12  ;;  %v12975_v11 = vld [vmem:[%s14235_s25 + $0x16e0] ss:$16 sps:$4 sm:$0xff]   ;;  %v12978_v12 = vld [vmem:[%s14235_s25 + $0x16e8] ss:$16 sps:$4 sm:$0xff]  }
 0x376   : > { %8329 = vmatprep.subr.bf16.mxu0 %v12887_v13  ;;  %9283 = vmatprep.subr.bf16.mxu1 %v12890_v14  ;;  %v12983_v13 = vld [vmem:[%s14235_s25 + $0x1704] ss:$16 sps:$4 sm:$0xff]   ;;  %v12986_v14 = vld [vmem:[%s14235_s25 + $0x170c] ss:$16 sps:$4 sm:$0xff]  }
 0x379   : > { %8330 = vmatpush1.bf16.msra.mxu0 %v12885_v15  ;;  %9284 = vmatpush1.bf16.msra.mxu1 %v12888_v16  ;;  %v12981_v15 = vld [vmem:[%s14235_s25 + $0x1700] ss:$16 sps:$4 sm:$0xff]   ;;  %v12984_v16 = vld [vmem:[%s14235_s25 + $0x1708] ss:$16 sps:$4 sm:$0xff]  }
 0x37a   : > { %8331 = vmatprep.subr.bf16.mxu0 %v12893_v17  ;;  %9285 = vmatprep.subr.bf16.mxu1 %v12896_v18  ;;  %v12989_v17 = vld [vmem:[%s14235_s25 + $0x1724] ss:$16 sps:$4 sm:$0xff]   ;;  %v12992_v18 = vld [vmem:[%s14235_s25 + $0x172c] ss:$16 sps:$4 sm:$0xff]  }
 0x37d   : > { %8332 = vmatpush1.bf16.msra.mxu0 %v12891_v19  ;;  %9286 = vmatpush1.bf16.msra.mxu1 %v12894_v20  ;;  %v12987_v19 = vld [vmem:[%s14235_s25 + $0x1720] ss:$16 sps:$4 sm:$0xff]   ;;  %v12990_v20 = vld [vmem:[%s14235_s25 + $0x1728] ss:$16 sps:$4 sm:$0xff]  }
 0x37e   : > { %8333 = vmatprep.subr.bf16.mxu0 %v12899_v21  ;;  %9287 = vmatprep.subr.bf16.mxu1 %v12902_v22  ;;  %v12995_v21 = vld [vmem:[%s14235_s25 + $0x1744] ss:$16 sps:$4 sm:$0xff]   ;;  %v12998_v22 = vld [vmem:[%s14235_s25 + $0x174c] ss:$16 sps:$4 sm:$0xff]  }
 0x381   : > { %8334 = vmatpush1.bf16.msra.mxu0 %v12897_v23  ;;  %9288 = vmatpush1.bf16.msra.mxu1 %v12900_v24  ;;  %v12993_v23 = vld [vmem:[%s14235_s25 + $0x1740] ss:$16 sps:$4 sm:$0xff]   ;;  %v12996_v24 = vld [vmem:[%s14235_s25 + $0x1748] ss:$16 sps:$4 sm:$0xff]  }
 0x382   : > { %8335 = vmatprep.subr.bf16.mxu0 %v12905_v25  ;;  %9289 = vmatprep.subr.bf16.mxu1 %v12908_v26  ;;  %v13001_v25 = vld [vmem:[%s14235_s25 + $0x1764] ss:$16 sps:$4 sm:$0xff]   ;;  %v13004_v26 = vld [vmem:[%s14235_s25 + $0x176c] ss:$16 sps:$4 sm:$0xff]  }
 0x385   : > { %8336 = vmatpush1.bf16.msra.mxu0 %v12903_v27  ;;  %9290 = vmatpush1.bf16.msra.mxu1 %v12906_v28  ;;  %v12999_v27 = vld [vmem:[%s14235_s25 + $0x1760] ss:$16 sps:$4 sm:$0xff]   ;;  %v13002_v28 = vld [vmem:[%s14235_s25 + $0x1768] ss:$16 sps:$4 sm:$0xff]  }
 0x386   : > { %8337 = vmatprep.subr.bf16.mxu0 %v12911_v29  ;;  %9291 = vmatprep.subr.bf16.mxu1 %v12914_v30  ;;  %v13007_v29 = vld [vmem:[%s14235_s25 + $0x1784] ss:$16 sps:$4 sm:$0xff]   ;;  %v13010_v30 = vld [vmem:[%s14235_s25 + $0x178c] ss:$16 sps:$4 sm:$0xff]  }
 0x389   : > { %8338 = vmatpush1.bf16.msra.mxu0 %v12909_v31  ;;  %9292 = vmatpush1.bf16.msra.mxu1 %v12912_v32  ;;  %v13005_v31 = vld [vmem:[%s14235_s25 + $0x1780] ss:$16 sps:$4 sm:$0xff]   ;;  %v13008_v32 = vld [vmem:[%s14235_s25 + $0x1788] ss:$16 sps:$4 sm:$0xff]  }
 0x38a   : > { %8339 = vmatprep.subr.bf16.mxu0 %v12919_v33  ;;  %9293 = vmatprep.subr.bf16.mxu1 %v12922_v34  ;;  %v13013_v33 = vld [vmem:[%s14235_s25 + $0x17a4] ss:$16 sps:$4 sm:$0xff]   ;;  %v13016_v34 = vld [vmem:[%s14235_s25 + $0x17ac] ss:$16 sps:$4 sm:$0xff]  }
 0x38d   : > { %8340 = vmatpush1.bf16.msra.mxu0 %v12917_v35  ;;  %9294 = vmatpush1.bf16.msra.mxu1 %v12920_v36  ;;  %v13011_v35 = vld [vmem:[%s14235_s25 + $0x17a0] ss:$16 sps:$4 sm:$0xff]   ;;  %v13014_v36 = vld [vmem:[%s14235_s25 + $0x17a8] ss:$16 sps:$4 sm:$0xff]  }
 0x38e   : > { %8341 = vmatprep.subr.bf16.mxu0 %v12926_v37  ;;  %9295 = vmatprep.subr.bf16.mxu1 %v12929_v38  ;;  %v13021_v37 = vld [vmem:[%s14235_s25 + $0x17c4] ss:$16 sps:$4 sm:$0xff]   ;;  %v13024_v38 = vld [vmem:[%s14235_s25 + $0x17cc] ss:$16 sps:$4 sm:$0xff]  }
 0x391   : > { %8342 = vmatpush1.bf16.msra.mxu0 %v12924_v39  ;;  %9296 = vmatpush1.bf16.msra.mxu1 %v12927_v40  ;;  %v13019_v39 = vld [vmem:[%s14235_s25 + $0x17c0] ss:$16 sps:$4 sm:$0xff]   ;;  %v13022_v40 = vld [vmem:[%s14235_s25 + $0x17c8] ss:$16 sps:$4 sm:$0xff]  }
 0x392   : > { %8364 = vmatprep.subr.bf16.mxu0 %v12935_v41  ;;  %9318 = vmatprep.subr.bf16.mxu1 %v12938_v42  ;;  %v13028_v41 = vld [vmem:[%s14235_s25 + $0x17e4] ss:$16 sps:$4 sm:$0xff]   ;;  %v13031_v42 = vld [vmem:[%s14235_s25 + $0x17ec] ss:$16 sps:$4 sm:$0xff]  }
 0x394   : > { %8344 = vmatmul.mubr.bf16.vlgmr.msra.gmra.mrb[0].mxu0 %v12930_v43  ;;  %9298 = vmatmul.mubr.bf16.vlgmr.msra.gmra.mrb[0].mxu1 %v12930_v43  ;;  %v13026_v43 = vld [vmem:[%s14235_s25 + $0x17e0] ss:$16 sps:$4 sm:$0xff]  }
 0x395   : > { %8365 = vmatpush1.bf16.msra.mxu0 %v12933_v44  ;;  %9319 = vmatpush1.bf16.msra.mxu1 %v12936_v45  ;;  %v13029_v44 = vld [vmem:[%s14235_s25 + $0x17e8] ss:$16 sps:$4 sm:$0xff]   ;;  %v13037_v45 = vld [vmem:[%s14235_s25 + $0x1804] ss:$16 sps:$4 sm:$0xff]  }
 0x396   : > { %8366 = vmatprep.subr.bf16.mxu0 %v12941_v46  ;;  %9320 = vmatprep.subr.bf16.mxu1 %v12944_v47  ;;  %v13040_v46 = vld [vmem:[%s14235_s25 + $0x180c] ss:$16 sps:$4 sm:$0xff]   ;;  %v13032_v47 = vld [vmem:[#allocation2 + $0x58] ss:$144 sps:$4 sm:$0xff]  }
 0x397   : > { %8353 = vmatprep.mubr.bf16.mxu0 %v13017_v48  ;;  %9307 = vmatprep.mubr.bf16.mxu1 %v13017_v48  ;;  %v13035_v48 = vld [vmem:[%s14235_s25 + $0x1800] ss:$16 sps:$4 sm:$0xff]  }
 0x399   : > { %8367 = vmatpush1.bf16.msra.mxu0 %v12939_v49  ;;  %9321 = vmatpush1.bf16.msra.mxu1 %v12942_v50  ;;  %v13038_v49 = vld [vmem:[%s14235_s25 + $0x1808] ss:$16 sps:$4 sm:$0xff]   ;;  %v13043_v50 = vld [vmem:[%s14235_s25 + $0x1824] ss:$16 sps:$4 sm:$0xff]  }
 0x39a   : > { %8368 = vmatprep.subr.bf16.mxu0 %v12947_v51  ;;  %9322 = vmatprep.subr.bf16.mxu1 %v12950_v52  ;;  %v13046_v51 = vld [vmem:[%s14235_s25 + $0x182c] ss:$16 sps:$4 sm:$0xff]  }
 0x39b   : > { %v13119_v52 = vld [vmem:[#allocation2 + $0x17c] ss:$144 sps:$4 sm:$0xff]  }
 0x39c   : > { %8354 = vmatmul.mubr.bf16.gmra.mrb[4].mxu0 %v13025_v53  ;;  %9308 = vmatmul.mubr.bf16.gmra.mrb[4].mxu1 %v13025_v53  ;;  %v13041_v53 = vld [vmem:[%s14235_s25 + $0x1820] ss:$16 sps:$4 sm:$0xff]  }
 0x39d   : > { %8369 = vmatpush1.bf16.msra.mxu0 %v12945_v54  ;;  %9323 = vmatpush1.bf16.msra.mxu1 %v12948_v55  ;;  %v13044_v54 = vld [vmem:[%s14235_s25 + $0x1828] ss:$16 sps:$4 sm:$0xff]   ;;  %v13049_v55 = vld [vmem:[%s14235_s25 + $0x1844] ss:$16 sps:$4 sm:$0xff]  }
 0x39e   : > { %8370 = vmatprep.subr.bf16.mxu0 %v12953_v56  ;;  %9324 = vmatprep.subr.bf16.mxu1 %v12956_v57  ;;  %v13052_v56 = vld [vmem:[%s14235_s25 + $0x184c] ss:$16 sps:$4 sm:$0xff]   ;;  %v13127_v57 = vld [vmem:[#allocation2 + $0x178] ss:$144 sps:$4 sm:$0xff]  }
 0x39f   : > { %8396 = vmatprep.mubr.bf16.mxu0 %v13034_v58  ;;  %9350 = vmatprep.mubr.bf16.mxu1 %v13034_v58  ;;  %v13047_v58 = vld [vmem:[%s14235_s25 + $0x1840] ss:$16 sps:$4 sm:$0xff]  }
 0x3a1   : > { %8371 = vmatpush1.bf16.msra.mxu0 %v12951_v59  ;;  %9325 = vmatpush1.bf16.msra.mxu1 %v12954_v60  ;;  %v13050_v59 = vld [vmem:[%s14235_s25 + $0x1848] ss:$16 sps:$4 sm:$0xff]   ;;  %v13055_v60 = vld [vmem:[%s14235_s25 + $0x1864] ss:$16 sps:$4 sm:$0xff]  }
 0x3a2   : > { %8372 = vmatprep.subr.bf16.mxu0 %v12959_v61  ;;  %9326 = vmatprep.subr.bf16.mxu1 %v12962_v62  ;;  %v13058_v61 = vld [vmem:[%s14235_s25 + $0x186c] ss:$16 sps:$4 sm:$0xff]   ;;  %v13136_v62 = vld [vmem:[#allocation2 + $0x64] ss:$144 sps:$4 sm:$0xff]  }
 0x3a5   : > { %8373 = vmatpush1.bf16.msra.mxu0 %v12957_v63  ;;  %9327 = vmatpush1.bf16.msra.mxu1 %v12960_v0  ;;  %v13053_v63 = vld [vmem:[%s14235_s25 + $0x1860] ss:$16 sps:$4 sm:$0xff]   ;;  %v13056_v0 = vld [vmem:[%s14235_s25 + $0x1868] ss:$16 sps:$4 sm:$0xff]  }
 0x3a6   : > { %8374 = vmatprep.subr.bf16.mxu0 %v12965_v1  ;;  %9328 = vmatprep.subr.bf16.mxu1 %v12968_v2  ;;  %v13061_v1 = vld [vmem:[%s14235_s25 + $0x1884] ss:$16 sps:$4 sm:$0xff]   ;;  %v13064_v2 = vld [vmem:[%s14235_s25 + $0x188c] ss:$16 sps:$4 sm:$0xff]  }
 0x3a9   : > { %8375 = vmatpush1.bf16.msra.mxu0 %v12963_v3  ;;  %9329 = vmatpush1.bf16.msra.mxu1 %v12966_v4  ;;  %v13059_v3 = vld [vmem:[%s14235_s25 + $0x1880] ss:$16 sps:$4 sm:$0xff]   ;;  %v13062_v4 = vld [vmem:[%s14235_s25 + $0x1888] ss:$16 sps:$4 sm:$0xff]  }
 0x3aa   : > { %8376 = vmatprep.subr.bf16.mxu0 %v12971_v5  ;;  %9330 = vmatprep.subr.bf16.mxu1 %v12974_v6  ;;  %v13067_v5 = vld [vmem:[%s14235_s25 + $0x18a4] ss:$16 sps:$4 sm:$0xff]   ;;  %v13070_v6 = vld [vmem:[%s14235_s25 + $0x18ac] ss:$16 sps:$4 sm:$0xff]  }
 0x3ad   : > { %8377 = vmatpush1.bf16.msra.mxu0 %v12969_v7  ;;  %9331 = vmatpush1.bf16.msra.mxu1 %v12972_v8  ;;  %v13065_v7 = vld [vmem:[%s14235_s25 + $0x18a0] ss:$16 sps:$4 sm:$0xff]   ;;  %v13068_v8 = vld [vmem:[%s14235_s25 + $0x18a8] ss:$16 sps:$4 sm:$0xff]  }
 0x3ae   : > { %8378 = vmatprep.subr.bf16.mxu0 %v12977_v9  ;;  %9332 = vmatprep.subr.bf16.mxu1 %v12980_v10  ;;  %v13073_v9 = vld [vmem:[%s14235_s25 + $0x18c4] ss:$16 sps:$4 sm:$0xff]   ;;  %v13076_v10 = vld [vmem:[%s14235_s25 + $0x18cc] ss:$16 sps:$4 sm:$0xff]  }
 0x3b1   : > { %8379 = vmatpush1.bf16.msra.mxu0 %v12975_v11  ;;  %9333 = vmatpush1.bf16.msra.mxu1 %v12978_v12  ;;  %v13071_v11 = vld [vmem:[%s14235_s25 + $0x18c0] ss:$16 sps:$4 sm:$0xff]   ;;  %v13074_v12 = vld [vmem:[%s14235_s25 + $0x18c8] ss:$16 sps:$4 sm:$0xff]  }
 0x3b2   : > { %8380 = vmatprep.subr.bf16.mxu0 %v12983_v13  ;;  %9334 = vmatprep.subr.bf16.mxu1 %v12986_v14  ;;  %v13079_v13 = vld [vmem:[%s14235_s25 + $0x18e4] ss:$16 sps:$4 sm:$0xff]   ;;  %v13082_v14 = vld [vmem:[%s14235_s25 + $0x18ec] ss:$16 sps:$4 sm:$0xff]  }
 0x3b5   : > { %8381 = vmatpush1.bf16.msra.mxu0 %v12981_v15  ;;  %9335 = vmatpush1.bf16.msra.mxu1 %v12984_v16  ;;  %v13077_v15 = vld [vmem:[%s14235_s25 + $0x18e0] ss:$16 sps:$4 sm:$0xff]   ;;  %v13080_v16 = vld [vmem:[%s14235_s25 + $0x18e8] ss:$16 sps:$4 sm:$0xff]  }
 0x3b6   : > { %8382 = vmatprep.subr.bf16.mxu0 %v12989_v17  ;;  %9336 = vmatprep.subr.bf16.mxu1 %v12992_v18  ;;  %v13085_v17 = vld [vmem:[%s14235_s25 + $0x1904] ss:$16 sps:$4 sm:$0xff]   ;;  %v13088_v18 = vld [vmem:[%s14235_s25 + $0x190c] ss:$16 sps:$4 sm:$0xff]  }
 0x3b9   : > { %8383 = vmatpush1.bf16.msra.mxu0 %v12987_v19  ;;  %9337 = vmatpush1.bf16.msra.mxu1 %v12990_v20  ;;  %v13083_v19 = vld [vmem:[%s14235_s25 + $0x1900] ss:$16 sps:$4 sm:$0xff]   ;;  %v13086_v20 = vld [vmem:[%s14235_s25 + $0x1908] ss:$16 sps:$4 sm:$0xff]  }
 0x3ba   : > { %8384 = vmatprep.subr.bf16.mxu0 %v12995_v21  ;;  %9338 = vmatprep.subr.bf16.mxu1 %v12998_v22  ;;  %v13091_v21 = vld [vmem:[%s14235_s25 + $0x1924] ss:$16 sps:$4 sm:$0xff]   ;;  %v13094_v22 = vld [vmem:[%s14235_s25 + $0x192c] ss:$16 sps:$4 sm:$0xff]  }
 0x3bd   : > { %8385 = vmatpush1.bf16.msra.mxu0 %v12993_v23  ;;  %9339 = vmatpush1.bf16.msra.mxu1 %v12996_v24  ;;  %v13089_v23 = vld [vmem:[%s14235_s25 + $0x1920] ss:$16 sps:$4 sm:$0xff]   ;;  %v13092_v24 = vld [vmem:[%s14235_s25 + $0x1928] ss:$16 sps:$4 sm:$0xff]  }
 0x3be   : > { %8386 = vmatprep.subr.bf16.mxu0 %v13001_v25  ;;  %9340 = vmatprep.subr.bf16.mxu1 %v13004_v26  ;;  %v13097_v25 = vld [vmem:[%s14235_s25 + $0x1944] ss:$16 sps:$4 sm:$0xff]   ;;  %v13100_v26 = vld [vmem:[%s14235_s25 + $0x194c] ss:$16 sps:$4 sm:$0xff]  }
 0x3c1   : > { %8387 = vmatpush1.bf16.msra.mxu0 %v12999_v27  ;;  %9341 = vmatpush1.bf16.msra.mxu1 %v13002_v28  ;;  %v13095_v27 = vld [vmem:[%s14235_s25 + $0x1940] ss:$16 sps:$4 sm:$0xff]   ;;  %v13098_v28 = vld [vmem:[%s14235_s25 + $0x1948] ss:$16 sps:$4 sm:$0xff]  }
 0x3c2   : > { %8388 = vmatprep.subr.bf16.mxu0 %v13007_v29  ;;  %9342 = vmatprep.subr.bf16.mxu1 %v13010_v30  ;;  %v13103_v29 = vld [vmem:[%s14235_s25 + $0x1964] ss:$16 sps:$4 sm:$0xff]   ;;  %v13106_v30 = vld [vmem:[%s14235_s25 + $0x196c] ss:$16 sps:$4 sm:$0xff]  }
 0x3c5   : > { %8389 = vmatpush1.bf16.msra.mxu0 %v13005_v31  ;;  %9343 = vmatpush1.bf16.msra.mxu1 %v13008_v32  ;;  %v13101_v31 = vld [vmem:[%s14235_s25 + $0x1960] ss:$16 sps:$4 sm:$0xff]   ;;  %v13104_v32 = vld [vmem:[%s14235_s25 + $0x1968] ss:$16 sps:$4 sm:$0xff]  }
 0x3c6   : > { %8390 = vmatprep.subr.bf16.mxu0 %v13013_v33  ;;  %9344 = vmatprep.subr.bf16.mxu1 %v13016_v34  ;;  %v13109_v33 = vld [vmem:[%s14235_s25 + $0x1984] ss:$16 sps:$4 sm:$0xff]   ;;  %v13112_v34 = vld [vmem:[%s14235_s25 + $0x198c] ss:$16 sps:$4 sm:$0xff]  }
 0x3c9   : > { %8391 = vmatpush1.bf16.msra.mxu0 %v13011_v35  ;;  %9345 = vmatpush1.bf16.msra.mxu1 %v13014_v36  ;;  %v13107_v35 = vld [vmem:[%s14235_s25 + $0x1980] ss:$16 sps:$4 sm:$0xff]   ;;  %v13110_v36 = vld [vmem:[%s14235_s25 + $0x1988] ss:$16 sps:$4 sm:$0xff]  }
 0x3ca   : > { %8392 = vmatprep.subr.bf16.mxu0 %v13021_v37  ;;  %9346 = vmatprep.subr.bf16.mxu1 %v13024_v38  ;;  %v13115_v37 = vld [vmem:[%s14235_s25 + $0x19a4] ss:$16 sps:$4 sm:$0xff]   ;;  %v13118_v38 = vld [vmem:[%s14235_s25 + $0x19ac] ss:$16 sps:$4 sm:$0xff]  }
 0x3cd   : > { %8393 = vmatpush1.bf16.msra.mxu0 %v13019_v39  ;;  %9347 = vmatpush1.bf16.msra.mxu1 %v13022_v40  ;;  %v13113_v39 = vld [vmem:[%s14235_s25 + $0x19a0] ss:$16 sps:$4 sm:$0xff]   ;;  %v13116_v40 = vld [vmem:[%s14235_s25 + $0x19a8] ss:$16 sps:$4 sm:$0xff]  }
 0x3ce   : > { %8394 = vmatprep.subr.bf16.mxu0 %v13028_v41  ;;  %9348 = vmatprep.subr.bf16.mxu1 %v13031_v42  ;;  %v13123_v41 = vld [vmem:[%s14235_s25 + $0x19c4] ss:$16 sps:$4 sm:$0xff]   ;;  %v13126_v42 = vld [vmem:[%s14235_s25 + $0x19cc] ss:$16 sps:$4 sm:$0xff]  }
 0x3d1   : > { %8395 = vmatpush1.bf16.msra.mxu0 %v13026_v43  ;;  %9349 = vmatpush1.bf16.msra.mxu1 %v13029_v44  ;;  %v13121_v43 = vld [vmem:[%s14235_s25 + $0x19c0] ss:$16 sps:$4 sm:$0xff]   ;;  %v13124_v44 = vld [vmem:[%s14235_s25 + $0x19c8] ss:$16 sps:$4 sm:$0xff]  }
 0x3d2   : > { %8417 = vmatprep.subr.bf16.mxu0 %v13037_v45  ;;  %9371 = vmatprep.subr.bf16.mxu1 %v13040_v46  ;;  %v13130_v45 = vld [vmem:[%s14235_s25 + $0x19e4] ss:$16 sps:$4 sm:$0xff]   ;;  %v13133_v46 = vld [vmem:[%s14235_s25 + $0x19ec] ss:$16 sps:$4 sm:$0xff]  }
 0x3d4   : > { %8397 = vmatmul.mubr.bf16.vlgmr.msra.gmra.mrb[0].mxu0 %v13032_v47  ;;  %9351 = vmatmul.mubr.bf16.vlgmr.msra.gmra.mrb[0].mxu1 %v13032_v47  ;;  %v13128_v47 = vld [vmem:[%s14235_s25 + $0x19e0] ss:$16 sps:$4 sm:$0xff]  }
 0x3d5   : > { %8418 = vmatpush1.bf16.msra.mxu0 %v13035_v48  ;;  %9372 = vmatpush1.bf16.msra.mxu1 %v13038_v49  ;;  %v13131_v48 = vld [vmem:[%s14235_s25 + $0x19e8] ss:$16 sps:$4 sm:$0xff]   ;;  %v13139_v49 = vld [vmem:[%s14235_s25 + $0x1a04] ss:$16 sps:$4 sm:$0xff]  }
 0x3d6   : > { %8419 = vmatprep.subr.bf16.mxu0 %v13043_v50  ;;  %9373 = vmatprep.subr.bf16.mxu1 %v13046_v51  ;;  %v13142_v50 = vld [vmem:[%s14235_s25 + $0x1a0c] ss:$16 sps:$4 sm:$0xff]   ;;  %v13134_v51 = vld [vmem:[#allocation2 + $0x60] ss:$144 sps:$4 sm:$0xff]  }
 0x3d7   : > { %8406 = vmatprep.mubr.bf16.mxu0 %v13119_v52  ;;  %9360 = vmatprep.mubr.bf16.mxu1 %v13119_v52  ;;  %v13137_v52 = vld [vmem:[%s14235_s25 + $0x1a00] ss:$16 sps:$4 sm:$0xff]  }
 0x3d9   : > { %8420 = vmatpush1.bf16.msra.mxu0 %v13041_v53  ;;  %9374 = vmatpush1.bf16.msra.mxu1 %v13044_v54  ;;  %v13140_v53 = vld [vmem:[%s14235_s25 + $0x1a08] ss:$16 sps:$4 sm:$0xff]   ;;  %v13145_v54 = vld [vmem:[%s14235_s25 + $0x1a24] ss:$16 sps:$4 sm:$0xff]  }
 0x3da   : > { %8421 = vmatprep.subr.bf16.mxu0 %v13049_v55  ;;  %9375 = vmatprep.subr.bf16.mxu1 %v13052_v56  ;;  %v13148_v55 = vld [vmem:[%s14235_s25 + $0x1a2c] ss:$16 sps:$4 sm:$0xff]   ;;  %v13221_v56 = vld [vmem:[#allocation2 + $0x184] ss:$144 sps:$4 sm:$0xff]  }
 0x3dc   : > { %8407 = vmatmul.mubr.bf16.gmra.mrb[4].mxu0 %v13127_v57  ;;  %9361 = vmatmul.mubr.bf16.gmra.mrb[4].mxu1 %v13127_v57  ;;  %v13143_v57 = vld [vmem:[%s14235_s25 + $0x1a20] ss:$16 sps:$4 sm:$0xff]  }
 0x3dd   : > { %8422 = vmatpush1.bf16.msra.mxu0 %v13047_v58  ;;  %9376 = vmatpush1.bf16.msra.mxu1 %v13050_v59  ;;  %v13146_v58 = vld [vmem:[%s14235_s25 + $0x1a28] ss:$16 sps:$4 sm:$0xff]   ;;  %v13151_v59 = vld [vmem:[%s14235_s25 + $0x1a44] ss:$16 sps:$4 sm:$0xff]  }
 0x3de   : > { %8423 = vmatprep.subr.bf16.mxu0 %v13055_v60  ;;  %9377 = vmatprep.subr.bf16.mxu1 %v13058_v61  ;;  %v13154_v60 = vld [vmem:[%s14235_s25 + $0x1a4c] ss:$16 sps:$4 sm:$0xff]   ;;  %v13229_v61 = vld [vmem:[#allocation2 + $0x180] ss:$144 sps:$4 sm:$0xff]  }
 0x3df   : > { %8449 = vmatprep.mubr.bf16.mxu0 %v13136_v62  ;;  %9403 = vmatprep.mubr.bf16.mxu1 %v13136_v62  ;;  %v13149_v62 = vld [vmem:[%s14235_s25 + $0x1a40] ss:$16 sps:$4 sm:$0xff]  }
 0x3e1   : > { %8424 = vmatpush1.bf16.msra.mxu0 %v13053_v63  ;;  %9378 = vmatpush1.bf16.msra.mxu1 %v13056_v0  ;;  %v13152_v63 = vld [vmem:[%s14235_s25 + $0x1a48] ss:$16 sps:$4 sm:$0xff]   ;;  %v13157_v0 = vld [vmem:[%s14235_s25 + $0x1a64] ss:$16 sps:$4 sm:$0xff]  }
 0x3e2   : > { %8425 = vmatprep.subr.bf16.mxu0 %v13061_v1  ;;  %9379 = vmatprep.subr.bf16.mxu1 %v13064_v2  ;;  %v13160_v1 = vld [vmem:[%s14235_s25 + $0x1a6c] ss:$16 sps:$4 sm:$0xff]  }
 0x3e3   : > { %v13238_v2 = vld [vmem:[#allocation2 + $0x6c] ss:$144 sps:$4 sm:$0xff]  }
 0x3e5   : > { %8426 = vmatpush1.bf16.msra.mxu0 %v13059_v3  ;;  %9380 = vmatpush1.bf16.msra.mxu1 %v13062_v4  ;;  %v13155_v3 = vld [vmem:[%s14235_s25 + $0x1a60] ss:$16 sps:$4 sm:$0xff]   ;;  %v13158_v4 = vld [vmem:[%s14235_s25 + $0x1a68] ss:$16 sps:$4 sm:$0xff]  }
 0x3e6   : > { %8427 = vmatprep.subr.bf16.mxu0 %v13067_v5  ;;  %9381 = vmatprep.subr.bf16.mxu1 %v13070_v6  ;;  %v13163_v5 = vld [vmem:[%s14235_s25 + $0x1a84] ss:$16 sps:$4 sm:$0xff]   ;;  %v13166_v6 = vld [vmem:[%s14235_s25 + $0x1a8c] ss:$16 sps:$4 sm:$0xff]  }
 0x3e9   : > { %8428 = vmatpush1.bf16.msra.mxu0 %v13065_v7  ;;  %9382 = vmatpush1.bf16.msra.mxu1 %v13068_v8  ;;  %v13161_v7 = vld [vmem:[%s14235_s25 + $0x1a80] ss:$16 sps:$4 sm:$0xff]   ;;  %v13164_v8 = vld [vmem:[%s14235_s25 + $0x1a88] ss:$16 sps:$4 sm:$0xff]  }
 0x3ea   : > { %8429 = vmatprep.subr.bf16.mxu0 %v13073_v9  ;;  %9383 = vmatprep.subr.bf16.mxu1 %v13076_v10  ;;  %v13169_v9 = vld [vmem:[%s14235_s25 + $0x1aa4] ss:$16 sps:$4 sm:$0xff]   ;;  %v13172_v10 = vld [vmem:[%s14235_s25 + $0x1aac] ss:$16 sps:$4 sm:$0xff]  }
 0x3ed   : > { %8430 = vmatpush1.bf16.msra.mxu0 %v13071_v11  ;;  %9384 = vmatpush1.bf16.msra.mxu1 %v13074_v12  ;;  %v13167_v11 = vld [vmem:[%s14235_s25 + $0x1aa0] ss:$16 sps:$4 sm:$0xff]   ;;  %v13170_v12 = vld [vmem:[%s14235_s25 + $0x1aa8] ss:$16 sps:$4 sm:$0xff]  }
 0x3ee   : > { %8431 = vmatprep.subr.bf16.mxu0 %v13079_v13  ;;  %9385 = vmatprep.subr.bf16.mxu1 %v13082_v14  ;;  %v13175_v13 = vld [vmem:[%s14235_s25 + $0x1ac4] ss:$16 sps:$4 sm:$0xff]   ;;  %v13178_v14 = vld [vmem:[%s14235_s25 + $0x1acc] ss:$16 sps:$4 sm:$0xff]  }
 0x3f1   : > { %8432 = vmatpush1.bf16.msra.mxu0 %v13077_v15  ;;  %9386 = vmatpush1.bf16.msra.mxu1 %v13080_v16  ;;  %v13173_v15 = vld [vmem:[%s14235_s25 + $0x1ac0] ss:$16 sps:$4 sm:$0xff]   ;;  %v13176_v16 = vld [vmem:[%s14235_s25 + $0x1ac8] ss:$16 sps:$4 sm:$0xff]  }
 0x3f2   : > { %8433 = vmatprep.subr.bf16.mxu0 %v13085_v17  ;;  %9387 = vmatprep.subr.bf16.mxu1 %v13088_v18  ;;  %v13181_v17 = vld [vmem:[%s14235_s25 + $0x1ae4] ss:$16 sps:$4 sm:$0xff]   ;;  %v13184_v18 = vld [vmem:[%s14235_s25 + $0x1aec] ss:$16 sps:$4 sm:$0xff]  }
 0x3f5   : > { %8434 = vmatpush1.bf16.msra.mxu0 %v13083_v19  ;;  %9388 = vmatpush1.bf16.msra.mxu1 %v13086_v20  ;;  %v13179_v19 = vld [vmem:[%s14235_s25 + $0x1ae0] ss:$16 sps:$4 sm:$0xff]   ;;  %v13182_v20 = vld [vmem:[%s14235_s25 + $0x1ae8] ss:$16 sps:$4 sm:$0xff]  }
 0x3f6   : > { %8435 = vmatprep.subr.bf16.mxu0 %v13091_v21  ;;  %9389 = vmatprep.subr.bf16.mxu1 %v13094_v22  ;;  %v13187_v21 = vld [vmem:[%s14235_s25 + $0x1b04] ss:$16 sps:$4 sm:$0xff]   ;;  %v13190_v22 = vld [vmem:[%s14235_s25 + $0x1b0c] ss:$16 sps:$4 sm:$0xff]  }
 0x3f9   : > { %8436 = vmatpush1.bf16.msra.mxu0 %v13089_v23  ;;  %9390 = vmatpush1.bf16.msra.mxu1 %v13092_v24  ;;  %v13185_v23 = vld [vmem:[%s14235_s25 + $0x1b00] ss:$16 sps:$4 sm:$0xff]   ;;  %v13188_v24 = vld [vmem:[%s14235_s25 + $0x1b08] ss:$16 sps:$4 sm:$0xff]  }
 0x3fa   : > { %8437 = vmatprep.subr.bf16.mxu0 %v13097_v25  ;;  %9391 = vmatprep.subr.bf16.mxu1 %v13100_v26  ;;  %v13193_v25 = vld [vmem:[%s14235_s25 + $0x1b24] ss:$16 sps:$4 sm:$0xff]   ;;  %v13196_v26 = vld [vmem:[%s14235_s25 + $0x1b2c] ss:$16 sps:$4 sm:$0xff]  }
 0x3fd   : > { %8438 = vmatpush1.bf16.msra.mxu0 %v13095_v27  ;;  %9392 = vmatpush1.bf16.msra.mxu1 %v13098_v28  ;;  %v13191_v27 = vld [vmem:[%s14235_s25 + $0x1b20] ss:$16 sps:$4 sm:$0xff]   ;;  %v13194_v28 = vld [vmem:[%s14235_s25 + $0x1b28] ss:$16 sps:$4 sm:$0xff]  }
 0x3fe   : > { %8439 = vmatprep.subr.bf16.mxu0 %v13103_v29  ;;  %9393 = vmatprep.subr.bf16.mxu1 %v13106_v30  ;;  %v13199_v29 = vld [vmem:[%s14235_s25 + $0x1b44] ss:$16 sps:$4 sm:$0xff]   ;;  %v13202_v30 = vld [vmem:[%s14235_s25 + $0x1b4c] ss:$16 sps:$4 sm:$0xff]  }
 0x401   : > { %8440 = vmatpush1.bf16.msra.mxu0 %v13101_v31  ;;  %9394 = vmatpush1.bf16.msra.mxu1 %v13104_v32  ;;  %v13197_v31 = vld [vmem:[%s14235_s25 + $0x1b40] ss:$16 sps:$4 sm:$0xff]   ;;  %v13200_v32 = vld [vmem:[%s14235_s25 + $0x1b48] ss:$16 sps:$4 sm:$0xff]  }
 0x402   : > { %8441 = vmatprep.subr.bf16.mxu0 %v13109_v33  ;;  %9395 = vmatprep.subr.bf16.mxu1 %v13112_v34  ;;  %v13205_v33 = vld [vmem:[%s14235_s25 + $0x1b64] ss:$16 sps:$4 sm:$0xff]   ;;  %v13208_v34 = vld [vmem:[%s14235_s25 + $0x1b6c] ss:$16 sps:$4 sm:$0xff]  }
 0x405   : > { %8442 = vmatpush1.bf16.msra.mxu0 %v13107_v35  ;;  %9396 = vmatpush1.bf16.msra.mxu1 %v13110_v36  ;;  %v13203_v35 = vld [vmem:[%s14235_s25 + $0x1b60] ss:$16 sps:$4 sm:$0xff]   ;;  %v13206_v36 = vld [vmem:[%s14235_s25 + $0x1b68] ss:$16 sps:$4 sm:$0xff]  }
 0x406   : > { %8443 = vmatprep.subr.bf16.mxu0 %v13115_v37  ;;  %9397 = vmatprep.subr.bf16.mxu1 %v13118_v38  ;;  %v13211_v37 = vld [vmem:[%s14235_s25 + $0x1b84] ss:$16 sps:$4 sm:$0xff]   ;;  %v13214_v38 = vld [vmem:[%s14235_s25 + $0x1b8c] ss:$16 sps:$4 sm:$0xff]  }
 0x409   : > { %8444 = vmatpush1.bf16.msra.mxu0 %v13113_v39  ;;  %9398 = vmatpush1.bf16.msra.mxu1 %v13116_v40  ;;  %v13209_v39 = vld [vmem:[%s14235_s25 + $0x1b80] ss:$16 sps:$4 sm:$0xff]   ;;  %v13212_v40 = vld [vmem:[%s14235_s25 + $0x1b88] ss:$16 sps:$4 sm:$0xff]  }
 0x40a   : > { %8445 = vmatprep.subr.bf16.mxu0 %v13123_v41  ;;  %9399 = vmatprep.subr.bf16.mxu1 %v13126_v42  ;;  %v13217_v41 = vld [vmem:[%s14235_s25 + $0x1ba4] ss:$16 sps:$4 sm:$0xff]   ;;  %v13220_v42 = vld [vmem:[%s14235_s25 + $0x1bac] ss:$16 sps:$4 sm:$0xff]  }
 0x40d   : > { %8446 = vmatpush1.bf16.msra.mxu0 %v13121_v43  ;;  %9400 = vmatpush1.bf16.msra.mxu1 %v13124_v44  ;;  %v13215_v43 = vld [vmem:[%s14235_s25 + $0x1ba0] ss:$16 sps:$4 sm:$0xff]   ;;  %v13218_v44 = vld [vmem:[%s14235_s25 + $0x1ba8] ss:$16 sps:$4 sm:$0xff]  }
 0x40e   : > { %8447 = vmatprep.subr.bf16.mxu0 %v13130_v45  ;;  %9401 = vmatprep.subr.bf16.mxu1 %v13133_v46  ;;  %v13225_v45 = vld [vmem:[%s14235_s25 + $0x1bc4] ss:$16 sps:$4 sm:$0xff]   ;;  %v13228_v46 = vld [vmem:[%s14235_s25 + $0x1bcc] ss:$16 sps:$4 sm:$0xff]  }
 0x411   : > { %8448 = vmatpush1.bf16.msra.mxu0 %v13128_v47  ;;  %9402 = vmatpush1.bf16.msra.mxu1 %v13131_v48  ;;  %v13223_v47 = vld [vmem:[%s14235_s25 + $0x1bc0] ss:$16 sps:$4 sm:$0xff]   ;;  %v13226_v48 = vld [vmem:[%s14235_s25 + $0x1bc8] ss:$16 sps:$4 sm:$0xff]  }
 0x412   : > { %8470 = vmatprep.subr.bf16.mxu0 %v13139_v49  ;;  %9424 = vmatprep.subr.bf16.mxu1 %v13142_v50  ;;  %v13232_v49 = vld [vmem:[%s14235_s25 + $0x1be4] ss:$16 sps:$4 sm:$0xff]   ;;  %v13235_v50 = vld [vmem:[%s14235_s25 + $0x1bec] ss:$16 sps:$4 sm:$0xff]  }
 0x414   : > { %8450 = vmatmul.mubr.bf16.vlgmr.msra.gmra.mrb[0].mxu0 %v13134_v51  ;;  %9404 = vmatmul.mubr.bf16.vlgmr.msra.gmra.mrb[0].mxu1 %v13134_v51  ;;  %v13230_v51 = vld [vmem:[%s14235_s25 + $0x1be0] ss:$16 sps:$4 sm:$0xff]  }
 0x415   : > { %8471 = vmatpush1.bf16.msra.mxu0 %v13137_v52  ;;  %9425 = vmatpush1.bf16.msra.mxu1 %v13140_v53  ;;  %v13233_v52 = vld [vmem:[%s14235_s25 + $0x1be8] ss:$16 sps:$4 sm:$0xff]   ;;  %v13241_v53 = vld [vmem:[%s14235_s25 + $0x1c04] ss:$16 sps:$4 sm:$0xff]  }
 0x416   : > { %8472 = vmatprep.subr.bf16.mxu0 %v13145_v54  ;;  %9426 = vmatprep.subr.bf16.mxu1 %v13148_v55  ;;  %v13244_v54 = vld [vmem:[%s14235_s25 + $0x1c0c] ss:$16 sps:$4 sm:$0xff]   ;;  %v13236_v55 = vld [vmem:[#allocation2 + $0x68] ss:$144 sps:$4 sm:$0xff]  }
 0x417   : > { %8459 = vmatprep.mubr.bf16.mxu0 %v13221_v56  ;;  %9413 = vmatprep.mubr.bf16.mxu1 %v13221_v56  ;;  %v13239_v56 = vld [vmem:[%s14235_s25 + $0x1c00] ss:$16 sps:$4 sm:$0xff]  }
 0x419   : > { %8473 = vmatpush1.bf16.msra.mxu0 %v13143_v57  ;;  %9427 = vmatpush1.bf16.msra.mxu1 %v13146_v58  ;;  %v13242_v57 = vld [vmem:[%s14235_s25 + $0x1c08] ss:$16 sps:$4 sm:$0xff]   ;;  %v13247_v58 = vld [vmem:[%s14235_s25 + $0x1c24] ss:$16 sps:$4 sm:$0xff]  }
 0x41a   : > { %8474 = vmatprep.subr.bf16.mxu0 %v13151_v59  ;;  %9428 = vmatprep.subr.bf16.mxu1 %v13154_v60  ;;  %v13250_v59 = vld [vmem:[%s14235_s25 + $0x1c2c] ss:$16 sps:$4 sm:$0xff]  }
 0x41b   : > { %v13323_v60 = vld [vmem:[#allocation2 + $0x18c] ss:$144 sps:$4 sm:$0xff]  }
 0x41c   : > { %8460 = vmatmul.mubr.bf16.gmra.mrb[4].mxu0 %v13229_v61  ;;  %9414 = vmatmul.mubr.bf16.gmra.mrb[4].mxu1 %v13229_v61  ;;  %v13245_v61 = vld [vmem:[%s14235_s25 + $0x1c20] ss:$16 sps:$4 sm:$0xff]  }
 0x41d   : > { %8475 = vmatpush1.bf16.msra.mxu0 %v13149_v62  ;;  %9429 = vmatpush1.bf16.msra.mxu1 %v13152_v63  ;;  %v13248_v62 = vld [vmem:[%s14235_s25 + $0x1c28] ss:$16 sps:$4 sm:$0xff]   ;;  %v13253_v63 = vld [vmem:[%s14235_s25 + $0x1c44] ss:$16 sps:$4 sm:$0xff]  }
 0x41e   : > { %8476 = vmatprep.subr.bf16.mxu0 %v13157_v0  ;;  %9430 = vmatprep.subr.bf16.mxu1 %v13160_v1  ;;  %v13256_v0 = vld [vmem:[%s14235_s25 + $0x1c4c] ss:$16 sps:$4 sm:$0xff]   ;;  %v13331_v1 = vld [vmem:[#allocation2 + $0x188] ss:$144 sps:$4 sm:$0xff]  }
 0x41f   : > { %8502 = vmatprep.mubr.bf16.mxu0 %v13238_v2  ;;  %9456 = vmatprep.mubr.bf16.mxu1 %v13238_v2  ;;  %v13251_v2 = vld [vmem:[%s14235_s25 + $0x1c40] ss:$16 sps:$4 sm:$0xff]  }
 0x421   : > { %8477 = vmatpush1.bf16.msra.mxu0 %v13155_v3  ;;  %9431 = vmatpush1.bf16.msra.mxu1 %v13158_v4  ;;  %v13254_v3 = vld [vmem:[%s14235_s25 + $0x1c48] ss:$16 sps:$4 sm:$0xff]   ;;  %v13259_v4 = vld [vmem:[%s14235_s25 + $0x1c64] ss:$16 sps:$4 sm:$0xff]  }
 0x422   : > { %8478 = vmatprep.subr.bf16.mxu0 %v13163_v5  ;;  %9432 = vmatprep.subr.bf16.mxu1 %v13166_v6  ;;  %v13262_v5 = vld [vmem:[%s14235_s25 + $0x1c6c] ss:$16 sps:$4 sm:$0xff]   ;;  %v13340_v6 = vld [vmem:[#allocation2 + $0x74] ss:$144 sps:$4 sm:$0xff]  }
 0x425   : > { %8479 = vmatpush1.bf16.msra.mxu0 %v13161_v7  ;;  %9433 = vmatpush1.bf16.msra.mxu1 %v13164_v8  ;;  %v13257_v7 = vld [vmem:[%s14235_s25 + $0x1c60] ss:$16 sps:$4 sm:$0xff]   ;;  %v13260_v8 = vld [vmem:[%s14235_s25 + $0x1c68] ss:$16 sps:$4 sm:$0xff]  }
 0x426   : > { %8480 = vmatprep.subr.bf16.mxu0 %v13169_v9  ;;  %9434 = vmatprep.subr.bf16.mxu1 %v13172_v10  ;;  %v13265_v9 = vld [vmem:[%s14235_s25 + $0x1c84] ss:$16 sps:$4 sm:$0xff]   ;;  %v13268_v10 = vld [vmem:[%s14235_s25 + $0x1c8c] ss:$16 sps:$4 sm:$0xff]  }
 0x429   : > { %8481 = vmatpush1.bf16.msra.mxu0 %v13167_v11  ;;  %9435 = vmatpush1.bf16.msra.mxu1 %v13170_v12  ;;  %v13263_v11 = vld [vmem:[%s14235_s25 + $0x1c80] ss:$16 sps:$4 sm:$0xff]   ;;  %v13266_v12 = vld [vmem:[%s14235_s25 + $0x1c88] ss:$16 sps:$4 sm:$0xff]  }
 0x42a   : > { %8482 = vmatprep.subr.bf16.mxu0 %v13175_v13  ;;  %9436 = vmatprep.subr.bf16.mxu1 %v13178_v14  ;;  %v13271_v13 = vld [vmem:[%s14235_s25 + $0x1ca4] ss:$16 sps:$4 sm:$0xff]   ;;  %v13274_v14 = vld [vmem:[%s14235_s25 + $0x1cac] ss:$16 sps:$4 sm:$0xff]  }
 0x42d   : > { %8483 = vmatpush1.bf16.msra.mxu0 %v13173_v15  ;;  %9437 = vmatpush1.bf16.msra.mxu1 %v13176_v16  ;;  %v13269_v15 = vld [vmem:[%s14235_s25 + $0x1ca0] ss:$16 sps:$4 sm:$0xff]   ;;  %v13272_v16 = vld [vmem:[%s14235_s25 + $0x1ca8] ss:$16 sps:$4 sm:$0xff]  }
 0x42e   : > { %8484 = vmatprep.subr.bf16.mxu0 %v13181_v17  ;;  %9438 = vmatprep.subr.bf16.mxu1 %v13184_v18  ;;  %v13277_v17 = vld [vmem:[%s14235_s25 + $0x1cc4] ss:$16 sps:$4 sm:$0xff]   ;;  %v13280_v18 = vld [vmem:[%s14235_s25 + $0x1ccc] ss:$16 sps:$4 sm:$0xff]  }
 0x431   : > { %8485 = vmatpush1.bf16.msra.mxu0 %v13179_v19  ;;  %9439 = vmatpush1.bf16.msra.mxu1 %v13182_v20  ;;  %v13275_v19 = vld [vmem:[%s14235_s25 + $0x1cc0] ss:$16 sps:$4 sm:$0xff]   ;;  %v13278_v20 = vld [vmem:[%s14235_s25 + $0x1cc8] ss:$16 sps:$4 sm:$0xff]  }
 0x432   : > { %8486 = vmatprep.subr.bf16.mxu0 %v13187_v21  ;;  %9440 = vmatprep.subr.bf16.mxu1 %v13190_v22  ;;  %v13283_v21 = vld [vmem:[%s14235_s25 + $0x1ce4] ss:$16 sps:$4 sm:$0xff]   ;;  %v13286_v22 = vld [vmem:[%s14235_s25 + $0x1cec] ss:$16 sps:$4 sm:$0xff]  }
 0x435   : > { %8487 = vmatpush1.bf16.msra.mxu0 %v13185_v23  ;;  %9441 = vmatpush1.bf16.msra.mxu1 %v13188_v24  ;;  %v13281_v23 = vld [vmem:[%s14235_s25 + $0x1ce0] ss:$16 sps:$4 sm:$0xff]   ;;  %v13284_v24 = vld [vmem:[%s14235_s25 + $0x1ce8] ss:$16 sps:$4 sm:$0xff]  }
 0x436   : > { %8488 = vmatprep.subr.bf16.mxu0 %v13193_v25  ;;  %9442 = vmatprep.subr.bf16.mxu1 %v13196_v26  ;;  %v13289_v25 = vld [vmem:[%s14235_s25 + $0x1d04] ss:$16 sps:$4 sm:$0xff]   ;;  %v13292_v26 = vld [vmem:[%s14235_s25 + $0x1d0c] ss:$16 sps:$4 sm:$0xff]  }
 0x439   : > { %8489 = vmatpush1.bf16.msra.mxu0 %v13191_v27  ;;  %9443 = vmatpush1.bf16.msra.mxu1 %v13194_v28  ;;  %v13287_v27 = vld [vmem:[%s14235_s25 + $0x1d00] ss:$16 sps:$4 sm:$0xff]   ;;  %v13290_v28 = vld [vmem:[%s14235_s25 + $0x1d08] ss:$16 sps:$4 sm:$0xff]  }
 0x43a   : > { %8490 = vmatprep.subr.bf16.mxu0 %v13199_v29  ;;  %9444 = vmatprep.subr.bf16.mxu1 %v13202_v30  ;;  %v13295_v29 = vld [vmem:[%s14235_s25 + $0x1d24] ss:$16 sps:$4 sm:$0xff]   ;;  %v13298_v30 = vld [vmem:[%s14235_s25 + $0x1d2c] ss:$16 sps:$4 sm:$0xff]  }
 0x43d   : > { %8491 = vmatpush1.bf16.msra.mxu0 %v13197_v31  ;;  %9445 = vmatpush1.bf16.msra.mxu1 %v13200_v32  ;;  %v13293_v31 = vld [vmem:[%s14235_s25 + $0x1d20] ss:$16 sps:$4 sm:$0xff]   ;;  %v13296_v32 = vld [vmem:[%s14235_s25 + $0x1d28] ss:$16 sps:$4 sm:$0xff]  }
 0x43e   : > { %8492 = vmatprep.subr.bf16.mxu0 %v13205_v33  ;;  %9446 = vmatprep.subr.bf16.mxu1 %v13208_v34  ;;  %v13301_v33 = vld [vmem:[%s14235_s25 + $0x1d44] ss:$16 sps:$4 sm:$0xff]   ;;  %v13304_v34 = vld [vmem:[%s14235_s25 + $0x1d4c] ss:$16 sps:$4 sm:$0xff]  }
 0x441   : > { %8493 = vmatpush1.bf16.msra.mxu0 %v13203_v35  ;;  %9447 = vmatpush1.bf16.msra.mxu1 %v13206_v36  ;;  %v13299_v35 = vld [vmem:[%s14235_s25 + $0x1d40] ss:$16 sps:$4 sm:$0xff]   ;;  %v13302_v36 = vld [vmem:[%s14235_s25 + $0x1d48] ss:$16 sps:$4 sm:$0xff]  }
 0x442   : > { %8494 = vmatprep.subr.bf16.mxu0 %v13211_v37  ;;  %9448 = vmatprep.subr.bf16.mxu1 %v13214_v38  ;;  %v13307_v37 = vld [vmem:[%s14235_s25 + $0x1d64] ss:$16 sps:$4 sm:$0xff]   ;;  %v13310_v38 = vld [vmem:[%s14235_s25 + $0x1d6c] ss:$16 sps:$4 sm:$0xff]  }
 0x445   : > { %8495 = vmatpush1.bf16.msra.mxu0 %v13209_v39  ;;  %9449 = vmatpush1.bf16.msra.mxu1 %v13212_v40  ;;  %v13305_v39 = vld [vmem:[%s14235_s25 + $0x1d60] ss:$16 sps:$4 sm:$0xff]   ;;  %v13308_v40 = vld [vmem:[%s14235_s25 + $0x1d68] ss:$16 sps:$4 sm:$0xff]  }
 0x446   : > { %8496 = vmatprep.subr.bf16.mxu0 %v13217_v41  ;;  %9450 = vmatprep.subr.bf16.mxu1 %v13220_v42  ;;  %v13313_v41 = vld [vmem:[%s14235_s25 + $0x1d84] ss:$16 sps:$4 sm:$0xff]   ;;  %v13316_v42 = vld [vmem:[%s14235_s25 + $0x1d8c] ss:$16 sps:$4 sm:$0xff]  }
 0x449   : > { %8497 = vmatpush1.bf16.msra.mxu0 %v13215_v43  ;;  %9451 = vmatpush1.bf16.msra.mxu1 %v13218_v44  ;;  %v13311_v43 = vld [vmem:[%s14235_s25 + $0x1d80] ss:$16 sps:$4 sm:$0xff]   ;;  %v13314_v44 = vld [vmem:[%s14235_s25 + $0x1d88] ss:$16 sps:$4 sm:$0xff]  }
 0x44a   : > { %8498 = vmatprep.subr.bf16.mxu0 %v13225_v45  ;;  %9452 = vmatprep.subr.bf16.mxu1 %v13228_v46  ;;  %v13319_v45 = vld [vmem:[%s14235_s25 + $0x1da4] ss:$16 sps:$4 sm:$0xff]   ;;  %v13322_v46 = vld [vmem:[%s14235_s25 + $0x1dac] ss:$16 sps:$4 sm:$0xff]  }
 0x44d   : > { %8499 = vmatpush1.bf16.msra.mxu0 %v13223_v47  ;;  %9453 = vmatpush1.bf16.msra.mxu1 %v13226_v48  ;;  %v13317_v47 = vld [vmem:[%s14235_s25 + $0x1da0] ss:$16 sps:$4 sm:$0xff]   ;;  %v13320_v48 = vld [vmem:[%s14235_s25 + $0x1da8] ss:$16 sps:$4 sm:$0xff]  }
 0x44e   : > { %8500 = vmatprep.subr.bf16.mxu0 %v13232_v49  ;;  %9454 = vmatprep.subr.bf16.mxu1 %v13235_v50  ;;  %v13327_v49 = vld [vmem:[%s14235_s25 + $0x1dc4] ss:$16 sps:$4 sm:$0xff]   ;;  %v13330_v50 = vld [vmem:[%s14235_s25 + $0x1dcc] ss:$16 sps:$4 sm:$0xff]  }
 0x451   : > { %8501 = vmatpush1.bf16.msra.mxu0 %v13230_v51  ;;  %9455 = vmatpush1.bf16.msra.mxu1 %v13233_v52  ;;  %v13325_v51 = vld [vmem:[%s14235_s25 + $0x1dc0] ss:$16 sps:$4 sm:$0xff]   ;;  %v13328_v52 = vld [vmem:[%s14235_s25 + $0x1dc8] ss:$16 sps:$4 sm:$0xff]  }
 0x452   : > { %8523 = vmatprep.subr.bf16.mxu0 %v13241_v53  ;;  %9477 = vmatprep.subr.bf16.mxu1 %v13244_v54  ;;  %v13334_v53 = vld [vmem:[%s14235_s25 + $0x1de4] ss:$16 sps:$4 sm:$0xff]   ;;  %v13337_v54 = vld [vmem:[%s14235_s25 + $0x1dec] ss:$16 sps:$4 sm:$0xff]  }
 0x454   : > { %8503 = vmatmul.mubr.bf16.vlgmr.msra.gmra.mrb[0].mxu0 %v13236_v55  ;;  %9457 = vmatmul.mubr.bf16.vlgmr.msra.gmra.mrb[0].mxu1 %v13236_v55  ;;  %v13332_v55 = vld [vmem:[%s14235_s25 + $0x1de0] ss:$16 sps:$4 sm:$0xff]  }
 0x455   : > { %8524 = vmatpush1.bf16.msra.mxu0 %v13239_v56  ;;  %9478 = vmatpush1.bf16.msra.mxu1 %v13242_v57  ;;  %v13335_v56 = vld [vmem:[%s14235_s25 + $0x1de8] ss:$16 sps:$4 sm:$0xff]   ;;  %v13343_v57 = vld [vmem:[%s14235_s25 + $0x1e04] ss:$16 sps:$4 sm:$0xff]  }
 0x456   : > { %8525 = vmatprep.subr.bf16.mxu0 %v13247_v58  ;;  %9479 = vmatprep.subr.bf16.mxu1 %v13250_v59  ;;  %v13346_v58 = vld [vmem:[%s14235_s25 + $0x1e0c] ss:$16 sps:$4 sm:$0xff]   ;;  %v13338_v59 = vld [vmem:[#allocation2 + $0x70] ss:$144 sps:$4 sm:$0xff]  }
 0x457   : > { %8512 = vmatprep.mubr.bf16.mxu0 %v13323_v60  ;;  %9466 = vmatprep.mubr.bf16.mxu1 %v13323_v60  ;;  %v13341_v60 = vld [vmem:[%s14235_s25 + $0x1e00] ss:$16 sps:$4 sm:$0xff]  }
 0x459   : > { %8526 = vmatpush1.bf16.msra.mxu0 %v13245_v61  ;;  %9480 = vmatpush1.bf16.msra.mxu1 %v13248_v62  ;;  %v13344_v61 = vld [vmem:[%s14235_s25 + $0x1e08] ss:$16 sps:$4 sm:$0xff]   ;;  %v13349_v62 = vld [vmem:[%s14235_s25 + $0x1e24] ss:$16 sps:$4 sm:$0xff]  }
 0x45a   : > { %8527 = vmatprep.subr.bf16.mxu0 %v13253_v63  ;;  %9481 = vmatprep.subr.bf16.mxu1 %v13256_v0  ;;  %v13352_v63 = vld [vmem:[%s14235_s25 + $0x1e2c] ss:$16 sps:$4 sm:$0xff]   ;;  %v13425_v0 = vld [vmem:[#allocation2 + $0x194] ss:$144 sps:$4 sm:$0xff]  }
 0x45c   : > { %8513 = vmatmul.mubr.bf16.gmra.mrb[4].mxu0 %v13331_v1  ;;  %9467 = vmatmul.mubr.bf16.gmra.mrb[4].mxu1 %v13331_v1  ;;  %v13347_v1 = vld [vmem:[%s14235_s25 + $0x1e20] ss:$16 sps:$4 sm:$0xff]  }
 0x45d   : > { %8528 = vmatpush1.bf16.msra.mxu0 %v13251_v2  ;;  %9482 = vmatpush1.bf16.msra.mxu1 %v13254_v3  ;;  %v13350_v2 = vld [vmem:[%s14235_s25 + $0x1e28] ss:$16 sps:$4 sm:$0xff]   ;;  %v13355_v3 = vld [vmem:[%s14235_s25 + $0x1e44] ss:$16 sps:$4 sm:$0xff]  }
 0x45e   : > { %8529 = vmatprep.subr.bf16.mxu0 %v13259_v4  ;;  %9483 = vmatprep.subr.bf16.mxu1 %v13262_v5  ;;  %v13358_v4 = vld [vmem:[%s14235_s25 + $0x1e4c] ss:$16 sps:$4 sm:$0xff]   ;;  %v13433_v5 = vld [vmem:[#allocation2 + $0x190] ss:$144 sps:$4 sm:$0xff]  }
 0x45f   : > { %8555 = vmatprep.mubr.bf16.mxu0 %v13340_v6  ;;  %9509 = vmatprep.mubr.bf16.mxu1 %v13340_v6  ;;  %v13353_v6 = vld [vmem:[%s14235_s25 + $0x1e40] ss:$16 sps:$4 sm:$0xff]  }
 0x461   : > { %8530 = vmatpush1.bf16.msra.mxu0 %v13257_v7  ;;  %9484 = vmatpush1.bf16.msra.mxu1 %v13260_v8  ;;  %v13356_v7 = vld [vmem:[%s14235_s25 + $0x1e48] ss:$16 sps:$4 sm:$0xff]   ;;  %v13361_v8 = vld [vmem:[%s14235_s25 + $0x1e64] ss:$16 sps:$4 sm:$0xff]  }
 0x462   : > { %8531 = vmatprep.subr.bf16.mxu0 %v13265_v9  ;;  %9485 = vmatprep.subr.bf16.mxu1 %v13268_v10  ;;  %v13364_v9 = vld [vmem:[%s14235_s25 + $0x1e6c] ss:$16 sps:$4 sm:$0xff]  }
 0x463   : > { %v13442_v10 = vld [vmem:[#allocation2 + $0x7c] ss:$144 sps:$4 sm:$0xff]  }
 0x465   : > { %8532 = vmatpush1.bf16.msra.mxu0 %v13263_v11  ;;  %9486 = vmatpush1.bf16.msra.mxu1 %v13266_v12  ;;  %v13359_v11 = vld [vmem:[%s14235_s25 + $0x1e60] ss:$16 sps:$4 sm:$0xff]   ;;  %v13362_v12 = vld [vmem:[%s14235_s25 + $0x1e68] ss:$16 sps:$4 sm:$0xff]  }
 0x466   : > { %8533 = vmatprep.subr.bf16.mxu0 %v13271_v13  ;;  %9487 = vmatprep.subr.bf16.mxu1 %v13274_v14  ;;  %v13367_v13 = vld [vmem:[%s14235_s25 + $0x1e84] ss:$16 sps:$4 sm:$0xff]   ;;  %v13370_v14 = vld [vmem:[%s14235_s25 + $0x1e8c] ss:$16 sps:$4 sm:$0xff]  }
 0x469   : > { %8534 = vmatpush1.bf16.msra.mxu0 %v13269_v15  ;;  %9488 = vmatpush1.bf16.msra.mxu1 %v13272_v16  ;;  %v13365_v15 = vld [vmem:[%s14235_s25 + $0x1e80] ss:$16 sps:$4 sm:$0xff]   ;;  %v13368_v16 = vld [vmem:[%s14235_s25 + $0x1e88] ss:$16 sps:$4 sm:$0xff]  }
 0x46a   : > { %8535 = vmatprep.subr.bf16.mxu0 %v13277_v17  ;;  %9489 = vmatprep.subr.bf16.mxu1 %v13280_v18  ;;  %v13373_v17 = vld [vmem:[%s14235_s25 + $0x1ea4] ss:$16 sps:$4 sm:$0xff]   ;;  %v13376_v18 = vld [vmem:[%s14235_s25 + $0x1eac] ss:$16 sps:$4 sm:$0xff]  }
 0x46d   : > { %8536 = vmatpush1.bf16.msra.mxu0 %v13275_v19  ;;  %9490 = vmatpush1.bf16.msra.mxu1 %v13278_v20  ;;  %v13371_v19 = vld [vmem:[%s14235_s25 + $0x1ea0] ss:$16 sps:$4 sm:$0xff]   ;;  %v13374_v20 = vld [vmem:[%s14235_s25 + $0x1ea8] ss:$16 sps:$4 sm:$0xff]  }
 0x46e   : > { %8537 = vmatprep.subr.bf16.mxu0 %v13283_v21  ;;  %9491 = vmatprep.subr.bf16.mxu1 %v13286_v22  ;;  %v13379_v21 = vld [vmem:[%s14235_s25 + $0x1ec4] ss:$16 sps:$4 sm:$0xff]   ;;  %v13382_v22 = vld [vmem:[%s14235_s25 + $0x1ecc] ss:$16 sps:$4 sm:$0xff]  }
 0x471   : > { %8538 = vmatpush1.bf16.msra.mxu0 %v13281_v23  ;;  %9492 = vmatpush1.bf16.msra.mxu1 %v13284_v24  ;;  %v13377_v23 = vld [vmem:[%s14235_s25 + $0x1ec0] ss:$16 sps:$4 sm:$0xff]   ;;  %v13380_v24 = vld [vmem:[%s14235_s25 + $0x1ec8] ss:$16 sps:$4 sm:$0xff]  }
 0x472   : > { %8539 = vmatprep.subr.bf16.mxu0 %v13289_v25  ;;  %9493 = vmatprep.subr.bf16.mxu1 %v13292_v26  ;;  %v13385_v25 = vld [vmem:[%s14235_s25 + $0x1ee4] ss:$16 sps:$4 sm:$0xff]   ;;  %v13388_v26 = vld [vmem:[%s14235_s25 + $0x1eec] ss:$16 sps:$4 sm:$0xff]  }
 0x475   : > { %8540 = vmatpush1.bf16.msra.mxu0 %v13287_v27  ;;  %9494 = vmatpush1.bf16.msra.mxu1 %v13290_v28  ;;  %v13383_v27 = vld [vmem:[%s14235_s25 + $0x1ee0] ss:$16 sps:$4 sm:$0xff]   ;;  %v13386_v28 = vld [vmem:[%s14235_s25 + $0x1ee8] ss:$16 sps:$4 sm:$0xff]  }
 0x476   : > { %8541 = vmatprep.subr.bf16.mxu0 %v13295_v29  ;;  %9495 = vmatprep.subr.bf16.mxu1 %v13298_v30  ;;  %v13391_v29 = vld [vmem:[%s14235_s25 + $0x1f04] ss:$16 sps:$4 sm:$0xff]   ;;  %v13394_v30 = vld [vmem:[%s14235_s25 + $0x1f0c] ss:$16 sps:$4 sm:$0xff]  }
 0x479   : > { %8542 = vmatpush1.bf16.msra.mxu0 %v13293_v31  ;;  %9496 = vmatpush1.bf16.msra.mxu1 %v13296_v32  ;;  %v13389_v31 = vld [vmem:[%s14235_s25 + $0x1f00] ss:$16 sps:$4 sm:$0xff]   ;;  %v13392_v32 = vld [vmem:[%s14235_s25 + $0x1f08] ss:$16 sps:$4 sm:$0xff]  }
 0x47a   : > { %8543 = vmatprep.subr.bf16.mxu0 %v13301_v33  ;;  %9497 = vmatprep.subr.bf16.mxu1 %v13304_v34  ;;  %v13397_v33 = vld [vmem:[%s14235_s25 + $0x1f24] ss:$16 sps:$4 sm:$0xff]   ;;  %v13400_v34 = vld [vmem:[%s14235_s25 + $0x1f2c] ss:$16 sps:$4 sm:$0xff]  }
 0x47d   : > { %8544 = vmatpush1.bf16.msra.mxu0 %v13299_v35  ;;  %9498 = vmatpush1.bf16.msra.mxu1 %v13302_v36  ;;  %v13395_v35 = vld [vmem:[%s14235_s25 + $0x1f20] ss:$16 sps:$4 sm:$0xff]   ;;  %v13398_v36 = vld [vmem:[%s14235_s25 + $0x1f28] ss:$16 sps:$4 sm:$0xff]  }
 0x47e   : > { %8545 = vmatprep.subr.bf16.mxu0 %v13307_v37  ;;  %9499 = vmatprep.subr.bf16.mxu1 %v13310_v38  ;;  %v13403_v37 = vld [vmem:[%s14235_s25 + $0x1f44] ss:$16 sps:$4 sm:$0xff]   ;;  %v13406_v38 = vld [vmem:[%s14235_s25 + $0x1f4c] ss:$16 sps:$4 sm:$0xff]  }
 0x481   : > { %8546 = vmatpush1.bf16.msra.mxu0 %v13305_v39  ;;  %9500 = vmatpush1.bf16.msra.mxu1 %v13308_v40  ;;  %v13401_v39 = vld [vmem:[%s14235_s25 + $0x1f40] ss:$16 sps:$4 sm:$0xff]   ;;  %v13404_v40 = vld [vmem:[%s14235_s25 + $0x1f48] ss:$16 sps:$4 sm:$0xff]  }
 0x482   : > { %8547 = vmatprep.subr.bf16.mxu0 %v13313_v41  ;;  %9501 = vmatprep.subr.bf16.mxu1 %v13316_v42  ;;  %v13409_v41 = vld [vmem:[%s14235_s25 + $0x1f64] ss:$16 sps:$4 sm:$0xff]   ;;  %v13412_v42 = vld [vmem:[%s14235_s25 + $0x1f6c] ss:$16 sps:$4 sm:$0xff]  }
 0x485   : > { %8548 = vmatpush1.bf16.msra.mxu0 %v13311_v43  ;;  %9502 = vmatpush1.bf16.msra.mxu1 %v13314_v44  ;;  %v13407_v43 = vld [vmem:[%s14235_s25 + $0x1f60] ss:$16 sps:$4 sm:$0xff]   ;;  %v13410_v44 = vld [vmem:[%s14235_s25 + $0x1f68] ss:$16 sps:$4 sm:$0xff]  }
 0x486   : > { %8549 = vmatprep.subr.bf16.mxu0 %v13319_v45  ;;  %9503 = vmatprep.subr.bf16.mxu1 %v13322_v46  ;;  %v13415_v45 = vld [vmem:[%s14235_s25 + $0x1f84] ss:$16 sps:$4 sm:$0xff]   ;;  %v13418_v46 = vld [vmem:[%s14235_s25 + $0x1f8c] ss:$16 sps:$4 sm:$0xff]  }
 0x489   : > { %8550 = vmatpush1.bf16.msra.mxu0 %v13317_v47  ;;  %9504 = vmatpush1.bf16.msra.mxu1 %v13320_v48  ;;  %v13413_v47 = vld [vmem:[%s14235_s25 + $0x1f80] ss:$16 sps:$4 sm:$0xff]   ;;  %v13416_v48 = vld [vmem:[%s14235_s25 + $0x1f88] ss:$16 sps:$4 sm:$0xff]  }
 0x48a   : > { %8551 = vmatprep.subr.bf16.mxu0 %v13327_v49  ;;  %9505 = vmatprep.subr.bf16.mxu1 %v13330_v50  ;;  %v13421_v49 = vld [vmem:[%s14235_s25 + $0x1fa4] ss:$16 sps:$4 sm:$0xff]   ;;  %v13424_v50 = vld [vmem:[%s14235_s25 + $0x1fac] ss:$16 sps:$4 sm:$0xff]  }
 0x48d   : > { %8552 = vmatpush1.bf16.msra.mxu0 %v13325_v51  ;;  %9506 = vmatpush1.bf16.msra.mxu1 %v13328_v52  ;;  %v13419_v51 = vld [vmem:[%s14235_s25 + $0x1fa0] ss:$16 sps:$4 sm:$0xff]   ;;  %v13422_v52 = vld [vmem:[%s14235_s25 + $0x1fa8] ss:$16 sps:$4 sm:$0xff]  }
 0x48e   : > { %8553 = vmatprep.subr.bf16.mxu0 %v13334_v53  ;;  %9507 = vmatprep.subr.bf16.mxu1 %v13337_v54  ;;  %v13429_v53 = vld [vmem:[%s14235_s25 + $0x1fc4] ss:$16 sps:$4 sm:$0xff]   ;;  %v13432_v54 = vld [vmem:[%s14235_s25 + $0x1fcc] ss:$16 sps:$4 sm:$0xff]  }
 0x491   : > { %8554 = vmatpush1.bf16.msra.mxu0 %v13332_v55  ;;  %9508 = vmatpush1.bf16.msra.mxu1 %v13335_v56  ;;  %v13427_v55 = vld [vmem:[%s14235_s25 + $0x1fc0] ss:$16 sps:$4 sm:$0xff]   ;;  %v13430_v56 = vld [vmem:[%s14235_s25 + $0x1fc8] ss:$16 sps:$4 sm:$0xff]  }
 0x492   : > { %8576 = vmatprep.subr.bf16.mxu0 %v13343_v57  ;;  %9530 = vmatprep.subr.bf16.mxu1 %v13346_v58  ;;  %v13436_v57 = vld [vmem:[%s14235_s25 + $0x1fe4] ss:$16 sps:$4 sm:$0xff]   ;;  %v13439_v58 = vld [vmem:[%s14235_s25 + $0x1fec] ss:$16 sps:$4 sm:$0xff]  }
 0x494   : > { %8556 = vmatmul.mubr.bf16.vlgmr.msra.gmra.mrb[0].mxu0 %v13338_v59  ;;  %9510 = vmatmul.mubr.bf16.vlgmr.msra.gmra.mrb[0].mxu1 %v13338_v59  ;;  %v13434_v59 = vld [vmem:[%s14235_s25 + $0x1fe0] ss:$16 sps:$4 sm:$0xff]  }
 0x495   : > { %8577 = vmatpush1.bf16.msra.mxu0 %v13341_v60  ;;  %9531 = vmatpush1.bf16.msra.mxu1 %v13344_v61  ;;  %v13437_v60 = vld [vmem:[%s14235_s25 + $0x1fe8] ss:$16 sps:$4 sm:$0xff]   ;;  %v13445_v61 = vld [vmem:[%s14235_s25 + $0x2004] ss:$16 sps:$4 sm:$0xff]  }
 0x496   : > { %8578 = vmatprep.subr.bf16.mxu0 %v13349_v62  ;;  %9532 = vmatprep.subr.bf16.mxu1 %v13352_v63  ;;  %v13448_v62 = vld [vmem:[%s14235_s25 + $0x200c] ss:$16 sps:$4 sm:$0xff]   ;;  %v13440_v63 = vld [vmem:[#allocation2 + $0x78] ss:$144 sps:$4 sm:$0xff]  }
 0x497   : > { %8565 = vmatprep.mubr.bf16.mxu0 %v13425_v0  ;;  %9519 = vmatprep.mubr.bf16.mxu1 %v13425_v0  ;;  %v13443_v0 = vld [vmem:[%s14235_s25 + $0x2000] ss:$16 sps:$4 sm:$0xff]  }
 0x499   : > { %8579 = vmatpush1.bf16.msra.mxu0 %v13347_v1  ;;  %9533 = vmatpush1.bf16.msra.mxu1 %v13350_v2  ;;  %v13446_v1 = vld [vmem:[%s14235_s25 + $0x2008] ss:$16 sps:$4 sm:$0xff]   ;;  %v13451_v2 = vld [vmem:[%s14235_s25 + $0x2024] ss:$16 sps:$4 sm:$0xff]  }
 0x49a   : > { %8580 = vmatprep.subr.bf16.mxu0 %v13355_v3  ;;  %9534 = vmatprep.subr.bf16.mxu1 %v13358_v4  ;;  %v13454_v3 = vld [vmem:[%s14235_s25 + $0x202c] ss:$16 sps:$4 sm:$0xff]  }
 0x49b   : > { %v13527_v4 = vld [vmem:[#allocation2 + $0x19c] ss:$144 sps:$4 sm:$0xff]  }
 0x49c   : > { %8566 = vmatmul.mubr.bf16.gmra.mrb[4].mxu0 %v13433_v5  ;;  %9520 = vmatmul.mubr.bf16.gmra.mrb[4].mxu1 %v13433_v5  ;;  %v13449_v5 = vld [vmem:[%s14235_s25 + $0x2020] ss:$16 sps:$4 sm:$0xff]  }
 0x49d   : > { %8581 = vmatpush1.bf16.msra.mxu0 %v13353_v6  ;;  %9535 = vmatpush1.bf16.msra.mxu1 %v13356_v7  ;;  %v13452_v6 = vld [vmem:[%s14235_s25 + $0x2028] ss:$16 sps:$4 sm:$0xff]   ;;  %v13457_v7 = vld [vmem:[%s14235_s25 + $0x2044] ss:$16 sps:$4 sm:$0xff]  }
 0x49e   : > { %8582 = vmatprep.subr.bf16.mxu0 %v13361_v8  ;;  %9536 = vmatprep.subr.bf16.mxu1 %v13364_v9  ;;  %v13460_v8 = vld [vmem:[%s14235_s25 + $0x204c] ss:$16 sps:$4 sm:$0xff]   ;;  %v13535_v9 = vld [vmem:[#allocation2 + $0x198] ss:$144 sps:$4 sm:$0xff]  }
 0x49f   : > { %8608 = vmatprep.mubr.bf16.mxu0 %v13442_v10  ;;  %9562 = vmatprep.mubr.bf16.mxu1 %v13442_v10  ;;  %v13455_v10 = vld [vmem:[%s14235_s25 + $0x2040] ss:$16 sps:$4 sm:$0xff]  }
 0x4a1   : > { %8583 = vmatpush1.bf16.msra.mxu0 %v13359_v11  ;;  %9537 = vmatpush1.bf16.msra.mxu1 %v13362_v12  ;;  %v13458_v11 = vld [vmem:[%s14235_s25 + $0x2048] ss:$16 sps:$4 sm:$0xff]   ;;  %v13463_v12 = vld [vmem:[%s14235_s25 + $0x2064] ss:$16 sps:$4 sm:$0xff]  }
 0x4a2   : > { %8584 = vmatprep.subr.bf16.mxu0 %v13367_v13  ;;  %9538 = vmatprep.subr.bf16.mxu1 %v13370_v14  ;;  %v13466_v13 = vld [vmem:[%s14235_s25 + $0x206c] ss:$16 sps:$4 sm:$0xff]   ;;  %v13544_v14 = vld [vmem:[#allocation2 + $0x84] ss:$144 sps:$4 sm:$0xff]  }
 0x4a5   : > { %8585 = vmatpush1.bf16.msra.mxu0 %v13365_v15  ;;  %9539 = vmatpush1.bf16.msra.mxu1 %v13368_v16  ;;  %v13461_v15 = vld [vmem:[%s14235_s25 + $0x2060] ss:$16 sps:$4 sm:$0xff]   ;;  %v13464_v16 = vld [vmem:[%s14235_s25 + $0x2068] ss:$16 sps:$4 sm:$0xff]  }
 0x4a6   : > { %8586 = vmatprep.subr.bf16.mxu0 %v13373_v17  ;;  %9540 = vmatprep.subr.bf16.mxu1 %v13376_v18  ;;  %v13469_v17 = vld [vmem:[%s14235_s25 + $0x2084] ss:$16 sps:$4 sm:$0xff]   ;;  %v13472_v18 = vld [vmem:[%s14235_s25 + $0x208c] ss:$16 sps:$4 sm:$0xff]  }
 0x4a9   : > { %8587 = vmatpush1.bf16.msra.mxu0 %v13371_v19  ;;  %9541 = vmatpush1.bf16.msra.mxu1 %v13374_v20  ;;  %v13467_v19 = vld [vmem:[%s14235_s25 + $0x2080] ss:$16 sps:$4 sm:$0xff]   ;;  %v13470_v20 = vld [vmem:[%s14235_s25 + $0x2088] ss:$16 sps:$4 sm:$0xff]  }
 0x4aa   : > { %8588 = vmatprep.subr.bf16.mxu0 %v13379_v21  ;;  %9542 = vmatprep.subr.bf16.mxu1 %v13382_v22  ;;  %v13475_v21 = vld [vmem:[%s14235_s25 + $0x20a4] ss:$16 sps:$4 sm:$0xff]   ;;  %v13478_v22 = vld [vmem:[%s14235_s25 + $0x20ac] ss:$16 sps:$4 sm:$0xff]  }
 0x4ad   : > { %8589 = vmatpush1.bf16.msra.mxu0 %v13377_v23  ;;  %9543 = vmatpush1.bf16.msra.mxu1 %v13380_v24  ;;  %v13473_v23 = vld [vmem:[%s14235_s25 + $0x20a0] ss:$16 sps:$4 sm:$0xff]   ;;  %v13476_v24 = vld [vmem:[%s14235_s25 + $0x20a8] ss:$16 sps:$4 sm:$0xff]  }
 0x4ae   : > { %8590 = vmatprep.subr.bf16.mxu0 %v13385_v25  ;;  %9544 = vmatprep.subr.bf16.mxu1 %v13388_v26  ;;  %v13481_v25 = vld [vmem:[%s14235_s25 + $0x20c4] ss:$16 sps:$4 sm:$0xff]   ;;  %v13484_v26 = vld [vmem:[%s14235_s25 + $0x20cc] ss:$16 sps:$4 sm:$0xff]  }
 0x4b1   : > { %8591 = vmatpush1.bf16.msra.mxu0 %v13383_v27  ;;  %9545 = vmatpush1.bf16.msra.mxu1 %v13386_v28  ;;  %v13479_v27 = vld [vmem:[%s14235_s25 + $0x20c0] ss:$16 sps:$4 sm:$0xff]   ;;  %v13482_v28 = vld [vmem:[%s14235_s25 + $0x20c8] ss:$16 sps:$4 sm:$0xff]  }
 0x4b2   : > { %8592 = vmatprep.subr.bf16.mxu0 %v13391_v29  ;;  %9546 = vmatprep.subr.bf16.mxu1 %v13394_v30  ;;  %v13487_v29 = vld [vmem:[%s14235_s25 + $0x20e4] ss:$16 sps:$4 sm:$0xff]   ;;  %v13490_v30 = vld [vmem:[%s14235_s25 + $0x20ec] ss:$16 sps:$4 sm:$0xff]  }
 0x4b5   : > { %8593 = vmatpush1.bf16.msra.mxu0 %v13389_v31  ;;  %9547 = vmatpush1.bf16.msra.mxu1 %v13392_v32  ;;  %v13485_v31 = vld [vmem:[%s14235_s25 + $0x20e0] ss:$16 sps:$4 sm:$0xff]   ;;  %v13488_v32 = vld [vmem:[%s14235_s25 + $0x20e8] ss:$16 sps:$4 sm:$0xff]  }
 0x4b6   : > { %8594 = vmatprep.subr.bf16.mxu0 %v13397_v33  ;;  %9548 = vmatprep.subr.bf16.mxu1 %v13400_v34  ;;  %v13493_v33 = vld [vmem:[%s14235_s25 + $0x2104] ss:$16 sps:$4 sm:$0xff]   ;;  %v13496_v34 = vld [vmem:[%s14235_s25 + $0x210c] ss:$16 sps:$4 sm:$0xff]  }
 0x4b9   : > { %8595 = vmatpush1.bf16.msra.mxu0 %v13395_v35  ;;  %9549 = vmatpush1.bf16.msra.mxu1 %v13398_v36  ;;  %v13491_v35 = vld [vmem:[%s14235_s25 + $0x2100] ss:$16 sps:$4 sm:$0xff]   ;;  %v13494_v36 = vld [vmem:[%s14235_s25 + $0x2108] ss:$16 sps:$4 sm:$0xff]  }
 0x4ba   : > { %8596 = vmatprep.subr.bf16.mxu0 %v13403_v37  ;;  %9550 = vmatprep.subr.bf16.mxu1 %v13406_v38  ;;  %v13499_v37 = vld [vmem:[%s14235_s25 + $0x2124] ss:$16 sps:$4 sm:$0xff]   ;;  %v13502_v38 = vld [vmem:[%s14235_s25 + $0x212c] ss:$16 sps:$4 sm:$0xff]  }
 0x4bd   : > { %8597 = vmatpush1.bf16.msra.mxu0 %v13401_v39  ;;  %9551 = vmatpush1.bf16.msra.mxu1 %v13404_v40  ;;  %v13497_v39 = vld [vmem:[%s14235_s25 + $0x2120] ss:$16 sps:$4 sm:$0xff]   ;;  %v13500_v40 = vld [vmem:[%s14235_s25 + $0x2128] ss:$16 sps:$4 sm:$0xff]  }
 0x4be   : > { %8598 = vmatprep.subr.bf16.mxu0 %v13409_v41  ;;  %9552 = vmatprep.subr.bf16.mxu1 %v13412_v42  ;;  %v13505_v41 = vld [vmem:[%s14235_s25 + $0x2144] ss:$16 sps:$4 sm:$0xff]   ;;  %v13508_v42 = vld [vmem:[%s14235_s25 + $0x214c] ss:$16 sps:$4 sm:$0xff]  }
 0x4c1   : > { %8599 = vmatpush1.bf16.msra.mxu0 %v13407_v43  ;;  %9553 = vmatpush1.bf16.msra.mxu1 %v13410_v44  ;;  %v13503_v43 = vld [vmem:[%s14235_s25 + $0x2140] ss:$16 sps:$4 sm:$0xff]   ;;  %v13506_v44 = vld [vmem:[%s14235_s25 + $0x2148] ss:$16 sps:$4 sm:$0xff]  }
 0x4c2   : > { %8600 = vmatprep.subr.bf16.mxu0 %v13415_v45  ;;  %9554 = vmatprep.subr.bf16.mxu1 %v13418_v46  ;;  %v13511_v45 = vld [vmem:[%s14235_s25 + $0x2164] ss:$16 sps:$4 sm:$0xff]   ;;  %v13514_v46 = vld [vmem:[%s14235_s25 + $0x216c] ss:$16 sps:$4 sm:$0xff]  }
 0x4c5   : > { %8601 = vmatpush1.bf16.msra.mxu0 %v13413_v47  ;;  %9555 = vmatpush1.bf16.msra.mxu1 %v13416_v48  ;;  %v13509_v47 = vld [vmem:[%s14235_s25 + $0x2160] ss:$16 sps:$4 sm:$0xff]   ;;  %v13512_v48 = vld [vmem:[%s14235_s25 + $0x2168] ss:$16 sps:$4 sm:$0xff]  }
 0x4c6   : > { %8602 = vmatprep.subr.bf16.mxu0 %v13421_v49  ;;  %9556 = vmatprep.subr.bf16.mxu1 %v13424_v50  ;;  %v13517_v49 = vld [vmem:[%s14235_s25 + $0x2184] ss:$16 sps:$4 sm:$0xff]   ;;  %v13520_v50 = vld [vmem:[%s14235_s25 + $0x218c] ss:$16 sps:$4 sm:$0xff]  }
 0x4c9   : > { %8603 = vmatpush1.bf16.msra.mxu0 %v13419_v51  ;;  %9557 = vmatpush1.bf16.msra.mxu1 %v13422_v52  ;;  %v13515_v51 = vld [vmem:[%s14235_s25 + $0x2180] ss:$16 sps:$4 sm:$0xff]   ;;  %v13518_v52 = vld [vmem:[%s14235_s25 + $0x2188] ss:$16 sps:$4 sm:$0xff]  }
 0x4ca   : > { %8604 = vmatprep.subr.bf16.mxu0 %v13429_v53  ;;  %9558 = vmatprep.subr.bf16.mxu1 %v13432_v54  ;;  %v13523_v53 = vld [vmem:[%s14235_s25 + $0x21a4] ss:$16 sps:$4 sm:$0xff]   ;;  %v13526_v54 = vld [vmem:[%s14235_s25 + $0x21ac] ss:$16 sps:$4 sm:$0xff]  }
 0x4cd   : > { %8605 = vmatpush1.bf16.msra.mxu0 %v13427_v55  ;;  %9559 = vmatpush1.bf16.msra.mxu1 %v13430_v56  ;;  %v13521_v55 = vld [vmem:[%s14235_s25 + $0x21a0] ss:$16 sps:$4 sm:$0xff]   ;;  %v13524_v56 = vld [vmem:[%s14235_s25 + $0x21a8] ss:$16 sps:$4 sm:$0xff]  }
 0x4ce   : > { %8606 = vmatprep.subr.bf16.mxu0 %v13436_v57  ;;  %9560 = vmatprep.subr.bf16.mxu1 %v13439_v58  ;;  %v13531_v57 = vld [vmem:[%s14235_s25 + $0x21c4] ss:$16 sps:$4 sm:$0xff]   ;;  %v13534_v58 = vld [vmem:[%s14235_s25 + $0x21cc] ss:$16 sps:$4 sm:$0xff]  }
 0x4d1   : > { %8607 = vmatpush1.bf16.msra.mxu0 %v13434_v59  ;;  %9561 = vmatpush1.bf16.msra.mxu1 %v13437_v60  ;;  %v13529_v59 = vld [vmem:[%s14235_s25 + $0x21c0] ss:$16 sps:$4 sm:$0xff]   ;;  %v13532_v60 = vld [vmem:[%s14235_s25 + $0x21c8] ss:$16 sps:$4 sm:$0xff]  }
 0x4d2   : > { %8629 = vmatprep.subr.bf16.mxu0 %v13445_v61  ;;  %9583 = vmatprep.subr.bf16.mxu1 %v13448_v62  ;;  %v13538_v61 = vld [vmem:[%s14235_s25 + $0x21e4] ss:$16 sps:$4 sm:$0xff]   ;;  %v13541_v62 = vld [vmem:[%s14235_s25 + $0x21ec] ss:$16 sps:$4 sm:$0xff]  }
 0x4d4   : > { %8609 = vmatmul.mubr.bf16.vlgmr.msra.gmra.mrb[0].mxu0 %v13440_v63  ;;  %9563 = vmatmul.mubr.bf16.vlgmr.msra.gmra.mrb[0].mxu1 %v13440_v63  ;;  %v13536_v63 = vld [vmem:[%s14235_s25 + $0x21e0] ss:$16 sps:$4 sm:$0xff]  }
 0x4d5   : > { %8630 = vmatpush1.bf16.msra.mxu0 %v13443_v0  ;;  %9584 = vmatpush1.bf16.msra.mxu1 %v13446_v1  ;;  %v13539_v0 = vld [vmem:[%s14235_s25 + $0x21e8] ss:$16 sps:$4 sm:$0xff]   ;;  %v13547_v1 = vld [vmem:[%s14235_s25 + $0x2204] ss:$16 sps:$4 sm:$0xff]  }
 0x4d6   : > { %8631 = vmatprep.subr.bf16.mxu0 %v13451_v2  ;;  %9585 = vmatprep.subr.bf16.mxu1 %v13454_v3  ;;  %v13550_v2 = vld [vmem:[%s14235_s25 + $0x220c] ss:$16 sps:$4 sm:$0xff]   ;;  %v13542_v3 = vld [vmem:[#allocation2 + $0x80] ss:$144 sps:$4 sm:$0xff]  }
 0x4d7   : > { %8618 = vmatprep.mubr.bf16.mxu0 %v13527_v4  ;;  %9572 = vmatprep.mubr.bf16.mxu1 %v13527_v4  ;;  %v13545_v4 = vld [vmem:[%s14235_s25 + $0x2200] ss:$16 sps:$4 sm:$0xff]  }
 0x4d9   : > { %8632 = vmatpush1.bf16.msra.mxu0 %v13449_v5  ;;  %9586 = vmatpush1.bf16.msra.mxu1 %v13452_v6  ;;  %v13548_v5 = vld [vmem:[%s14235_s25 + $0x2208] ss:$16 sps:$4 sm:$0xff]   ;;  %v13553_v6 = vld [vmem:[%s14235_s25 + $0x2224] ss:$16 sps:$4 sm:$0xff]  }
 0x4da   : > { %8633 = vmatprep.subr.bf16.mxu0 %v13457_v7  ;;  %9587 = vmatprep.subr.bf16.mxu1 %v13460_v8  ;;  %v13556_v7 = vld [vmem:[%s14235_s25 + $0x222c] ss:$16 sps:$4 sm:$0xff]   ;;  %v13629_v8 = vld [vmem:[#allocation2 + $0x1a4] ss:$144 sps:$4 sm:$0xff]  }
 0x4dc   : > { %8619 = vmatmul.mubr.bf16.gmra.mrb[4].mxu0 %v13535_v9  ;;  %9573 = vmatmul.mubr.bf16.gmra.mrb[4].mxu1 %v13535_v9  ;;  %v13551_v9 = vld [vmem:[%s14235_s25 + $0x2220] ss:$16 sps:$4 sm:$0xff]  }
 0x4dd   : > { %8634 = vmatpush1.bf16.msra.mxu0 %v13455_v10  ;;  %9588 = vmatpush1.bf16.msra.mxu1 %v13458_v11  ;;  %v13554_v10 = vld [vmem:[%s14235_s25 + $0x2228] ss:$16 sps:$4 sm:$0xff]   ;;  %v13559_v11 = vld [vmem:[%s14235_s25 + $0x2244] ss:$16 sps:$4 sm:$0xff]  }
 0x4de   : > { %8635 = vmatprep.subr.bf16.mxu0 %v13463_v12  ;;  %9589 = vmatprep.subr.bf16.mxu1 %v13466_v13  ;;  %v13562_v12 = vld [vmem:[%s14235_s25 + $0x224c] ss:$16 sps:$4 sm:$0xff]   ;;  %v13631_v13 = vld [vmem:[#allocation2 + $0x1a0] ss:$144 sps:$4 sm:$0xff]  }
 0x4df   : > { %8661 = vmatprep.mubr.bf16.mxu0 %v13544_v14  ;;  %9615 = vmatprep.mubr.bf16.mxu1 %v13544_v14  ;;  %v13557_v14 = vld [vmem:[%s14235_s25 + $0x2240] ss:$16 sps:$4 sm:$0xff]  }
 0x4e1   : > { %8636 = vmatpush1.bf16.msra.mxu0 %v13461_v15  ;;  %9590 = vmatpush1.bf16.msra.mxu1 %v13464_v16  ;;  %v13560_v15 = vld [vmem:[%s14235_s25 + $0x2248] ss:$16 sps:$4 sm:$0xff]   ;;  %v13565_v16 = vld [vmem:[%s14235_s25 + $0x2264] ss:$16 sps:$4 sm:$0xff]  }
 0x4e2   : > { %8637 = vmatprep.subr.bf16.mxu0 %v13469_v17  ;;  %9591 = vmatprep.subr.bf16.mxu1 %v13472_v18  ;;  %v13568_v17 = vld [vmem:[%s14235_s25 + $0x226c] ss:$16 sps:$4 sm:$0xff]  }
 0x4e3   : > { %v13646_v18 = vld [vmem:[#allocation2 + $0x8c] ss:$144 sps:$4 sm:$0xff]  }
 0x4e5   : > { %8638 = vmatpush1.bf16.msra.mxu0 %v13467_v19  ;;  %9592 = vmatpush1.bf16.msra.mxu1 %v13470_v20  ;;  %v13563_v19 = vld [vmem:[%s14235_s25 + $0x2260] ss:$16 sps:$4 sm:$0xff]   ;;  %v13566_v20 = vld [vmem:[%s14235_s25 + $0x2268] ss:$16 sps:$4 sm:$0xff]  }
 0x4e6   : > { %8639 = vmatprep.subr.bf16.mxu0 %v13475_v21  ;;  %9593 = vmatprep.subr.bf16.mxu1 %v13478_v22  ;;  %v13571_v21 = vld [vmem:[%s14235_s25 + $0x2284] ss:$16 sps:$4 sm:$0xff]   ;;  %v13574_v22 = vld [vmem:[%s14235_s25 + $0x228c] ss:$16 sps:$4 sm:$0xff]  }
 0x4e9   : > { %8640 = vmatpush1.bf16.msra.mxu0 %v13473_v23  ;;  %9594 = vmatpush1.bf16.msra.mxu1 %v13476_v24  ;;  %v13569_v23 = vld [vmem:[%s14235_s25 + $0x2280] ss:$16 sps:$4 sm:$0xff]   ;;  %v13572_v24 = vld [vmem:[%s14235_s25 + $0x2288] ss:$16 sps:$4 sm:$0xff]  }
 0x4ea   : > { %8641 = vmatprep.subr.bf16.mxu0 %v13481_v25  ;;  %9595 = vmatprep.subr.bf16.mxu1 %v13484_v26  ;;  %v13577_v25 = vld [vmem:[%s14235_s25 + $0x22a4] ss:$16 sps:$4 sm:$0xff]   ;;  %v13580_v26 = vld [vmem:[%s14235_s25 + $0x22ac] ss:$16 sps:$4 sm:$0xff]  }
 0x4ed   : > { %8642 = vmatpush1.bf16.msra.mxu0 %v13479_v27  ;;  %9596 = vmatpush1.bf16.msra.mxu1 %v13482_v28  ;;  %v13575_v27 = vld [vmem:[%s14235_s25 + $0x22a0] ss:$16 sps:$4 sm:$0xff]   ;;  %v13578_v28 = vld [vmem:[%s14235_s25 + $0x22a8] ss:$16 sps:$4 sm:$0xff]  }
 0x4ee   : > { %8643 = vmatprep.subr.bf16.mxu0 %v13487_v29  ;;  %9597 = vmatprep.subr.bf16.mxu1 %v13490_v30  ;;  %v13583_v29 = vld [vmem:[%s14235_s25 + $0x22c4] ss:$16 sps:$4 sm:$0xff]   ;;  %v13586_v30 = vld [vmem:[%s14235_s25 + $0x22cc] ss:$16 sps:$4 sm:$0xff]  }
 0x4f1   : > { %8644 = vmatpush1.bf16.msra.mxu0 %v13485_v31  ;;  %9598 = vmatpush1.bf16.msra.mxu1 %v13488_v32  ;;  %v13581_v31 = vld [vmem:[%s14235_s25 + $0x22c0] ss:$16 sps:$4 sm:$0xff]   ;;  %v13584_v32 = vld [vmem:[%s14235_s25 + $0x22c8] ss:$16 sps:$4 sm:$0xff]  }
 0x4f2   : > { %8645 = vmatprep.subr.bf16.mxu0 %v13493_v33  ;;  %9599 = vmatprep.subr.bf16.mxu1 %v13496_v34  ;;  %v13589_v33 = vld [vmem:[%s14235_s25 + $0x22e4] ss:$16 sps:$4 sm:$0xff]   ;;  %v13592_v34 = vld [vmem:[%s14235_s25 + $0x22ec] ss:$16 sps:$4 sm:$0xff]  }
 0x4f5   : > { %8646 = vmatpush1.bf16.msra.mxu0 %v13491_v35  ;;  %9600 = vmatpush1.bf16.msra.mxu1 %v13494_v36  ;;  %v13587_v35 = vld [vmem:[%s14235_s25 + $0x22e0] ss:$16 sps:$4 sm:$0xff]   ;;  %v13590_v36 = vld [vmem:[%s14235_s25 + $0x22e8] ss:$16 sps:$4 sm:$0xff]  }
 0x4f6   : > { %8647 = vmatprep.subr.bf16.mxu0 %v13499_v37  ;;  %9601 = vmatprep.subr.bf16.mxu1 %v13502_v38  ;;  %v13595_v37 = vld [vmem:[%s14235_s25 + $0x2304] ss:$16 sps:$4 sm:$0xff]   ;;  %v13598_v38 = vld [vmem:[%s14235_s25 + $0x230c] ss:$16 sps:$4 sm:$0xff]  }
 0x4f9   : > { %8648 = vmatpush1.bf16.msra.mxu0 %v13497_v39  ;;  %9602 = vmatpush1.bf16.msra.mxu1 %v13500_v40  ;;  %v13593_v39 = vld [vmem:[%s14235_s25 + $0x2300] ss:$16 sps:$4 sm:$0xff]   ;;  %v13596_v40 = vld [vmem:[%s14235_s25 + $0x2308] ss:$16 sps:$4 sm:$0xff]  }
 0x4fa   : > { %8649 = vmatprep.subr.bf16.mxu0 %v13505_v41  ;;  %9603 = vmatprep.subr.bf16.mxu1 %v13508_v42  ;;  %v13601_v41 = vld [vmem:[%s14235_s25 + $0x2324] ss:$16 sps:$4 sm:$0xff]   ;;  %v13604_v42 = vld [vmem:[%s14235_s25 + $0x232c] ss:$16 sps:$4 sm:$0xff]  }
 0x4fd   : > { %8650 = vmatpush1.bf16.msra.mxu0 %v13503_v43  ;;  %9604 = vmatpush1.bf16.msra.mxu1 %v13506_v44  ;;  %v13599_v43 = vld [vmem:[%s14235_s25 + $0x2320] ss:$16 sps:$4 sm:$0xff]   ;;  %v13602_v44 = vld [vmem:[%s14235_s25 + $0x2328] ss:$16 sps:$4 sm:$0xff]  }
 0x4fe   : > { %8651 = vmatprep.subr.bf16.mxu0 %v13511_v45  ;;  %9605 = vmatprep.subr.bf16.mxu1 %v13514_v46  ;;  %v13607_v45 = vld [vmem:[%s14235_s25 + $0x2344] ss:$16 sps:$4 sm:$0xff]   ;;  %v13610_v46 = vld [vmem:[%s14235_s25 + $0x234c] ss:$16 sps:$4 sm:$0xff]  }
 0x501   : > { %8652 = vmatpush1.bf16.msra.mxu0 %v13509_v47  ;;  %9606 = vmatpush1.bf16.msra.mxu1 %v13512_v48  ;;  %v13605_v47 = vld [vmem:[%s14235_s25 + $0x2340] ss:$16 sps:$4 sm:$0xff]   ;;  %v13608_v48 = vld [vmem:[%s14235_s25 + $0x2348] ss:$16 sps:$4 sm:$0xff]  }
 0x502   : > { %8653 = vmatprep.subr.bf16.mxu0 %v13517_v49  ;;  %9607 = vmatprep.subr.bf16.mxu1 %v13520_v50  ;;  %v13613_v49 = vld [vmem:[%s14235_s25 + $0x2364] ss:$16 sps:$4 sm:$0xff]   ;;  %v13616_v50 = vld [vmem:[%s14235_s25 + $0x236c] ss:$16 sps:$4 sm:$0xff]  }
 0x505   : > { %8654 = vmatpush1.bf16.msra.mxu0 %v13515_v51  ;;  %9608 = vmatpush1.bf16.msra.mxu1 %v13518_v52  ;;  %v13611_v51 = vld [vmem:[%s14235_s25 + $0x2360] ss:$16 sps:$4 sm:$0xff]   ;;  %v13614_v52 = vld [vmem:[%s14235_s25 + $0x2368] ss:$16 sps:$4 sm:$0xff]  }
 0x506   : > { %8655 = vmatprep.subr.bf16.mxu0 %v13523_v53  ;;  %9609 = vmatprep.subr.bf16.mxu1 %v13526_v54  ;;  %v13619_v53 = vld [vmem:[%s14235_s25 + $0x2384] ss:$16 sps:$4 sm:$0xff]   ;;  %v13622_v54 = vld [vmem:[%s14235_s25 + $0x238c] ss:$16 sps:$4 sm:$0xff]  }
 0x509   : > { %8656 = vmatpush1.bf16.msra.mxu0 %v13521_v55  ;;  %9610 = vmatpush1.bf16.msra.mxu1 %v13524_v56  ;;  %v13617_v55 = vld [vmem:[%s14235_s25 + $0x2380] ss:$16 sps:$4 sm:$0xff]   ;;  %v13620_v56 = vld [vmem:[%s14235_s25 + $0x2388] ss:$16 sps:$4 sm:$0xff]  }
 0x50a   : > { %8657 = vmatprep.subr.bf16.mxu0 %v13531_v57  ;;  %9611 = vmatprep.subr.bf16.mxu1 %v13534_v58  ;;  %v13625_v57 = vld [vmem:[%s14235_s25 + $0x23a4] ss:$16 sps:$4 sm:$0xff]   ;;  %v13628_v58 = vld [vmem:[%s14235_s25 + $0x23ac] ss:$16 sps:$4 sm:$0xff]  }
 0x50d   : > { %8658 = vmatpush1.bf16.msra.mxu0 %v13529_v59  ;;  %9612 = vmatpush1.bf16.msra.mxu1 %v13532_v60  ;;  %v13623_v59 = vld [vmem:[%s14235_s25 + $0x23a0] ss:$16 sps:$4 sm:$0xff]   ;;  %v13626_v60 = vld [vmem:[%s14235_s25 + $0x23a8] ss:$16 sps:$4 sm:$0xff]  }
 0x50e   : > { %8659 = vmatprep.subr.bf16.mxu0 %v13538_v61  ;;  %9613 = vmatprep.subr.bf16.mxu1 %v13541_v62  ;;  %v13634_v61 = vld [vmem:[%s14235_s25 + $0x23c4] ss:$16 sps:$4 sm:$0xff]   ;;  %v13637_v62 = vld [vmem:[%s14235_s25 + $0x23cc] ss:$16 sps:$4 sm:$0xff]  }
 0x511   : > { %8660 = vmatpush1.bf16.msra.mxu0 %v13536_v63  ;;  %9614 = vmatpush1.bf16.msra.mxu1 %v13539_v0  ;;  %v13632_v63 = vld [vmem:[%s14235_s25 + $0x23c0] ss:$16 sps:$4 sm:$0xff]   ;;  %v13635_v0 = vld [vmem:[%s14235_s25 + $0x23c8] ss:$16 sps:$4 sm:$0xff]  }
 0x512   : > { %8682 = vmatprep.subr.bf16.mxu0 %v13547_v1  ;;  %9636 = vmatprep.subr.bf16.mxu1 %v13550_v2  ;;  %v13640_v1 = vld [vmem:[%s14235_s25 + $0x23e4] ss:$16 sps:$4 sm:$0xff]   ;;  %v13643_v2 = vld [vmem:[%s14235_s25 + $0x23ec] ss:$16 sps:$4 sm:$0xff]  }
 0x514   : > { %8662 = vmatmul.mubr.bf16.vlgmr.msra.gmra.mrb[0].mxu0 %v13542_v3  ;;  %9616 = vmatmul.mubr.bf16.vlgmr.msra.gmra.mrb[0].mxu1 %v13542_v3  ;;  %v13638_v3 = vld [vmem:[%s14235_s25 + $0x23e0] ss:$16 sps:$4 sm:$0xff]  }
 0x515   : > { %8683 = vmatpush1.bf16.msra.mxu0 %v13545_v4  ;;  %9637 = vmatpush1.bf16.msra.mxu1 %v13548_v5  ;;  %v13641_v4 = vld [vmem:[%s14235_s25 + $0x23e8] ss:$16 sps:$4 sm:$0xff]  }
 0x516   : > { %8684 = vmatprep.subr.bf16.mxu0 %v13553_v6  ;;  %9638 = vmatprep.subr.bf16.mxu1 %v13556_v7  ;;  %v13644_v5 = vld [vmem:[#allocation2 + $0x88] ss:$144 sps:$4 sm:$0xff]   ;;  %v13647_v6 = vld [vmem:[#allocation2 + $0x1ac] ss:$144 sps:$4 sm:$0xff]  }
 0x517   : > { %8671 = vmatprep.mubr.bf16.mxu0 %v13629_v8  ;;  %9625 = vmatprep.mubr.bf16.mxu1 %v13629_v8  ;;  %v13649_v7 = vld [vmem:[#allocation2 + $0x1a8] ss:$144 sps:$4 sm:$0xff]   ;;  %v9691_v8 = vlaneseq }
 0x519   : > { %8685 = vmatpush1.bf16.msra.mxu0 %v13551_v9  ;;  %9639 = vmatpush1.bf16.msra.mxu1 %v13554_v10  ;;  %v9692_v9 = vshrl.u32 %v9691_v8, 7 }
 0x51a   : > { %8686 = vmatprep.subr.bf16.mxu0 %v13559_v11  ;;  %9640 = vmatprep.subr.bf16.mxu1 %v13562_v12  ;;  %v9689_v12 = vld [vmem:[%s355_s19] sm:$0xf] }
 0x51b   : > { %v15409_v10 = vsub.s32 0, %v9692_v9  ;;  %v15411_v11 = vsub.s32 2, %v9692_v9 }
 0x51c   : > { %8672 = vmatmul.mubr.bf16.gmra.mrb[4].mxu0 %v13631_v13  ;;  %9626 = vmatmul.mubr.bf16.gmra.mrb[4].mxu1 %v13631_v13  ;;  %v15415_v13 = vsub.s32 1, %v9692_v9 }
 0x51d   : > { %8687 = vmatpush1.bf16.msra.mxu0 %v13557_v14  ;;  %9641 = vmatpush1.bf16.msra.mxu1 %v13560_v15  ;;  %v15417_v14 = vsub.s32 3, %v9692_v9  ;;  %v9694_v15 = vrot.slane %v9689_v12, %v15409_v10 }
 0x51e   : > { %8688 = vmatprep.subr.bf16.mxu0 %v13565_v16  ;;  %9642 = vmatprep.subr.bf16.mxu1 %v13568_v17  ;;  %v9702_v16 = vrot.slane %v9689_v12, %v15411_v11  ;;  %v9727_v17 = vld [vmem:[%s364_s3] sm:$0xf] }
 0x51f   : > { %8714 = vmatprep.mubr.bf16.mxu0 %v13646_v18  ;;  %9668 = vmatprep.mubr.bf16.mxu1 %v13646_v18  ;;  %v9698_v18 = vrot.slane %v9689_v12, %v15415_v13 }
 0x521   : > { %8689 = vmatpush1.bf16.msra.mxu0 %v13563_v19  ;;  %9643 = vmatpush1.bf16.msra.mxu1 %v13566_v20  ;;  %v9706_v19 = vrot.slane %v9689_v12, %v15417_v14 }
 0x522   : > { %8690 = vmatprep.subr.bf16.mxu0 %v13571_v21  ;;  %9644 = vmatprep.subr.bf16.mxu1 %v13574_v22 }
 0x525   : > { %8691 = vmatpush1.bf16.msra.mxu0 %v13569_v23  ;;  %9645 = vmatpush1.bf16.msra.mxu1 %v13572_v24  ;;  %v9732_v23 = vrot.slane %v9727_v17, %v15409_v10 }
 0x526   : > { %8692 = vmatprep.subr.bf16.mxu0 %v13577_v25  ;;  %9646 = vmatprep.subr.bf16.mxu1 %v13580_v26  ;;  %v9740_v25 = vrot.slane %v9727_v17, %v15411_v11 }
 0x529   : > { %8693 = vmatpush1.bf16.msra.mxu0 %v13575_v27  ;;  %9647 = vmatpush1.bf16.msra.mxu1 %v13578_v28 }
 0x52a   : > { %8694 = vmatprep.subr.bf16.mxu0 %v13583_v29  ;;  %9648 = vmatprep.subr.bf16.mxu1 %v13586_v30  ;;  %v9736_v29 = vrot.slane %v9727_v17, %v15415_v13 }
 0x52d   : > { %8695 = vmatpush1.bf16.msra.mxu0 %v13581_v31  ;;  %9649 = vmatpush1.bf16.msra.mxu1 %v13584_v32  ;;  %v9744_v31 = vrot.slane %v9727_v17, %v15417_v14 }
 0x52e   : > { %8696 = vmatprep.subr.bf16.mxu0 %v13589_v33  ;;  %9650 = vmatprep.subr.bf16.mxu1 %v13592_v34 }
 0x531   : > { %8697 = vmatpush1.bf16.msra.mxu0 %v13587_v35  ;;  %9651 = vmatpush1.bf16.msra.mxu1 %v13590_v36 }
 0x532   : > { %8698 = vmatprep.subr.bf16.mxu0 %v13595_v37  ;;  %9652 = vmatprep.subr.bf16.mxu1 %v13598_v38 }
 0x535   : > { %8699 = vmatpush1.bf16.msra.mxu0 %v13593_v39  ;;  %9653 = vmatpush1.bf16.msra.mxu1 %v13596_v40 }
 0x536   : > { %8700 = vmatprep.subr.bf16.mxu0 %v13601_v41  ;;  %9654 = vmatprep.subr.bf16.mxu1 %v13604_v42 }
 0x539   : > { %8701 = vmatpush1.bf16.msra.mxu0 %v13599_v43  ;;  %9655 = vmatpush1.bf16.msra.mxu1 %v13602_v44 }
 0x53a   : > { %8702 = vmatprep.subr.bf16.mxu0 %v13607_v45  ;;  %9656 = vmatprep.subr.bf16.mxu1 %v13610_v46 }
 0x53d   : > { %8703 = vmatpush1.bf16.msra.mxu0 %v13605_v47  ;;  %9657 = vmatpush1.bf16.msra.mxu1 %v13608_v48 }
 0x53e   : > { %8704 = vmatprep.subr.bf16.mxu0 %v13613_v49  ;;  %9658 = vmatprep.subr.bf16.mxu1 %v13616_v50 }
 0x541   : > { %8705 = vmatpush1.bf16.msra.mxu0 %v13611_v51  ;;  %9659 = vmatpush1.bf16.msra.mxu1 %v13614_v52 }
 0x542   : > { %8706 = vmatprep.subr.bf16.mxu0 %v13619_v53  ;;  %9660 = vmatprep.subr.bf16.mxu1 %v13622_v54 }
 0x545   : > { %8707 = vmatpush1.bf16.msra.mxu0 %v13617_v55  ;;  %9661 = vmatpush1.bf16.msra.mxu1 %v13620_v56 }
 0x546   : > { %8708 = vmatprep.subr.bf16.mxu0 %v13625_v57  ;;  %9662 = vmatprep.subr.bf16.mxu1 %v13628_v58 }
 0x549   : > { %8709 = vmatpush1.bf16.msra.mxu0 %v13623_v59  ;;  %9663 = vmatpush1.bf16.msra.mxu1 %v13626_v60 }
 0x54a   : > { %8710 = vmatprep.subr.bf16.mxu0 %v13634_v61  ;;  %9664 = vmatprep.subr.bf16.mxu1 %v13637_v62 }
 0x54d   : > { %8711 = vmatpush1.bf16.msra.mxu0 %v13632_v63  ;;  %9665 = vmatpush1.bf16.msra.mxu1 %v13635_v0 }
 0x54e   : > { %8712 = vmatprep.subr.bf16.mxu0 %v13640_v1  ;;  %9666 = vmatprep.subr.bf16.mxu1 %v13643_v2 }
 0x551   : > { %8713 = vmatpush1.bf16.msra.mxu0 %v13638_v3  ;;  %9667 = vmatpush1.bf16.msra.mxu1 %v13641_v4 }
 0x554   : > { %8715 = vmatmul.mubr.bf16.vlgmr.msra.gmra.mrb[0].mxu0 %v13644_v5  ;;  %9669 = vmatmul.mubr.bf16.vlgmr.msra.gmra.mrb[0].mxu1 %v13644_v5 }
 0x555   : > { %8724 = vmatprep.mubr.bf16.mxu0 %v13647_v6  ;;  %9678 = vmatprep.mubr.bf16.mxu1 %v13647_v6 }
 0x55c   : > { %8725 = vmatmul.mubr.bf16.gmra.mrb[4].mxu0 %v13649_v7  ;;  %9679 = vmatmul.mubr.bf16.gmra.mrb[4].mxu1 %v13649_v7 }
 0x627   : > { %v8716_v20 = vpop.f32.mrb[0].mxu0  ;;  %v9670_v21 = vpop.f32.mrb[0].mxu1 }
 0x628   : > { %v9711_v22 = vmul.f32 %v9694_v15, %v8716_v20  ;;  %v9713_v24 = vmul.f32 %v9702_v16, %v9670_v21  ;;  %v8718_v26 = vpop.f32.mrb[1].mxu0  ;;  %v9672_v27 = vpop.f32.mrb[1].mxu1 }
 0x629   : > { %v9712_v28 = vmul.f32 %v9698_v18, %v8718_v26  ;;  %v9714_v30 = vmul.f32 %v9706_v19, %v9672_v27  ;;  %v8720_v32 = vpop.f32.mrb[2].mxu0  ;;  %v9674_v33 = vpop.f32.mrb[2].mxu1 }
 0x62a   : > { %v9715_v34 = vmul.f32 %v9694_v15, %v8720_v32  ;;  %v9717_v35 = vmul.f32 %v9702_v16, %v9674_v33  ;;  %v8722_v36 = vpop.f32.mrb[3].mxu0  ;;  %v9676_v37 = vpop.f32.mrb[3].mxu1  ;;  %v15429_v40 = vadd.f32 %v9732_v23, %v9711_v22  ;;  %v15431_v41 = vadd.f32 %v9740_v25, %v9713_v24 }
 0x62b   : > { %v9716_v38 = vmul.f32 %v9698_v18, %v8722_v36  ;;  %v9718_v39 = vmul.f32 %v9706_v19, %v9676_v37  ;;  %v15437_v44 = vadd.f32 %v9736_v29, %v9712_v28  ;;  %v15439_v45 = vadd.f32 %v9744_v31, %v9714_v30 }
 0x62c   : > { %v15433_v42 = vadd.f32 %v9732_v23, %v9715_v34  ;;  %v15435_v43 = vadd.f32 %v9740_v25, %v9717_v35 }
 0x62d   : > { %v15441_v46 = vadd.f32 %v9736_v29, %v9716_v38  ;;  %v15443_v47 = vadd.f32 %v9744_v31, %v9718_v39 }
 0x62e   : > { %v9765_v48 = vadd.f32 %v15433_v42, %v15429_v40  ;;  %v9783_v49 = vadd.f32 %v15435_v43, %v15431_v41 }
 0x62f   : > { %v9774_v50 = vadd.f32 %v15441_v46, %v15437_v44  ;;  %v9792_v51 = vadd.f32 %v15443_v47, %v15439_v45  ;;  %v8726_v52 = vpop.f32.mrb[4].mxu0  ;;  %v9680_v53 = vpop.f32.mrb[4].mxu1 }
 0x630   : > { %v9719_v54 = vmul.f32 %v9694_v15, %v8726_v52  ;;  %v9721_v55 = vmul.f32 %v9702_v16, %v9680_v53  ;;  %v8728_v56 = vpop.f32.mrb[5].mxu0  ;;  %v9682_v57 = vpop.f32.mrb[5].mxu1 }
 0x631   : > { %v9720_v58 = vmul.f32 %v9698_v18, %v8728_v56  ;;  %v9722_v59 = vmul.f32 %v9706_v19, %v9682_v57  ;;  %v8730_v60 = vpop.f32.mrb[6].mxu0  ;;  %v9684_v61 = vpop.f32.mrb[6].mxu1 }
 0x632   : > { %v9757_v62 = vadd.f32 %v9732_v23, %v9719_v54  ;;  %v9759_v63 = vadd.f32 %v9740_v25, %v9721_v55  ;;  %v9723_v0 = vmul.f32 %v9694_v15, %v8730_v60  ;;  %v9725_v1 = vmul.f32 %v9702_v16, %v9684_v61  ;;  %v8732_v2 = vpop.f32.mrb[7].mxu0  ;;  %v9686_v3 = vpop.f32.mrb[7].mxu1 }
 0x633   : > { %v9758_v4 = vadd.f32 %v9736_v29, %v9720_v58  ;;  %v15453_v5 = vadd.f32 %v9744_v31, %v9722_v59  ;;  %v9724_v6 = vmul.f32 %v9698_v18, %v8732_v2  ;;  %v9726_v7 = vmul.f32 %v9706_v19, %v9686_v3 }
 0x634   : > { %v9766_v8 = vadd.f32 %v9765_v48, %v9757_v62  ;;  %v9784_v9 = vadd.f32 %v9783_v49, %v9759_v63  ;;  %v9761_v12 = vadd.f32 %v9732_v23, %v9723_v0  ;;  %v9763_v17 = vadd.f32 %v9740_v25, %v9725_v1 }
 0x635   : > { %v9775_v20 = vadd.f32 %v9774_v50, %v9758_v4  ;;  %v9793_v21 = vadd.f32 %v9792_v51, %v15453_v5  ;;  %v9762_v22 = vadd.f32 %v9736_v29, %v9724_v6  ;;  %v15456_v24 = vadd.f32 %v9744_v31, %v9726_v7 }
 0x636   : > { %v9767_v26 = vadd.f32 %v9766_v8, %v9761_v12  ;;  %v9785_v15 = vadd.f32 %v9784_v9, %v9763_v17 }
 0x637   : > { %v9776_v16 = vadd.f32 %v9775_v20, %v9762_v22  ;;  %v9794_v27 = vadd.f32 %v9793_v21, %v15456_v24 }
 0x638   : > { %v9768_v28 = vrot.slane %v9767_v26, 4  ;;  %v9786_v30 = vrot.slane %v9785_v15, 4 }
 0x639   : > { %v9777_v32 = vrot.slane %v9776_v16, 4  ;;  %v9795_v18 = vrot.slane %v9794_v27, 4 }
 0x63a   : > { %v9769_v19 = vadd.f32 %v9768_v28, %v9767_v26  ;;  %v9787_v33 = vadd.f32 %v9786_v30, %v9785_v15 }
 0x63b   : > { %v9778_v34 = vadd.f32 %v9777_v32, %v9776_v16  ;;  %v9796_v23 = vadd.f32 %v9795_v18, %v9794_v27 }
 0x63c   : > { %v9770_v25 = vrot.slane %v9769_v19, 2  ;;  %v9788_v35 = vrot.slane %v9787_v33, 2 }
 0x63d   : > { %v9779_v36 = vrot.slane %v9778_v34, 2  ;;  %v9797_v37 = vrot.slane %v9796_v23, 2 }
 0x63e   : > { %v9771_v29 = vadd.f32 %v9770_v25, %v9769_v19  ;;  %v9789_v31 = vadd.f32 %v9788_v35, %v9787_v33 }
 0x63f   : > { %v9780_v38 = vadd.f32 %v9779_v36, %v9778_v34  ;;  %v9798_v39 = vadd.f32 %v9797_v37, %v9796_v23 }
 0x640   : > { %v9772_v48 = vrot.slane %v9771_v29, 1  ;;  %v9790_v49 = vrot.slane %v9789_v31, 1 }
 0x641   : > { %v9781_v50 = vrot.slane %v9780_v38, 1  ;;  %v9799_v51 = vrot.slane %v9798_v39, 1 }
 0x642   : > { %v9773_v52 = vadd.f32 %v9772_v48, %v9771_v29  ;;  %v9791_v53 = vadd.f32 %v9790_v49, %v9789_v31 }
 0x643   : > { %v9782_v54 = vadd.f32 %v9781_v50, %v9780_v38  ;;  %v9800_v55 = vadd.f32 %v9799_v51, %v9798_v39 }
 0x644   : > { %v9802_v56 = vmul.f32 0.03125, %v9773_v52  ;;  %v9804_v57 = vmul.f32 0.03125, %v9791_v53 }
 0x645   : > { %v9803_v58 = vmul.f32 0.03125, %v9782_v54  ;;  %v9805_v59 = vmul.f32 0.03125, %v9800_v55 }
 0x646   : > { %v15460_v60 = vsub.f32 %v15429_v40, %v9802_v56  ;;  %v15463_v61 = vsub.f32 %v15433_v42, %v9802_v56  ;;  %v15465_v0 = vsub.f32 %v9757_v62, %v9802_v56  ;;  %v15467_v1 = vsub.f32 %v9761_v12, %v9802_v56 }
 0x647   : > { %v15470_v2 = vsub.f32 %v15431_v41, %v9804_v57  ;;  %v15473_v3 = vsub.f32 %v15435_v43, %v9804_v57  ;;  %v15475_v6 = vsub.f32 %v9759_v63, %v9804_v57  ;;  %v15477_v7 = vsub.f32 %v9763_v17, %v9804_v57 }
 0x648   : > { %v9822_v40 = vmul.f32 %v15460_v60, %v15460_v60  ;;  %v9826_v42 = vmul.f32 %v15463_v61, %v15463_v61  ;;  %v9830_v62 = vmul.f32 %v15465_v0, %v15465_v0  ;;  %v9834_v41 = vmul.f32 %v15467_v1, %v15467_v1 }
 0x649   : > { %v9824_v43 = vmul.f32 %v15470_v2, %v15470_v2  ;;  %v9828_v63 = vmul.f32 %v15473_v3, %v15473_v3  ;;  %v9832_v8 = vmul.f32 %v15475_v6, %v15475_v6  ;;  %v15494_v12 = vsub.f32 %v15437_v44, %v9803_v58 }
 0x64a   : > { %v9838_v9 = vadd.f32 %v9826_v42, %v9822_v40  ;;  %v15497_v17 = vsub.f32 %v15441_v46, %v9803_v58  ;;  %v15499_v20 = vsub.f32 %v9758_v4, %v9803_v58  ;;  %v15501_v26 = vsub.f32 %v9762_v22, %v9803_v58 }
 0x64b   : > { %v9856_v21 = vadd.f32 %v9828_v63, %v9824_v43  ;;  %v15504_v15 = vsub.f32 %v15439_v45, %v9805_v59  ;;  %v15507_v16 = vsub.f32 %v15443_v47, %v9805_v59  ;;  %v9836_v28 = vmul.f32 %v15477_v7, %v15477_v7 }
 0x64c   : > { %v9839_v27 = vadd.f32 %v9838_v9, %v9830_v62  ;;  %v9823_v44 = vmul.f32 %v15494_v12, %v15494_v12  ;;  %v9827_v46 = vmul.f32 %v15497_v17, %v15497_v17  ;;  %v9831_v22 = vmul.f32 %v15499_v20, %v15499_v20 }
 0x64d   : > { %v9857_v4 = vadd.f32 %v9856_v21, %v9832_v8  ;;  %v15518_v45 = vsub.f32 %v15453_v5, %v9805_v59  ;;  %v15521_v47 = vsub.f32 %v15456_v24, %v9805_v59  ;;  %v9825_v18 = vmul.f32 %v15504_v15, %v15504_v15 }
 0x64e   : > { %v9840_v30 = vadd.f32 %v9839_v27, %v9834_v41  ;;  %v9847_v32 = vadd.f32 %v9827_v46, %v9823_v44  ;;  %v9829_v19 = vmul.f32 %v15507_v16, %v15507_v16  ;;  %v9835_v34 = vmul.f32 %v15501_v26, %v15501_v26 }
 0x64f   : > { %v9858_v33 = vadd.f32 %v9857_v4, %v9836_v28  ;;  %v9833_v5 = vmul.f32 %v15518_v45, %v15518_v45  ;;  %v9837_v29 = vmul.f32 %v15521_v47, %v15521_v47 }
 0x650   : > { %v9841_v23 = vrot.slane %v9840_v30, 4  ;;  %v9848_v25 = vadd.f32 %v9847_v32, %v9831_v22  ;;  %v9865_v35 = vadd.f32 %v9829_v19, %v9825_v18  ;;  %v9902_v32 = vld [vmem:[%s373_s10] sm:$0xf]  ;;  %v9940_v18 = vld [vmem:[%s382_s16] sm:$0xf] }
 0x651   : > { %v9859_v24 = vrot.slane %v9858_v33, 4  ;;  %v9907_v19 = vrot.slane %v9902_v32, %v15409_v10 }
 0x652   : > { %v9842_v36 = vadd.f32 %v9841_v23, %v9840_v30  ;;  %v9849_v37 = vadd.f32 %v9848_v25, %v9835_v34  ;;  %v9866_v31 = vadd.f32 %v9865_v35, %v9833_v5  ;;  %v9915_v34 = vrot.slane %v9902_v32, %v15411_v11 }
 0x653   : > { %v9860_v38 = vadd.f32 %v9859_v24, %v9858_v33  ;;  %v9945_v33 = vrot.slane %v9940_v18, %v15409_v10  ;;  %v9953_v23 = vrot.slane %v9940_v18, %v15411_v11  ;;  %v9911_v5 = vrot.slane %v9902_v32, %v15415_v13 }
 0x654   : > { %v9843_v39 = vrot.slane %v9842_v36, 2  ;;  %v9850_v48 = vrot.slane %v9849_v37, 4  ;;  %v9867_v49 = vadd.f32 %v9866_v31, %v9837_v29  ;;  %v15543_v35 = vrot.slane %v9940_v18, %v15415_v13 }
 0x655   : > { %v9861_v50 = vrot.slane %v9860_v38, 2  ;;  %v15546_v24 = vrot.slane %v9902_v32, %v15417_v14 }
 0x656   : > { %v9844_v51 = vadd.f32 %v9843_v39, %v9842_v36  ;;  %v9851_v52 = vadd.f32 %v9850_v48, %v9849_v37  ;;  %v9868_v53 = vrot.slane %v9867_v49, 4  ;;  %v15549_v36 = vrot.slane %v9940_v18, %v15417_v14 }
 0x657   : > { %v9862_v54 = vadd.f32 %v9861_v50, %v9860_v38 }
 0x658   : > { %v9845_v55 = vrot.slane %v9844_v51, 1  ;;  %v9852_v56 = vrot.slane %v9851_v52, 2  ;;  %v9869_v57 = vadd.f32 %v9868_v53, %v9867_v49 }
 0x659   : > { %v9863_v58 = vrot.slane %v9862_v54, 1 }
 0x65a   : > { %v9846_v59 = vadd.f32 %v9845_v55, %v9844_v51  ;;  %v9853_v40 = vadd.f32 %v9852_v56, %v9851_v52  ;;  %v9870_v42 = vrot.slane %v9869_v57, 2 }
 0x65b   : > { %v9864_v62 = vadd.f32 %v9863_v58, %v9862_v54 }
 0x65c   : > { %v9874_v41 = vmul.f32 0.03125, %v9846_v59  ;;  %v9854_v43 = vrot.slane %v9853_v40, 1  ;;  %v9871_v63 = vadd.f32 %v9870_v42, %v9869_v57 }
 0x65d   : > { %v9876_v8 = vmul.f32 0.03125, %v9864_v62 }
 0x65e   : > { %v9878_v9 = vadd.f32 1e-05, %v9874_v41  ;;  %v9855_v21 = vadd.f32 %v9854_v43, %v9853_v40  ;;  %v9872_v27 = vrot.slane %v9871_v63, 1 }
 0x65f   : > { %v9880_v28 = vadd.f32 1e-05, %v9876_v8 }
 0x660   : > { %13650 = vrsqrt.f32 %v9878_v9  ;;  %v9875_v44 = vmul.f32 0.03125, %v9855_v21  ;;  %v9873_v46 = vadd.f32 %v9872_v27, %v9871_v63 }
 0x661   : > { %13652 = vrsqrt.f32 %v9880_v28 }
 0x662   : > { %v9879_v4 = vadd.f32 1e-05, %v9875_v44  ;;  %v9877_v22 = vmul.f32 0.03125, %v9873_v46 }
 0x664   : > { %v9881_v30 = vadd.f32 1e-05, %v9877_v22  ;;  %13654 = vrsqrt.f32 %v9879_v4 }
 0x666   : > { %13656 = vrsqrt.f32 %v9881_v30 }
 0x66a   : > { %v13651_v25 = vpop.eup %13650 }
 0x66b   : > { %v13653_v37 = vpop.eup %13652  ;;  %v9886_v10 = vmul.f32 %v13651_v25, %v15460_v60  ;;  %v9890_v29 = vmul.f32 %v13651_v25, %v15463_v61  ;;  %v9894_v31 = vmul.f32 %v13651_v25, %v15465_v0  ;;  %v9898_v11 = vmul.f32 %v13651_v25, %v15467_v1 }
 0x66c   : > { %v9888_v38 = vmul.f32 %v13653_v37, %v15470_v2  ;;  %v9892_v13 = vmul.f32 %v13653_v37, %v15473_v3  ;;  %v9896_v39 = vmul.f32 %v13653_v37, %v15475_v6  ;;  %v9900_v48 = vmul.f32 %v13653_v37, %v15477_v7 }
 0x66d   : > { %v9924_v14 = vmul.f32 %v9907_v19, %v9886_v10  ;;  %v9928_v49 = vmul.f32 %v9907_v19, %v9890_v29  ;;  %v9932_v50 = vmul.f32 %v9907_v19, %v9894_v31  ;;  %v9936_v51 = vmul.f32 %v9907_v19, %v9898_v11 }
 0x66e   : > { %v9926_v60 = vmul.f32 %v9915_v34, %v9888_v38  ;;  %v9930_v52 = vmul.f32 %v9915_v34, %v9892_v13  ;;  %v9934_v61 = vmul.f32 %v9915_v34, %v9896_v39  ;;  %v9938_v53 = vmul.f32 %v9915_v34, %v9900_v48  ;;  %v13655_v2 = vpop.eup %13654 }
 0x66f   : > { %v9962_v0 = vadd.f32 %v9945_v33, %v9924_v14  ;;  %v9966_v54 = vadd.f32 %v9945_v33, %v9928_v49  ;;  %v9970_v1 = vadd.f32 %v9945_v33, %v9932_v50  ;;  %v9974_v55 = vadd.f32 %v9945_v33, %v9936_v51 }
 0x670   : > { %v9964_v56 = vadd.f32 %v9953_v23, %v9926_v60  ;;  %v9968_v3 = vadd.f32 %v9953_v23, %v9930_v52  ;;  %v9972_v57 = vadd.f32 %v9953_v23, %v9934_v61  ;;  %v9976_v6 = vadd.f32 %v9953_v23, %v9938_v53  ;;  %v13657_v58 = vpop.eup %13656 }
 0x671   : > { %v9978_v7 = vmax.f32 %v9962_v0, 0.0  ;;  %v9982_v59 = vmax.f32 %v9966_v54, 0.0  ;;  %v9986_v40 = vmax.f32 %v9970_v1, 0.0  ;;  %v9990_v42 = vmax.f32 %v9974_v55, 0.0 }
 0x672   : > { %v9980_v62 = vmax.f32 %v9964_v56, 0.0  ;;  %v9984_v41 = vmax.f32 %v9968_v3, 0.0  ;;  %v9988_v43 = vmax.f32 %v9972_v57, 0.0  ;;  %v9992_v63 = vmax.f32 %v9976_v6, 0.0 }
 0x673   : > { %9994 = vst [vmem:[%s15560_s7] sm:$0xff] %v9978_v7  ;;  %9998 = vst [vmem:[%s15560_s7 + $0x20] sm:$0xff] %v9982_v59  ;;  %v9887_v8 = vmul.f32 %v13655_v2, %v15494_v12  ;;  %v9891_v9 = vmul.f32 %v13655_v2, %v15497_v17  ;;  %v9895_v21 = vmul.f32 %v13655_v2, %v15499_v20 }
 0x674   : > { %10002 = vst [vmem:[%s15560_s7 + $0x40] sm:$0xff] %v9986_v40  ;;  %10006 = vst [vmem:[%s15560_s7 + $0x60] sm:$0xff] %v9990_v42  ;;  %v9899_v27 = vmul.f32 %v13655_v2, %v15501_v26  ;;  %v9889_v28 = vmul.f32 %v13657_v58, %v15504_v15  ;;  %v9893_v44 = vmul.f32 %v13657_v58, %v15507_v16 }
 0x675   : > { %9996 = vst [vmem:[%s15560_s7 + $0x10] sm:$0xff] %v9980_v62  ;;  %10000 = vst [vmem:[%s15560_s7 + $0x30] sm:$0xff] %v9984_v41  ;;  %v9897_v46 = vmul.f32 %v13657_v58, %v15518_v45  ;;  %v9901_v12 = vmul.f32 %v13657_v58, %v15521_v47  ;;  %v9925_v4 = vmul.f32 %v9911_v5, %v9887_v8 }
 0x676   : > { %10004 = vst [vmem:[%s15560_s7 + $0x50] sm:$0xff] %v9988_v43  ;;  %10008 = vst [vmem:[%s15560_s7 + $0x70] sm:$0xff] %v9992_v63  ;;  %v9929_v22 = vmul.f32 %v9911_v5, %v9891_v9  ;;  %v9933_v17 = vmul.f32 %v9911_v5, %v9895_v21  ;;  %v9937_v30 = vmul.f32 %v9911_v5, %v9899_v27 }
 0x677   : > { %v9927_v20 = vmul.f32 %v15546_v24, %v9889_v28  ;;  %v9931_v26 = vmul.f32 %v15546_v24, %v9893_v44  ;;  %v9935_v32 = vmul.f32 %v15546_v24, %v9897_v46  ;;  %v9939_v18 = vmul.f32 %v15546_v24, %v9901_v12 }
 0x678   : > { %v9963_v15 = vadd.f32 %v15543_v35, %v9925_v4  ;;  %v9967_v16 = vadd.f32 %v15543_v35, %v9929_v22  ;;  %v9971_v45 = vadd.f32 %v15543_v35, %v9933_v17  ;;  %v9975_v47 = vadd.f32 %v15543_v35, %v9937_v30 }
 0x679   : > { %v9965_v19 = vadd.f32 %v15549_v36, %v9927_v20  ;;  %v9969_v33 = vadd.f32 %v15549_v36, %v9931_v26  ;;  %v9973_v34 = vadd.f32 %v15549_v36, %v9935_v32  ;;  %v9977_v23 = vadd.f32 %v15549_v36, %v9939_v18 }
 0x67a   : > { %v9979_v25 = vmax.f32 %v9963_v15, 0.0  ;;  %v9983_v5 = vmax.f32 %v9967_v16, 0.0  ;;  %v9987_v35 = vmax.f32 %v9971_v45, 0.0  ;;  %v9991_v24 = vmax.f32 %v9975_v47, 0.0 }
 0x67b   : > { %v9981_v37 = vmax.f32 %v9965_v19, 0.0  ;;  %v9985_v36 = vmax.f32 %v9969_v33, 0.0  ;;  %v9989_v10 = vmax.f32 %v9973_v34, 0.0  ;;  %v9993_v29 = vmax.f32 %v9977_v23, 0.0 }
 0x67c   : > { %9995 = vst [vmem:[%s15560_s7 + $0x8] sm:$0xff] %v9979_v25  ;;  %9999 = vst [vmem:[%s15560_s7 + $0x28] sm:$0xff] %v9983_v5 }
 0x67d   : > { %10003 = vst [vmem:[%s15560_s7 + $0x48] sm:$0xff] %v9987_v35  ;;  %10007 = vst [vmem:[%s15560_s7 + $0x68] sm:$0xff] %v9991_v24 }
 0x67e   : > { %9997 = vst [vmem:[%s15560_s7 + $0x18] sm:$0xff] %v9981_v37  ;;  %10001 = vst [vmem:[%s15560_s7 + $0x38] sm:$0xff] %v9985_v36 }
 0x67f   : > { %10005 = vst [vmem:[%s15560_s7 + $0x58] sm:$0xff] %v9989_v10  ;;  %10009 = vst [vmem:[%s15560_s7 + $0x78] sm:$0xff] %v9993_v29 }
 0x680   : > { %13849 = shalt.err (!%p13846_p3)
}
 0x681   : > { %s13850_s23 = scalar_lea.hbm %s15595_s26, 2048  ;;  %s13854_s17 = scalar_lea.hbm %s15655_s6, 4096 }
 0x682   : > { %p13851_p6 = scmp.ne.s32.totalorder %s15595_s26, %s13850_s23  ;;  %p13855_p1 = scmp.lt.u32.totalorder %s15595_s26, %s15655_s6 }
 0x683   : > { %p13856_p9 = scmp.lt.u32.totalorder %s13854_s17, %s13850_s23  ;;  %p13858_p2 = scmp.lt.u32.totalorder %s13850_s23, %s15595_s26 }
 0x684   : > { %p13852_p7 = pnand %p13851_p6, %p15698_p4 }
 0x685   : > { %p13857_p12 = por %p13856_p9, %p13855_p1 }
 0x686   : > { %p13853_p13 = pneg %p13852_p7 }
 0x687   : > { %p13859_p0 = por %p13858_p2, %p13857_p12 }
 0x689   : > { %p13860_p8 = pnand %p13859_p0, %p13853_p13 }
 0x68b   : > { %13863 = shalt.err (!%p13860_p8)
}
 0x68c   : > { %s13928_s3 = smov 512   ;;  %s13929_s10 = smov 1024  }
 0x68d   : > { %s13930_s20 = smov 32  }
 0x68e   : > { %11743 = dma.vmem_to_hbm [thread:$0]  (%p15698_p4), %s15597_s28, 2048, %s15595_s26, %s10011_s30, %s13928_s3, %s13929_s10, %s13930_s20  }
 0x68f PF: > { %s15699_s16 = sld [smem:[#allocation23_spill]]  ;;  %s15700_s14 = sld [smem:[#allocation20_spill]] }
 0x690   : > { %s10039_s7 = sand.u32 1, %s13902_s21  }
 0x691   : > { %s10040_s13 = scalar_lea.sflag [#allocation4], %s10039_s7 }
 0x695   : > { %p15701_p10 = scmp.ne.s32.totalorder %s15699_s16, 0  ;;  %p15702_p5 = scmp.ge.s32.totalorder %s15700_s14, 2 }
 0x697   : > { %p11766_p11 = pnand %p15702_p5, %p15701_p10 }
 0x699   : > { %13897 = dma.done.wait (!%p11766_p11), %s10040_s13, 2048  }
 0x69a   : > { %13899 = vsyncadd (!%p11766_p11), %s10040_s13, 4294965248  ;;  %s15703_s24 = sld [smem:[#allocation21_spill]]  ;;  %s15704_s1 = sld [smem:[#allocation19_spill]] }
 0x69b   : > { %s15705_s23 = sld [smem:[#allocation22_spill]]  ;;  %s15706_s21 = smov %s13906_s22 }
 0x6a0   : > { %p26_p3 = scmp.ge.s32.totalorder %s15703_s24, 4   ;;  %s15707_s22 = smov %s15704_s1 }
 0x6a2   :  { %28 = sbr.rel (!%p26_p3) target bundleno = 13 (0xd), region = 142 }
 0x6a9   :  { %10045 = vsyncpa [#allocation3], 1 }
 0x6aa   :  { %10047 = vsyncpa [#allocation3 + $0x1], 1 }
 0x6ab   :  { %10048 = vsyncpa [#allocation6], 1 }
 0x6ac   :  { %10050 = vsyncpa [#allocation6 + $0x1], 1 }
 0x6ad   :  { %10051 = vsyncpa [#allocation9], 1 }
 0x6ae   :  { %10053 = vsyncpa [#allocation9 + $0x1], 1 }
 0x6af   :  { %10054 = vsyncpa [#allocation12], 1 }
 0x6b0   :  { %10056 = vsyncpa [#allocation12 + $0x1], 1 }
 0x6b1   :  { %10057 = vsyncpa [#allocation4], 1 }
 0x6b2   :  { %10059 = vsyncpa [#allocation4 + $0x1], 1 }

</bundles_post_ra>
